<compile_context>
chip_gen: v6e
topology: v6e:2x2x1
jax: 0.10.0
libtpu: 0.0.40
codegen_flags: <defaults>
</compile_context>

<pallas_src>
import numpy as np
import jax
import jax.numpy as jnp
from jax import lax
from jax.experimental import pallas as pl
from jax.experimental.pallas import tpu as pltpu


# ----------------------- config (stand-in for the external `config`) ---------
class Config:
    downrate = 4
    num_filter = 4
    dropout = 0.1
    lstm_input_size = 32
    lstm_num_layers = 2
    lstm_hidden_size = 32
    lstm_dropout = 0.1


ABC = "0123456789"
NUM_CLASSES = len(ABC) + 1      # len(abc) + 1 (blank)
CLASS_PAD = 128                 # softmax head padded to a full 128-lane group
NEG_BIG = -1e30                 # pad-lane logit -> exp() underflows to 0


# ----------------------- deterministic parameter initializers ----------------
def xavier_uniform(key, out_features, in_features, gain):
    limit = gain * np.sqrt(6.0 / (in_features + out_features))
    return jax.random.uniform(
        key, (out_features, in_features), minval=-limit, maxval=limit,
        dtype=jnp.float32)


def orthogonal(key, rows, cols):
    a = jax.random.normal(key, (max(rows, cols), min(rows, cols)),
                          dtype=jnp.float32)
    q, r = jnp.linalg.qr(a)
    q = q * jnp.sign(jnp.diagonal(r))
    if rows < cols:
        q = q.T
    return q[:rows, :cols]


def init_params(key, feature_dim):
    gain = float(np.sqrt(2.0))  # init.calculate_gain('relu')
    H = Config.lstm_hidden_size
    L = Config.lstm_num_layers
    keys = list(jax.random.split(key, 4 + 4 * L))
    k = iter(keys)

    params = {}
    # cnn2lstm: nn.Linear(feature_dim, lstm_input_size), xavier_uniform, bias 0
    w = xavier_uniform(next(k), Config.lstm_input_size, feature_dim, gain)
    params["cnn2lstm_w"] = w.T                               # (feature_dim, I)
    params["cnn2lstm_b"] = jnp.zeros((1, Config.lstm_input_size), jnp.float32)

    # lstm2logit: nn.Linear(2H, num_classes), xavier_uniform, bias 0
    w = xavier_uniform(next(k), NUM_CLASSES, 2 * H, gain)
    params["lstm2logit_w"] = w.T                             # (2H, num_classes)
    params["lstm2logit_b"] = jnp.zeros((1, NUM_CLASSES), jnp.float32)

    # LSTM: per layer, per direction: weight_ih (4H, in), weight_hh (4H, H)
    # orthogonal init, biases zero (b_ih + b_hh folded into one zero bias).
    params["lstm"] = []
    for layer in range(L):
        in_l = Config.lstm_input_size if layer == 0 else 2 * H
        layer_p = []
        for _direction in range(2):
            w_ih = orthogonal(next(k), 4 * H, in_l).T        # (in_l, 4H)
            w_hh = orthogonal(next(k), 4 * H, H).T           # (H, 4H)
            b = jnp.zeros((1, 4 * H), jnp.float32)
            layer_p.append((w_ih, w_hh, b))
        params["lstm"].append(layer_p)
    return params


def fuse_params(params):
    """Repack weights for the fused kernel (done once, outside the kernel)."""
    fused = {"w0": params["cnn2lstm_w"], "b0": params["cnn2lstm_b"],
             "wih": [], "bih": [], "whh": []}
    for layer_p in params["lstm"]:
        (wih_f, whh_f, b_f), (wih_b, whh_b, b_b) = layer_p
        # hoisted input projection: x @ [W_ih_fwd | W_ih_bwd] + [b_fwd | b_bwd]
        fused["wih"].append(jnp.concatenate([wih_f, wih_b], axis=1))  # (Din,8H)
        fused["bih"].append(jnp.concatenate([b_f, b_b], axis=1))      # (1, 8H)
        # block-diagonal recurrence: [h_f|0 ; 0|h_b] @ [W_hh_fwd ; W_hh_bwd]
        fused["whh"].append(jnp.concatenate([whh_f, whh_b], axis=0))  # (2H, 4H)
    # lstm2logit padded to 128 lanes: zero weight cols; NEG_BIG bias on pad
    # lanes so they contribute exp()==0 to the softmax denominator.
    pad = CLASS_PAD - NUM_CLASSES
    fused["w2"] = jnp.pad(params["lstm2logit_w"], ((0, 0), (0, pad)))
    fused["b2"] = jnp.pad(params["lstm2logit_b"], ((0, 0), (0, pad)),
                          constant_values=NEG_BIG)
    return fused


# ----------------------------- forward (inference) ---------------------------
def features_to_sequence(features):
    # features: (N, C, Hf, W) -> permute(3, 0, 2, 1) -> (W, N, Hf, C) -> view
    f = jnp.transpose(features, (3, 0, 2, 1))
    return f.reshape(f.shape[0], f.shape[1], -1)             # (T, N, Hf*C)


def crnn_forward(features, fused):
    """features: (N, num_filter, Hf, W) f32 -> softmax probs (T, N, classes)."""
    assert Config.lstm_num_layers == 2  # kernel below is specialized to 2 layers
    seq = features_to_sequence(features)                     # (T, N, F)
    T, N, F = seq.shape
    LI = Config.lstm_input_size
    H = Config.lstm_hidden_size
    Tm1 = T - 1

    def kernel(seq_ref, w0_ref, b0_ref, wih0_ref, bih0_ref, whh0_ref,
               wih1_ref, bih1_ref, whh1_ref, w2_ref, b2_ref,
               out_ref, y0_scr, y1_scr):
        # ---- stage 1: cnn2lstm (Dropout = identity in eval) Linear + ReLU,
        #      then the hoisted layer-0 input projection (both directions) as
        #      ONE batched matmul over all T*N rows.
        x0 = jnp.maximum(
            jnp.dot(seq_ref[...], w0_ref[...],
                    preferred_element_type=jnp.float32) + b0_ref[...], 0.0)
        xp0 = jnp.dot(x0, wih0_ref[...],
                      preferred_element_type=jnp.float32) + bih0_ref[...]

        # block-diagonal mask: rows 0:N (fwd) keep cols 0:H, rows N:2N (bwd)
        # keep cols H:2H -> one lane-dense (2N, 4H=128) recurrent gate tile.
        row = lax.broadcasted_iota(jnp.int32, (2 * N, 2 * H), 0)
        col = lax.broadcasted_iota(jnp.int32, (2 * N, 2 * H), 1)
        blk_mask = ((row < N) == (col < H)).astype(jnp.float32)

        def run_layer(xp, whh, y_scr):
            # xp: (T*N, 8H) precomputed x @ W_ih + b (fwd cols 0:4H, bwd 4H:8H)
            h = jnp.zeros((2 * N, H), jnp.float32)   # rows 0:N fwd, N:2N bwd
            c = jnp.zeros((2 * N, H), jnp.float32)
            for t in range(T):         # T small & static: fully unrolled, all
                tb = Tm1 - t           # ref/value slices are compile-time static
                xprj = jnp.concatenate(
                    [xp[t * N:(t + 1) * N, 0:4 * H],
                     xp[tb * N:(tb + 1) * N, 4 * H:8 * H]], axis=0)  # (2N, 4H)
                lhs = jnp.concatenate([h, h], axis=1) * blk_mask     # (2N, 2H)
                gates = jnp.dot(lhs, whh,
                                preferred_element_type=jnp.float32) + xprj
                # one fused cell for both directions (gate order i, f, g, o)
                i = jax.nn.sigmoid(gates[:, 0:H])
                f = jax.nn.sigmoid(gates[:, H:2 * H])
                g = jnp.tanh(gates[:, 2 * H:3 * H])
                o = jax.nn.sigmoid(gates[:, 3 * H:4 * H])
                c = f * c + i * g
                h = o * jnp.tanh(c)
                y_scr[t * N:(t + 1) * N, 0:H] = h[0:N]        # fwd h at time t
                y_scr[tb * N:(tb + 1) * N, H:2 * H] = h[N:2 * N]  # bwd at Tm1-t

        # ---- stage 2: LSTM layer 0 (both directions fused per step)
        run_layer(xp0, whh0_ref[...], y0_scr)

        # ---- stage 3: LSTM layer 1; input is [h_fwd | h_bwd] of layer 0,
        #      with its input projection again hoisted into one matmul.
        xp1 = jnp.dot(y0_scr[...], wih1_ref[...],
                      preferred_element_type=jnp.float32) + bih1_ref[...]
        run_layer(xp1, whh1_ref[...], y1_scr)

        # ---- stage 4: lstm2logit + Softmax(dim=2), lane-dense 128-wide head;
        #      pad-lane bias of -1e30 -> exp()==0, real slice taken in wrapper.
        logits = jnp.dot(y1_scr[...], w2_ref[...],
                         preferred_element_type=jnp.float32) + b2_ref[...]
        logits = logits - jnp.max(logits, axis=-1, keepdims=True)
        e = jnp.exp(logits)
        out_ref[...] = e / jnp.sum(e, axis=-1, keepdims=True)

    out2d = pl.pallas_call(
        kernel,
        out_shape=jax.ShapeDtypeStruct((T * N, CLASS_PAD), jnp.float32),
        grid_spec=pltpu.PrefetchScalarGridSpec(
            num_scalar_prefetch=0,
            grid=(1,),
            in_specs=[
                pl.BlockSpec((T * N, F), lambda i: (0, 0)),          # seq (2D)
                pl.BlockSpec((F, LI), lambda i: (0, 0)),             # cnn2lstm w
                pl.BlockSpec((1, LI), lambda i: (0, 0)),             # cnn2lstm b
                pl.BlockSpec((LI, 8 * H), lambda i: (0, 0)),         # l0 W_ih
                pl.BlockSpec((1, 8 * H), lambda i: (0, 0)),          # l0 b
                pl.BlockSpec((2 * H, 4 * H), lambda i: (0, 0)),      # l0 W_hh
                pl.BlockSpec((2 * H, 8 * H), lambda i: (0, 0)),      # l1 W_ih
                pl.BlockSpec((1, 8 * H), lambda i: (0, 0)),          # l1 b
                pl.BlockSpec((2 * H, 4 * H), lambda i: (0, 0)),      # l1 W_hh
                pl.BlockSpec((2 * H, CLASS_PAD), lambda i: (0, 0)),  # logit w
                pl.BlockSpec((1, CLASS_PAD), lambda i: (0, 0)),      # logit b
            ],
            out_specs=pl.BlockSpec((T * N, CLASS_PAD), lambda i: (0, 0)),
            scratch_shapes=[pltpu.VMEM((T * N, 2 * H), jnp.float32),  # layer0 y
                            pltpu.VMEM((T * N, 2 * H), jnp.float32)], # layer1 y
        ),
        compiler_params=pltpu.CompilerParams(
            dimension_semantics=("arbitrary",)),
    )(seq.reshape(T * N, F), fused["w0"], fused["b0"],
      fused["wih"][0], fused["bih"][0], fused["whh"][0],
      fused["wih"][1], fused["bih"][1], fused["whh"][1],
      fused["w2"], fused["b2"])
    return out2d[:, :NUM_CLASSES].reshape(T, N, NUM_CLASSES)


# ----------------------------- pure-JAX reference ----------------------------
def _ref_lstm_dir(x_seq, w_ih, w_hh, b):
    T, N, Din = x_seq.shape
    H = w_hh.shape[0]

    def step(carry, xt):
        h, c = carry
        gates = xt @ w_ih + h @ w_hh + b
        i = jax.nn.sigmoid(gates[:, :H])
        f = jax.nn.sigmoid(gates[:, H:2 * H])
        g = jnp.tanh(gates[:, 2 * H:3 * H])
        o = jax.nn.sigmoid(gates[:, 3 * H:])
        c = f * c + i * g
        h = o * jnp.tanh(c)
        return (h, c), h

    init = (jnp.zeros((N, H), jnp.float32), jnp.zeros((N, H), jnp.float32))
    _, hs = jax.lax.scan(step, init, x_seq)
    return hs


def crnn_forward_ref(features, params):
    seq = features_to_sequence(features)
    x = jnp.maximum(seq @ params["cnn2lstm_w"] + params["cnn2lstm_b"], 0.0)
    for layer_p in params["lstm"]:
        (wih_f, whh_f, b_f), (wih_r, whh_r, b_r) = layer_p
        h_fwd = _ref_lstm_dir(x, wih_f, whh_f, b_f)
        h_bwd = jnp.flip(_ref_lstm_dir(jnp.flip(x, axis=0), wih_r, whh_r, b_r),
                         axis=0)
        x = jnp.concatenate([h_fwd, h_bwd], axis=-1)
    y = x @ params["lstm2logit_w"] + params["lstm2logit_b"]
    return jax.nn.softmax(y, axis=2)


# ----------------------------------- main -------------------------------------
if __name__ == "__main__":
    key = jax.random.PRNGKey(0)
    k_feat, k_param = jax.random.split(key)

    # Small synthetic shapes: feature map from the (TODO'd) backbone.
    # input_size = (W_img, 16), downrate = 4 -> Hf = 4; num_filter = 4; T = W = 8.
    N, C, Hf, W = 2, Config.num_filter, 16 // Config.downrate, 8
    feature_dim = Hf * C  # int(input_size[1] / downrate) * num_filter = 16

    features = jax.random.normal(k_feat, (N, C, Hf, W), dtype=jnp.float32)
    params = init_params(k_param, feature_dim)
    fused = fuse_params(params)

    fwd = jax.jit(crnn_forward)
    out = jax.block_until_ready(fwd(features, fused))

    ref = jax.block_until_ready(crnn_forward_ref(features, params))
    np.testing.assert_allclose(np.asarray(out), np.asarray(ref),
                               rtol=1e-4, atol=1e-5)
    assert out.shape == (W, N, NUM_CLASSES)
    assert np.all(np.isfinite(np.asarray(out)))

    print("KERNEL_OK")
</pallas_src>

<mosaic_0001>
module attributes {stable_mosaic.version = 11 : i64} {
  func.func @kernel(%arg0: i32, %arg1: memref<16x16xf32, #tpu.memory_space<vmem>>, %arg2: memref<16x32xf32, #tpu.memory_space<vmem>>, %arg3: memref<1x32xf32, #tpu.memory_space<vmem>>, %arg4: memref<32x256xf32, #tpu.memory_space<vmem>>, %arg5: memref<1x256xf32, #tpu.memory_space<vmem>>, %arg6: memref<64x128xf32, #tpu.memory_space<vmem>>, %arg7: memref<64x256xf32, #tpu.memory_space<vmem>>, %arg8: memref<1x256xf32, #tpu.memory_space<vmem>>, %arg9: memref<64x128xf32, #tpu.memory_space<vmem>>, %arg10: memref<64x128xf32, #tpu.memory_space<vmem>>, %arg11: memref<1x128xf32, #tpu.memory_space<vmem>>, %arg12: memref<16x128xf32, #tpu.memory_space<vmem>>, %arg13: memref<16x64xf32, #tpu.memory_space<vmem>>, %arg14: memref<16x64xf32, #tpu.memory_space<vmem>>) attributes {dimension_semantics = [#tpu.dimension_semantics<arbitrary>], iteration_bounds = array<i64: 1>, scalar_prefetch = 0 : i64, scratch_operands = 2 : i64, tpu.core_type = #tpu.core_type<tc>, window_params = [{pipeline_mode = #tpu.pipeline_mode<synchronous>, transform_indices = @transform_0, window_bounds = array<i64: 16, 16>}, {pipeline_mode = #tpu.pipeline_mode<synchronous>, transform_indices = @transform_1, window_bounds = array<i64: 16, 32>}, {pipeline_mode = #tpu.pipeline_mode<synchronous>, transform_indices = @transform_2, window_bounds = array<i64: 1, 32>}, {pipeline_mode = #tpu.pipeline_mode<synchronous>, transform_indices = @transform_3, window_bounds = array<i64: 32, 256>}, {pipeline_mode = #tpu.pipeline_mode<synchronous>, transform_indices = @transform_4, window_bounds = array<i64: 1, 256>}, {pipeline_mode = #tpu.pipeline_mode<synchronous>, transform_indices = @transform_5, window_bounds = array<i64: 64, 128>}, {pipeline_mode = #tpu.pipeline_mode<synchronous>, transform_indices = @transform_6, window_bounds = array<i64: 64, 256>}, {pipeline_mode = #tpu.pipeline_mode<synchronous>, transform_indices = @transform_7, window_bounds = array<i64: 1, 256>}, {pipeline_mode = #tpu.pipeline_mode<synchronous>, transform_indices = @transform_8, window_bounds = array<i64: 64, 128>}, {pipeline_mode = #tpu.pipeline_mode<synchronous>, transform_indices = @transform_9, window_bounds = array<i64: 64, 128>}, {pipeline_mode = #tpu.pipeline_mode<synchronous>, transform_indices = @transform_10, window_bounds = array<i64: 1, 128>}, {pipeline_mode = #tpu.pipeline_mode<synchronous>, transform_indices = @transform_11, window_bounds = array<i64: 16, 128>}]} {
    %c0 = arith.constant 0 : index
    %c0_0 = arith.constant 0 : index
    %0 = vector.load %arg1[%c0, %c0_0] : memref<16x16xf32, #tpu.memory_space<vmem>>, vector<16x16xf32>
    %c0_1 = arith.constant 0 : index
    %c0_2 = arith.constant 0 : index
    %1 = vector.load %arg2[%c0_1, %c0_2] : memref<16x32xf32, #tpu.memory_space<vmem>>, vector<16x32xf32>
    %cst = arith.constant dense<0.000000e+00> : vector<16x32xf32>
    %2 = tpu.matmul %0, %1, %cst {dimension_numbers = #tpu.dot_dimension_numbers<[1], [0], [0], [1], [0, 0, 1, 1], [], []>} : vector<16x16xf32>, vector<16x32xf32>, vector<16x32xf32> -> vector<16x32xf32>
    %c0_3 = arith.constant 0 : index
    %c0_4 = arith.constant 0 : index
    %3 = vector.load %arg3[%c0_3, %c0_4] : memref<1x32xf32, #tpu.memory_space<vmem>>, vector<1x32xf32>
    %4 = vector.broadcast %3 : vector<1x32xf32> to vector<16x32xf32>
    %5 = arith.addf %2, %4 : vector<16x32xf32>
    %cst_5 = arith.constant 0.000000e+00 : f32
    %6 = vector.broadcast %cst_5 : f32 to vector<16x32xf32>
    %7 = arith.maximumf %5, %6 : vector<16x32xf32>
    %c0_6 = arith.constant 0 : index
    %c0_7 = arith.constant 0 : index
    %8 = vector.load %arg4[%c0_6, %c0_7] : memref<32x256xf32, #tpu.memory_space<vmem>>, vector<32x256xf32>
    %cst_8 = arith.constant dense<0.000000e+00> : vector<16x256xf32>
    %9 = tpu.matmul %7, %8, %cst_8 {dimension_numbers = #tpu.dot_dimension_numbers<[1], [0], [0], [1], [0, 0, 1, 1], [], []>} : vector<16x32xf32>, vector<32x256xf32>, vector<16x256xf32> -> vector<16x256xf32>
    %c0_9 = arith.constant 0 : index
    %c0_10 = arith.constant 0 : index
    %10 = vector.load %arg5[%c0_9, %c0_10] : memref<1x256xf32, #tpu.memory_space<vmem>>, vector<1x256xf32>
    %11 = vector.broadcast %10 : vector<1x256xf32> to vector<16x256xf32>
    %12 = arith.addf %9, %11 : vector<16x256xf32>
    %13 = tpu.iota {dimensions = array<i32: 0>} : vector<4x64xi32>
    %14 = tpu.iota {dimensions = array<i32: 1>} : vector<4x64xi32>
    %c2_i32 = arith.constant 2 : i32
    %15 = vector.broadcast %c2_i32 : i32 to vector<4x64xi32>
    %16 = arith.cmpi slt, %13, %15 : vector<4x64xi32>
    %c32_i32 = arith.constant 32 : i32
    %17 = vector.broadcast %c32_i32 : i32 to vector<4x64xi32>
    %18 = arith.cmpi slt, %14, %17 : vector<4x64xi32>
    %19 = arith.xori %16, %18 : vector<4x64xi1>
    %cst_11 = arith.constant dense<true> : vector<4x64xi1>
    %20 = arith.xori %19, %cst_11 : vector<4x64xi1>
    %21 = arith.extui %20 : vector<4x64xi1> to vector<4x64xi32>
    %22 = arith.sitofp %21 : vector<4x64xi32> to vector<4x64xf32>
    %c0_12 = arith.constant 0 : index
    %c0_13 = arith.constant 0 : index
    %23 = vector.load %arg6[%c0_12, %c0_13] : memref<64x128xf32, #tpu.memory_space<vmem>>, vector<64x128xf32>
    %cst_14 = arith.constant 0.000000e+00 : f32
    %24 = vector.broadcast %cst_14 : f32 to vector<4x32xf32>
    %cst_15 = arith.constant 0.000000e+00 : f32
    %25 = vector.broadcast %cst_15 : f32 to vector<4x32xf32>
    %26 = vector.extract_strided_slice %12 {offsets = [0, 0], sizes = [2, 128], strides = [1, 1]} : vector<16x256xf32> to vector<2x128xf32>
    %27 = vector.extract_strided_slice %12 {offsets = [14, 128], sizes = [2, 128], strides = [1, 1]} : vector<16x256xf32> to vector<2x128xf32>
    %28 = tpu.concatenate %26, %27 in 0 : vector<2x128xf32>, vector<2x128xf32> -> vector<4x128xf32>
    %29 = tpu.concatenate %24, %24 in 1 : vector<4x32xf32>, vector<4x32xf32> -> vector<4x64xf32>
    %30 = arith.mulf %29, %22 : vector<4x64xf32>
    %cst_16 = arith.constant dense<0.000000e+00> : vector<4x128xf32>
    %31 = tpu.matmul %30, %23, %cst_16 {dimension_numbers = #tpu.dot_dimension_numbers<[1], [0], [0], [1], [0, 0, 1, 1], [], []>} : vector<4x64xf32>, vector<64x128xf32>, vector<4x128xf32> -> vector<4x128xf32>
    %32 = arith.addf %31, %28 : vector<4x128xf32>
    %33 = vector.extract_strided_slice %32 {offsets = [0, 0], sizes = [4, 32], strides = [1, 1]} : vector<4x128xf32> to vector<4x32xf32>
    %34 = arith.negf %33 : vector<4x32xf32>
    %35 = math.exp %34 : vector<4x32xf32>
    %cst_17 = arith.constant 1.000000e+00 : f32
    %36 = vector.broadcast %cst_17 : f32 to vector<4x32xf32>
    %37 = arith.addf %36, %35 : vector<4x32xf32>
    %38 = arith.divf %36, %37 : vector<4x32xf32>
    %39 = vector.extract_strided_slice %32 {offsets = [0, 32], sizes = [4, 32], strides = [1, 1]} : vector<4x128xf32> to vector<4x32xf32>
    %40 = arith.negf %39 : vector<4x32xf32>
    %41 = math.exp %40 : vector<4x32xf32>
    %cst_18 = arith.constant 1.000000e+00 : f32
    %42 = vector.broadcast %cst_18 : f32 to vector<4x32xf32>
    %43 = arith.addf %42, %41 : vector<4x32xf32>
    %44 = arith.divf %42, %43 : vector<4x32xf32>
    %45 = vector.extract_strided_slice %32 {offsets = [0, 64], sizes = [4, 32], strides = [1, 1]} : vector<4x128xf32> to vector<4x32xf32>
    %46 = math.tanh %45 : vector<4x32xf32>
    %47 = vector.extract_strided_slice %32 {offsets = [0, 96], sizes = [4, 32], strides = [1, 1]} : vector<4x128xf32> to vector<4x32xf32>
    %48 = arith.negf %47 : vector<4x32xf32>
    %49 = math.exp %48 : vector<4x32xf32>
    %cst_19 = arith.constant 1.000000e+00 : f32
    %50 = vector.broadcast %cst_19 : f32 to vector<4x32xf32>
    %51 = arith.addf %50, %49 : vector<4x32xf32>
    %52 = arith.divf %50, %51 : vector<4x32xf32>
    %53 = arith.mulf %44, %25 : vector<4x32xf32>
    %54 = arith.mulf %38, %46 : vector<4x32xf32>
    %55 = arith.addf %53, %54 : vector<4x32xf32>
    %56 = math.tanh %55 : vector<4x32xf32>
    %57 = arith.mulf %52, %56 : vector<4x32xf32>
    %58 = vector.extract_strided_slice %57 {offsets = [0, 0], sizes = [2, 32], strides = [1, 1]} : vector<4x32xf32> to vector<2x32xf32>
    %c0_20 = arith.constant 0 : index
    %c0_21 = arith.constant 0 : index
    %59 = vector.load %arg13[%c0_20, %c0_21] : memref<16x64xf32, #tpu.memory_space<vmem>>, vector<2x32xf32>
    tpu.vector_store %arg13[%c0_20, %c0_21], %58 {strides = array<i32>} : memref<16x64xf32, #tpu.memory_space<vmem>>, vector<2x32xf32>,
    %60 = vector.extract_strided_slice %57 {offsets = [2, 0], sizes = [2, 32], strides = [1, 1]} : vector<4x32xf32> to vector<2x32xf32>
    %c14 = arith.constant 14 : index
    %c32 = arith.constant 32 : index
    %61 = vector.load %arg13[%c14, %c32] : memref<16x64xf32, #tpu.memory_space<vmem>>, vector<2x32xf32>
    tpu.vector_store %arg13[%c14, %c32], %60 {strides = array<i32>} : memref<16x64xf32, #tpu.memory_space<vmem>>, vector<2x32xf32>,
    %62 = vector.extract_strided_slice %12 {offsets = [2, 0], sizes = [2, 128], strides = [1, 1]} : vector<16x256xf32> to vector<2x128xf32>
    %63 = vector.extract_strided_slice %12 {offsets = [12, 128], sizes = [2, 128], strides = [1, 1]} : vector<16x256xf32> to vector<2x128xf32>
    %64 = tpu.concatenate %62, %63 in 0 : vector<2x128xf32>, vector<2x128xf32> -> vector<4x128xf32>
    %65 = tpu.concatenate %57, %57 in 1 : vector<4x32xf32>, vector<4x32xf32> -> vector<4x64xf32>
    %66 = arith.mulf %65, %22 : vector<4x64xf32>
    %cst_22 = arith.constant dense<0.000000e+00> : vector<4x128xf32>
    %67 = tpu.matmul %66, %23, %cst_22 {dimension_numbers = #tpu.dot_dimension_numbers<[1], [0], [0], [1], [0, 0, 1, 1], [], []>} : vector<4x64xf32>, vector<64x128xf32>, vector<4x128xf32> -> vector<4x128xf32>
    %68 = arith.addf %67, %64 : vector<4x128xf32>
    %69 = vector.extract_strided_slice %68 {offsets = [0, 0], sizes = [4, 32], strides = [1, 1]} : vector<4x128xf32> to vector<4x32xf32>
    %70 = arith.negf %69 : vector<4x32xf32>
    %71 = math.exp %70 : vector<4x32xf32>
    %cst_23 = arith.constant 1.000000e+00 : f32
    %72 = vector.broadcast %cst_23 : f32 to vector<4x32xf32>
    %73 = arith.addf %72, %71 : vector<4x32xf32>
    %74 = arith.divf %72, %73 : vector<4x32xf32>
    %75 = vector.extract_strided_slice %68 {offsets = [0, 32], sizes = [4, 32], strides = [1, 1]} : vector<4x128xf32> to vector<4x32xf32>
    %76 = arith.negf %75 : vector<4x32xf32>
    %77 = math.exp %76 : vector<4x32xf32>
    %cst_24 = arith.constant 1.000000e+00 : f32
    %78 = vector.broadcast %cst_24 : f32 to vector<4x32xf32>
    %79 = arith.addf %78, %77 : vector<4x32xf32>
    %80 = arith.divf %78, %79 : vector<4x32xf32>
    %81 = vector.extract_strided_slice %68 {offsets = [0, 64], sizes = [4, 32], strides = [1, 1]} : vector<4x128xf32> to vector<4x32xf32>
    %82 = math.tanh %81 : vector<4x32xf32>
    %83 = vector.extract_strided_slice %68 {offsets = [0, 96], sizes = [4, 32], strides = [1, 1]} : vector<4x128xf32> to vector<4x32xf32>
    %84 = arith.negf %83 : vector<4x32xf32>
    %85 = math.exp %84 : vector<4x32xf32>
    %cst_25 = arith.constant 1.000000e+00 : f32
    %86 = vector.broadcast %cst_25 : f32 to vector<4x32xf32>
    %87 = arith.addf %86, %85 : vector<4x32xf32>
    %88 = arith.divf %86, %87 : vector<4x32xf32>
    %89 = arith.mulf %80, %55 : vector<4x32xf32>
    %90 = arith.mulf %74, %82 : vector<4x32xf32>
    %91 = arith.addf %89, %90 : vector<4x32xf32>
    %92 = math.tanh %91 : vector<4x32xf32>
    %93 = arith.mulf %88, %92 : vector<4x32xf32>
    %94 = vector.extract_strided_slice %93 {offsets = [0, 0], sizes = [2, 32], strides = [1, 1]} : vector<4x32xf32> to vector<2x32xf32>
    %c2 = arith.constant 2 : index
    %c0_26 = arith.constant 0 : index
    %95 = vector.load %arg13[%c2, %c0_26] : memref<16x64xf32, #tpu.memory_space<vmem>>, vector<2x32xf32>
    tpu.vector_store %arg13[%c2, %c0_26], %94 {strides = array<i32>} : memref<16x64xf32, #tpu.memory_space<vmem>>, vector<2x32xf32>,
    %96 = vector.extract_strided_slice %93 {offsets = [2, 0], sizes = [2, 32], strides = [1, 1]} : vector<4x32xf32> to vector<2x32xf32>
    %c12 = arith.constant 12 : index
    %c32_27 = arith.constant 32 : index
    %97 = vector.load %arg13[%c12, %c32_27] : memref<16x64xf32, #tpu.memory_space<vmem>>, vector<2x32xf32>
    tpu.vector_store %arg13[%c12, %c32_27], %96 {strides = array<i32>} : memref<16x64xf32, #tpu.memory_space<vmem>>, vector<2x32xf32>,
    %98 = vector.extract_strided_slice %12 {offsets = [4, 0], sizes = [2, 128], strides = [1, 1]} : vector<16x256xf32> to vector<2x128xf32>
    %99 = vector.extract_strided_slice %12 {offsets = [10, 128], sizes = [2, 128], strides = [1, 1]} : vector<16x256xf32> to vector<2x128xf32>
    %100 = tpu.concatenate %98, %99 in 0 : vector<2x128xf32>, vector<2x128xf32> -> vector<4x128xf32>
    %101 = tpu.concatenate %93, %93 in 1 : vector<4x32xf32>, vector<4x32xf32> -> vector<4x64xf32>
    %102 = arith.mulf %101, %22 : vector<4x64xf32>
    %cst_28 = arith.constant dense<0.000000e+00> : vector<4x128xf32>
    %103 = tpu.matmul %102, %23, %cst_28 {dimension_numbers = #tpu.dot_dimension_numbers<[1], [0], [0], [1], [0, 0, 1, 1], [], []>} : vector<4x64xf32>, vector<64x128xf32>, vector<4x128xf32> -> vector<4x128xf32>
    %104 = arith.addf %103, %100 : vector<4x128xf32>
    %105 = vector.extract_strided_slice %104 {offsets = [0, 0], sizes = [4, 32], strides = [1, 1]} : vector<4x128xf32> to vector<4x32xf32>
    %106 = arith.negf %105 : vector<4x32xf32>
    %107 = math.exp %106 : vector<4x32xf32>
    %cst_29 = arith.constant 1.000000e+00 : f32
    %108 = vector.broadcast %cst_29 : f32 to vector<4x32xf32>
    %109 = arith.addf %108, %107 : vector<4x32xf32>
    %110 = arith.divf %108, %109 : vector<4x32xf32>
    %111 = vector.extract_strided_slice %104 {offsets = [0, 32], sizes = [4, 32], strides = [1, 1]} : vector<4x128xf32> to vector<4x32xf32>
    %112 = arith.negf %111 : vector<4x32xf32>
    %113 = math.exp %112 : vector<4x32xf32>
    %cst_30 = arith.constant 1.000000e+00 : f32
    %114 = vector.broadcast %cst_30 : f32 to vector<4x32xf32>
    %115 = arith.addf %114, %113 : vector<4x32xf32>
    %116 = arith.divf %114, %115 : vector<4x32xf32>
    %117 = vector.extract_strided_slice %104 {offsets = [0, 64], sizes = [4, 32], strides = [1, 1]} : vector<4x128xf32> to vector<4x32xf32>
    %118 = math.tanh %117 : vector<4x32xf32>
    %119 = vector.extract_strided_slice %104 {offsets = [0, 96], sizes = [4, 32], strides = [1, 1]} : vector<4x128xf32> to vector<4x32xf32>
    %120 = arith.negf %119 : vector<4x32xf32>
    %121 = math.exp %120 : vector<4x32xf32>
    %cst_31 = arith.constant 1.000000e+00 : f32
    %122 = vector.broadcast %cst_31 : f32 to vector<4x32xf32>
    %123 = arith.addf %122, %121 : vector<4x32xf32>
    %124 = arith.divf %122, %123 : vector<4x32xf32>
    %125 = arith.mulf %116, %91 : vector<4x32xf32>
    %126 = arith.mulf %110, %118 : vector<4x32xf32>
    %127 = arith.addf %125, %126 : vector<4x32xf32>
    %128 = math.tanh %127 : vector<4x32xf32>
    %129 = arith.mulf %124, %128 : vector<4x32xf32>
    %130 = vector.extract_strided_slice %129 {offsets = [0, 0], sizes = [2, 32], strides = [1, 1]} : vector<4x32xf32> to vector<2x32xf32>
    %c4 = arith.constant 4 : index
    %c0_32 = arith.constant 0 : index
    %131 = vector.load %arg13[%c4, %c0_32] : memref<16x64xf32, #tpu.memory_space<vmem>>, vector<2x32xf32>
    tpu.vector_store %arg13[%c4, %c0_32], %130 {strides = array<i32>} : memref<16x64xf32, #tpu.memory_space<vmem>>, vector<2x32xf32>,
    %132 = vector.extract_strided_slice %129 {offsets = [2, 0], sizes = [2, 32], strides = [1, 1]} : vector<4x32xf32> to vector<2x32xf32>
    %c10 = arith.constant 10 : index
    %c32_33 = arith.constant 32 : index
    %133 = vector.load %arg13[%c10, %c32_33] : memref<16x64xf32, #tpu.memory_space<vmem>>, vector<2x32xf32>
    tpu.vector_store %arg13[%c10, %c32_33], %132 {strides = array<i32>} : memref<16x64xf32, #tpu.memory_space<vmem>>, vector<2x32xf32>,
    %134 = vector.extract_strided_slice %12 {offsets = [6, 0], sizes = [2, 128], strides = [1, 1]} : vector<16x256xf32> to vector<2x128xf32>
    %135 = vector.extract_strided_slice %12 {offsets = [8, 128], sizes = [2, 128], strides = [1, 1]} : vector<16x256xf32> to vector<2x128xf32>
    %136 = tpu.concatenate %134, %135 in 0 : vector<2x128xf32>, vector<2x128xf32> -> vector<4x128xf32>
    %137 = tpu.concatenate %129, %129 in 1 : vector<4x32xf32>, vector<4x32xf32> -> vector<4x64xf32>
    %138 = arith.mulf %137, %22 : vector<4x64xf32>
    %cst_34 = arith.constant dense<0.000000e+00> : vector<4x128xf32>
    %139 = tpu.matmul %138, %23, %cst_34 {dimension_numbers = #tpu.dot_dimension_numbers<[1], [0], [0], [1], [0, 0, 1, 1], [], []>} : vector<4x64xf32>, vector<64x128xf32>, vector<4x128xf32> -> vector<4x128xf32>
    %140 = arith.addf %139, %136 : vector<4x128xf32>
    %141 = vector.extract_strided_slice %140 {offsets = [0, 0], sizes = [4, 32], strides = [1, 1]} : vector<4x128xf32> to vector<4x32xf32>
    %142 = arith.negf %141 : vector<4x32xf32>
    %143 = math.exp %142 : vector<4x32xf32>
    %cst_35 = arith.constant 1.000000e+00 : f32
    %144 = vector.broadcast %cst_35 : f32 to vector<4x32xf32>
    %145 = arith.addf %144, %143 : vector<4x32xf32>
    %146 = arith.divf %144, %145 : vector<4x32xf32>
    %147 = vector.extract_strided_slice %140 {offsets = [0, 32], sizes = [4, 32], strides = [1, 1]} : vector<4x128xf32> to vector<4x32xf32>
    %148 = arith.negf %147 : vector<4x32xf32>
    %149 = math.exp %148 : vector<4x32xf32>
    %cst_36 = arith.constant 1.000000e+00 : f32
    %150 = vector.broadcast %cst_36 : f32 to vector<4x32xf32>
    %151 = arith.addf %150, %149 : vector<4x32xf32>
    %152 = arith.divf %150, %151 : vector<4x32xf32>
    %153 = vector.extract_strided_slice %140 {offsets = [0, 64], sizes = [4, 32], strides = [1, 1]} : vector<4x128xf32> to vector<4x32xf32>
    %154 = math.tanh %153 : vector<4x32xf32>
    %155 = vector.extract_strided_slice %140 {offsets = [0, 96], sizes = [4, 32], strides = [1, 1]} : vector<4x128xf32> to vector<4x32xf32>
    %156 = arith.negf %155 : vector<4x32xf32>
    %157 = math.exp %156 : vector<4x32xf32>
    %cst_37 = arith.constant 1.000000e+00 : f32
    %158 = vector.broadcast %cst_37 : f32 to vector<4x32xf32>
    %159 = arith.addf %158, %157 : vector<4x32xf32>
    %160 = arith.divf %158, %159 : vector<4x32xf32>
    %161 = arith.mulf %152, %127 : vector<4x32xf32>
    %162 = arith.mulf %146, %154 : vector<4x32xf32>
    %163 = arith.addf %161, %162 : vector<4x32xf32>
    %164 = math.tanh %163 : vector<4x32xf32>
    %165 = arith.mulf %160, %164 : vector<4x32xf32>
    %166 = vector.extract_strided_slice %165 {offsets = [0, 0], sizes = [2, 32], strides = [1, 1]} : vector<4x32xf32> to vector<2x32xf32>
    %c6 = arith.constant 6 : index
    %c0_38 = arith.constant 0 : index
    %167 = vector.load %arg13[%c6, %c0_38] : memref<16x64xf32, #tpu.memory_space<vmem>>, vector<2x32xf32>
    tpu.vector_store %arg13[%c6, %c0_38], %166 {strides = array<i32>} : memref<16x64xf32, #tpu.memory_space<vmem>>, vector<2x32xf32>,
    %168 = vector.extract_strided_slice %165 {offsets = [2, 0], sizes = [2, 32], strides = [1, 1]} : vector<4x32xf32> to vector<2x32xf32>
    %c8 = arith.constant 8 : index
    %c32_39 = arith.constant 32 : index
    %169 = vector.load %arg13[%c8, %c32_39] : memref<16x64xf32, #tpu.memory_space<vmem>>, vector<2x32xf32>
    tpu.vector_store %arg13[%c8, %c32_39], %168 {strides = array<i32>} : memref<16x64xf32, #tpu.memory_space<vmem>>, vector<2x32xf32>,
    %170 = vector.extract_strided_slice %12 {offsets = [8, 0], sizes = [2, 128], strides = [1, 1]} : vector<16x256xf32> to vector<2x128xf32>
    %171 = vector.extract_strided_slice %12 {offsets = [6, 128], sizes = [2, 128], strides = [1, 1]} : vector<16x256xf32> to vector<2x128xf32>
    %172 = tpu.concatenate %170, %171 in 0 : vector<2x128xf32>, vector<2x128xf32> -> vector<4x128xf32>
    %173 = tpu.concatenate %165, %165 in 1 : vector<4x32xf32>, vector<4x32xf32> -> vector<4x64xf32>
    %174 = arith.mulf %173, %22 : vector<4x64xf32>
    %cst_40 = arith.constant dense<0.000000e+00> : vector<4x128xf32>
    %175 = tpu.matmul %174, %23, %cst_40 {dimension_numbers = #tpu.dot_dimension_numbers<[1], [0], [0], [1], [0, 0, 1, 1], [], []>} : vector<4x64xf32>, vector<64x128xf32>, vector<4x128xf32> -> vector<4x128xf32>
    %176 = arith.addf %175, %172 : vector<4x128xf32>
    %177 = vector.extract_strided_slice %176 {offsets = [0, 0], sizes = [4, 32], strides = [1, 1]} : vector<4x128xf32> to vector<4x32xf32>
    %178 = arith.negf %177 : vector<4x32xf32>
    %179 = math.exp %178 : vector<4x32xf32>
    %cst_41 = arith.constant 1.000000e+00 : f32
    %180 = vector.broadcast %cst_41 : f32 to vector<4x32xf32>
    %181 = arith.addf %180, %179 : vector<4x32xf32>
    %182 = arith.divf %180, %181 : vector<4x32xf32>
    %183 = vector.extract_strided_slice %176 {offsets = [0, 32], sizes = [4, 32], strides = [1, 1]} : vector<4x128xf32> to vector<4x32xf32>
    %184 = arith.negf %183 : vector<4x32xf32>
    %185 = math.exp %184 : vector<4x32xf32>
    %cst_42 = arith.constant 1.000000e+00 : f32
    %186 = vector.broadcast %cst_42 : f32 to vector<4x32xf32>
    %187 = arith.addf %186, %185 : vector<4x32xf32>
    %188 = arith.divf %186, %187 : vector<4x32xf32>
    %189 = vector.extract_strided_slice %176 {offsets = [0, 64], sizes = [4, 32], strides = [1, 1]} : vector<4x128xf32> to vector<4x32xf32>
    %190 = math.tanh %189 : vector<4x32xf32>
    %191 = vector.extract_strided_slice %176 {offsets = [0, 96], sizes = [4, 32], strides = [1, 1]} : vector<4x128xf32> to vector<4x32xf32>
    %192 = arith.negf %191 : vector<4x32xf32>
    %193 = math.exp %192 : vector<4x32xf32>
    %cst_43 = arith.constant 1.000000e+00 : f32
    %194 = vector.broadcast %cst_43 : f32 to vector<4x32xf32>
    %195 = arith.addf %194, %193 : vector<4x32xf32>
    %196 = arith.divf %194, %195 : vector<4x32xf32>
    %197 = arith.mulf %188, %163 : vector<4x32xf32>
    %198 = arith.mulf %182, %190 : vector<4x32xf32>
    %199 = arith.addf %197, %198 : vector<4x32xf32>
    %200 = math.tanh %199 : vector<4x32xf32>
    %201 = arith.mulf %196, %200 : vector<4x32xf32>
    %202 = vector.extract_strided_slice %201 {offsets = [0, 0], sizes = [2, 32], strides = [1, 1]} : vector<4x32xf32> to vector<2x32xf32>
    %c8_44 = arith.constant 8 : index
    %c0_45 = arith.constant 0 : index
    %203 = vector.load %arg13[%c8_44, %c0_45] : memref<16x64xf32, #tpu.memory_space<vmem>>, vector<2x32xf32>
    tpu.vector_store %arg13[%c8_44, %c0_45], %202 {strides = array<i32>} : memref<16x64xf32, #tpu.memory_space<vmem>>, vector<2x32xf32>,
    %204 = vector.extract_strided_slice %201 {offsets = [2, 0], sizes = [2, 32], strides = [1, 1]} : vector<4x32xf32> to vector<2x32xf32>
    %c6_46 = arith.constant 6 : index
    %c32_47 = arith.constant 32 : index
    %205 = vector.load %arg13[%c6_46, %c32_47] : memref<16x64xf32, #tpu.memory_space<vmem>>, vector<2x32xf32>
    tpu.vector_store %arg13[%c6_46, %c32_47], %204 {strides = array<i32>} : memref<16x64xf32, #tpu.memory_space<vmem>>, vector<2x32xf32>,
    %206 = vector.extract_strided_slice %12 {offsets = [10, 0], sizes = [2, 128], strides = [1, 1]} : vector<16x256xf32> to vector<2x128xf32>
    %207 = vector.extract_strided_slice %12 {offsets = [4, 128], sizes = [2, 128], strides = [1, 1]} : vector<16x256xf32> to vector<2x128xf32>
    %208 = tpu.concatenate %206, %207 in 0 : vector<2x128xf32>, vector<2x128xf32> -> vector<4x128xf32>
    %209 = tpu.concatenate %201, %201 in 1 : vector<4x32xf32>, vector<4x32xf32> -> vector<4x64xf32>
    %210 = arith.mulf %209, %22 : vector<4x64xf32>
    %cst_48 = arith.constant dense<0.000000e+00> : vector<4x128xf32>
    %211 = tpu.matmul %210, %23, %cst_48 {dimension_numbers = #tpu.dot_dimension_numbers<[1], [0], [0], [1], [0, 0, 1, 1], [], []>} : vector<4x64xf32>, vector<64x128xf32>, vector<4x128xf32> -> vector<4x128xf32>
    %212 = arith.addf %211, %208 : vector<4x128xf32>
    %213 = vector.extract_strided_slice %212 {offsets = [0, 0], sizes = [4, 32], strides = [1, 1]} : vector<4x128xf32> to vector<4x32xf32>
    %214 = arith.negf %213 : vector<4x32xf32>
    %215 = math.exp %214 : vector<4x32xf32>
    %cst_49 = arith.constant 1.000000e+00 : f32
    %216 = vector.broadcast %cst_49 : f32 to vector<4x32xf32>
    %217 = arith.addf %216, %215 : vector<4x32xf32>
    %218 = arith.divf %216, %217 : vector<4x32xf32>
    %219 = vector.extract_strided_slice %212 {offsets = [0, 32], sizes = [4, 32], strides = [1, 1]} : vector<4x128xf32> to vector<4x32xf32>
    %220 = arith.negf %219 : vector<4x32xf32>
    %221 = math.exp %220 : vector<4x32xf32>
    %cst_50 = arith.constant 1.000000e+00 : f32
    %222 = vector.broadcast %cst_50 : f32 to vector<4x32xf32>
    %223 = arith.addf %222, %221 : vector<4x32xf32>
    %224 = arith.divf %222, %223 : vector<4x32xf32>
    %225 = vector.extract_strided_slice %212 {offsets = [0, 64], sizes = [4, 32], strides = [1, 1]} : vector<4x128xf32> to vector<4x32xf32>
    %226 = math.tanh %225 : vector<4x32xf32>
    %227 = vector.extract_strided_slice %212 {offsets = [0, 96], sizes = [4, 32], strides = [1, 1]} : vector<4x128xf32> to vector<4x32xf32>
    %228 = arith.negf %227 : vector<4x32xf32>
    %229 = math.exp %228 : vector<4x32xf32>
    %cst_51 = arith.constant 1.000000e+00 : f32
    %230 = vector.broadcast %cst_51 : f32 to vector<4x32xf32>
    %231 = arith.addf %230, %229 : vector<4x32xf32>
    %232 = arith.divf %230, %231 : vector<4x32xf32>
    %233 = arith.mulf %224, %199 : vector<4x32xf32>
    %234 = arith.mulf %218, %226 : vector<4x32xf32>
    %235 = arith.addf %233, %234 : vector<4x32xf32>
    %236 = math.tanh %235 : vector<4x32xf32>
    %237 = arith.mulf %232, %236 : vector<4x32xf32>
    %238 = vector.extract_strided_slice %237 {offsets = [0, 0], sizes = [2, 32], strides = [1, 1]} : vector<4x32xf32> to vector<2x32xf32>
    %c10_52 = arith.constant 10 : index
    %c0_53 = arith.constant 0 : index
    %239 = vector.load %arg13[%c10_52, %c0_53] : memref<16x64xf32, #tpu.memory_space<vmem>>, vector<2x32xf32>
    tpu.vector_store %arg13[%c10_52, %c0_53], %238 {strides = array<i32>} : memref<16x64xf32, #tpu.memory_space<vmem>>, vector<2x32xf32>,
    %240 = vector.extract_strided_slice %237 {offsets = [2, 0], sizes = [2, 32], strides = [1, 1]} : vector<4x32xf32> to vector<2x32xf32>
    %c4_54 = arith.constant 4 : index
    %c32_55 = arith.constant 32 : index
    %241 = vector.load %arg13[%c4_54, %c32_55] : memref<16x64xf32, #tpu.memory_space<vmem>>, vector<2x32xf32>
    tpu.vector_store %arg13[%c4_54, %c32_55], %240 {strides = array<i32>} : memref<16x64xf32, #tpu.memory_space<vmem>>, vector<2x32xf32>,
    %242 = vector.extract_strided_slice %12 {offsets = [12, 0], sizes = [2, 128], strides = [1, 1]} : vector<16x256xf32> to vector<2x128xf32>
    %243 = vector.extract_strided_slice %12 {offsets = [2, 128], sizes = [2, 128], strides = [1, 1]} : vector<16x256xf32> to vector<2x128xf32>
    %244 = tpu.concatenate %242, %243 in 0 : vector<2x128xf32>, vector<2x128xf32> -> vector<4x128xf32>
    %245 = tpu.concatenate %237, %237 in 1 : vector<4x32xf32>, vector<4x32xf32> -> vector<4x64xf32>
    %246 = arith.mulf %245, %22 : vector<4x64xf32>
    %cst_56 = arith.constant dense<0.000000e+00> : vector<4x128xf32>
    %247 = tpu.matmul %246, %23, %cst_56 {dimension_numbers = #tpu.dot_dimension_numbers<[1], [0], [0], [1], [0, 0, 1, 1], [], []>} : vector<4x64xf32>, vector<64x128xf32>, vector<4x128xf32> -> vector<4x128xf32>
    %248 = arith.addf %247, %244 : vector<4x128xf32>
    %249 = vector.extract_strided_slice %248 {offsets = [0, 0], sizes = [4, 32], strides = [1, 1]} : vector<4x128xf32> to vector<4x32xf32>
    %250 = arith.negf %249 : vector<4x32xf32>
    %251 = math.exp %250 : vector<4x32xf32>
    %cst_57 = arith.constant 1.000000e+00 : f32
    %252 = vector.broadcast %cst_57 : f32 to vector<4x32xf32>
    %253 = arith.addf %252, %251 : vector<4x32xf32>
    %254 = arith.divf %252, %253 : vector<4x32xf32>
    %255 = vector.extract_strided_slice %248 {offsets = [0, 32], sizes = [4, 32], strides = [1, 1]} : vector<4x128xf32> to vector<4x32xf32>
    %256 = arith.negf %255 : vector<4x32xf32>
    %257 = math.exp %256 : vector<4x32xf32>
    %cst_58 = arith.constant 1.000000e+00 : f32
    %258 = vector.broadcast %cst_58 : f32 to vector<4x32xf32>
    %259 = arith.addf %258, %257 : vector<4x32xf32>
    %260 = arith.divf %258, %259 : vector<4x32xf32>
    %261 = vector.extract_strided_slice %248 {offsets = [0, 64], sizes = [4, 32], strides = [1, 1]} : vector<4x128xf32> to vector<4x32xf32>
    %262 = math.tanh %261 : vector<4x32xf32>
    %263 = vector.extract_strided_slice %248 {offsets = [0, 96], sizes = [4, 32], strides = [1, 1]} : vector<4x128xf32> to vector<4x32xf32>
    %264 = arith.negf %263 : vector<4x32xf32>
    %265 = math.exp %264 : vector<4x32xf32>
    %cst_59 = arith.constant 1.000000e+00 : f32
    %266 = vector.broadcast %cst_59 : f32 to vector<4x32xf32>
    %267 = arith.addf %266, %265 : vector<4x32xf32>
    %268 = arith.divf %266, %267 : vector<4x32xf32>
    %269 = arith.mulf %260, %235 : vector<4x32xf32>
    %270 = arith.mulf %254, %262 : vector<4x32xf32>
    %271 = arith.addf %269, %270 : vector<4x32xf32>
    %272 = math.tanh %271 : vector<4x32xf32>
    %273 = arith.mulf %268, %272 : vector<4x32xf32>
    %274 = vector.extract_strided_slice %273 {offsets = [0, 0], sizes = [2, 32], strides = [1, 1]} : vector<4x32xf32> to vector<2x32xf32>
    %c12_60 = arith.constant 12 : index
    %c0_61 = arith.constant 0 : index
    %275 = vector.load %arg13[%c12_60, %c0_61] : memref<16x64xf32, #tpu.memory_space<vmem>>, vector<2x32xf32>
    tpu.vector_store %arg13[%c12_60, %c0_61], %274 {strides = array<i32>} : memref<16x64xf32, #tpu.memory_space<vmem>>, vector<2x32xf32>,
    %276 = vector.extract_strided_slice %273 {offsets = [2, 0], sizes = [2, 32], strides = [1, 1]} : vector<4x32xf32> to vector<2x32xf32>
    %c2_62 = arith.constant 2 : index
    %c32_63 = arith.constant 32 : index
    %277 = vector.load %arg13[%c2_62, %c32_63] : memref<16x64xf32, #tpu.memory_space<vmem>>, vector<2x32xf32>
    tpu.vector_store %arg13[%c2_62, %c32_63], %276 {strides = array<i32>} : memref<16x64xf32, #tpu.memory_space<vmem>>, vector<2x32xf32>,
    %278 = vector.extract_strided_slice %12 {offsets = [14, 0], sizes = [2, 128], strides = [1, 1]} : vector<16x256xf32> to vector<2x128xf32>
    %279 = vector.extract_strided_slice %12 {offsets = [0, 128], sizes = [2, 128], strides = [1, 1]} : vector<16x256xf32> to vector<2x128xf32>
    %280 = tpu.concatenate %278, %279 in 0 : vector<2x128xf32>, vector<2x128xf32> -> vector<4x128xf32>
    %281 = tpu.concatenate %273, %273 in 1 : vector<4x32xf32>, vector<4x32xf32> -> vector<4x64xf32>
    %282 = arith.mulf %281, %22 : vector<4x64xf32>
    %cst_64 = arith.constant dense<0.000000e+00> : vector<4x128xf32>
    %283 = tpu.matmul %282, %23, %cst_64 {dimension_numbers = #tpu.dot_dimension_numbers<[1], [0], [0], [1], [0, 0, 1, 1], [], []>} : vector<4x64xf32>, vector<64x128xf32>, vector<4x128xf32> -> vector<4x128xf32>
    %284 = arith.addf %283, %280 : vector<4x128xf32>
    %285 = vector.extract_strided_slice %284 {offsets = [0, 0], sizes = [4, 32], strides = [1, 1]} : vector<4x128xf32> to vector<4x32xf32>
    %286 = arith.negf %285 : vector<4x32xf32>
    %287 = math.exp %286 : vector<4x32xf32>
    %cst_65 = arith.constant 1.000000e+00 : f32
    %288 = vector.broadcast %cst_65 : f32 to vector<4x32xf32>
    %289 = arith.addf %288, %287 : vector<4x32xf32>
    %290 = arith.divf %288, %289 : vector<4x32xf32>
    %291 = vector.extract_strided_slice %284 {offsets = [0, 32], sizes = [4, 32], strides = [1, 1]} : vector<4x128xf32> to vector<4x32xf32>
    %292 = arith.negf %291 : vector<4x32xf32>
    %293 = math.exp %292 : vector<4x32xf32>
    %cst_66 = arith.constant 1.000000e+00 : f32
    %294 = vector.broadcast %cst_66 : f32 to vector<4x32xf32>
    %295 = arith.addf %294, %293 : vector<4x32xf32>
    %296 = arith.divf %294, %295 : vector<4x32xf32>
    %297 = vector.extract_strided_slice %284 {offsets = [0, 64], sizes = [4, 32], strides = [1, 1]} : vector<4x128xf32> to vector<4x32xf32>
    %298 = math.tanh %297 : vector<4x32xf32>
    %299 = vector.extract_strided_slice %284 {offsets = [0, 96], sizes = [4, 32], strides = [1, 1]} : vector<4x128xf32> to vector<4x32xf32>
    %300 = arith.negf %299 : vector<4x32xf32>
    %301 = math.exp %300 : vector<4x32xf32>
    %cst_67 = arith.constant 1.000000e+00 : f32
    %302 = vector.broadcast %cst_67 : f32 to vector<4x32xf32>
    %303 = arith.addf %302, %301 : vector<4x32xf32>
    %304 = arith.divf %302, %303 : vector<4x32xf32>
    %305 = arith.mulf %296, %271 : vector<4x32xf32>
    %306 = arith.mulf %290, %298 : vector<4x32xf32>
    %307 = arith.addf %305, %306 : vector<4x32xf32>
    %308 = math.tanh %307 : vector<4x32xf32>
    %309 = arith.mulf %304, %308 : vector<4x32xf32>
    %310 = vector.extract_strided_slice %309 {offsets = [0, 0], sizes = [2, 32], strides = [1, 1]} : vector<4x32xf32> to vector<2x32xf32>
    %c14_68 = arith.constant 14 : index
    %c0_69 = arith.constant 0 : index
    %311 = vector.load %arg13[%c14_68, %c0_69] : memref<16x64xf32, #tpu.memory_space<vmem>>, vector<2x32xf32>
    tpu.vector_store %arg13[%c14_68, %c0_69], %310 {strides = array<i32>} : memref<16x64xf32, #tpu.memory_space<vmem>>, vector<2x32xf32>,
    %312 = vector.extract_strided_slice %309 {offsets = [2, 0], sizes = [2, 32], strides = [1, 1]} : vector<4x32xf32> to vector<2x32xf32>
    %c0_70 = arith.constant 0 : index
    %c32_71 = arith.constant 32 : index
    %313 = vector.load %arg13[%c0_70, %c32_71] : memref<16x64xf32, #tpu.memory_space<vmem>>, vector<2x32xf32>
    tpu.vector_store %arg13[%c0_70, %c32_71], %312 {strides = array<i32>} : memref<16x64xf32, #tpu.memory_space<vmem>>, vector<2x32xf32>,
    %c0_72 = arith.constant 0 : index
    %c0_73 = arith.constant 0 : index
    %314 = vector.load %arg13[%c0_72, %c0_73] : memref<16x64xf32, #tpu.memory_space<vmem>>, vector<16x64xf32>
    %c0_74 = arith.constant 0 : index
    %c0_75 = arith.constant 0 : index
    %315 = vector.load %arg7[%c0_74, %c0_75] : memref<64x256xf32, #tpu.memory_space<vmem>>, vector<64x256xf32>
    %cst_76 = arith.constant dense<0.000000e+00> : vector<16x256xf32>
    %316 = tpu.matmul %314, %315, %cst_76 {dimension_numbers = #tpu.dot_dimension_numbers<[1], [0], [0], [1], [0, 0, 1, 1], [], []>} : vector<16x64xf32>, vector<64x256xf32>, vector<16x256xf32> -> vector<16x256xf32>
    %c0_77 = arith.constant 0 : index
    %c0_78 = arith.constant 0 : index
    %317 = vector.load %arg8[%c0_77, %c0_78] : memref<1x256xf32, #tpu.memory_space<vmem>>, vector<1x256xf32>
    %318 = vector.broadcast %317 : vector<1x256xf32> to vector<16x256xf32>
    %319 = arith.addf %316, %318 : vector<16x256xf32>
    %c0_79 = arith.constant 0 : index
    %c0_80 = arith.constant 0 : index
    %320 = vector.load %arg9[%c0_79, %c0_80] : memref<64x128xf32, #tpu.memory_space<vmem>>, vector<64x128xf32>
    %cst_81 = arith.constant 0.000000e+00 : f32
    %321 = vector.broadcast %cst_81 : f32 to vector<4x32xf32>
    %cst_82 = arith.constant 0.000000e+00 : f32
    %322 = vector.broadcast %cst_82 : f32 to vector<4x32xf32>
    %323 = vector.extract_strided_slice %319 {offsets = [0, 0], sizes = [2, 128], strides = [1, 1]} : vector<16x256xf32> to vector<2x128xf32>
    %324 = vector.extract_strided_slice %319 {offsets = [14, 128], sizes = [2, 128], strides = [1, 1]} : vector<16x256xf32> to vector<2x128xf32>
    %325 = tpu.concatenate %323, %324 in 0 : vector<2x128xf32>, vector<2x128xf32> -> vector<4x128xf32>
    %326 = tpu.concatenate %321, %321 in 1 : vector<4x32xf32>, vector<4x32xf32> -> vector<4x64xf32>
    %327 = arith.mulf %326, %22 : vector<4x64xf32>
    %cst_83 = arith.constant dense<0.000000e+00> : vector<4x128xf32>
    %328 = tpu.matmul %327, %320, %cst_83 {dimension_numbers = #tpu.dot_dimension_numbers<[1], [0], [0], [1], [0, 0, 1, 1], [], []>} : vector<4x64xf32>, vector<64x128xf32>, vector<4x128xf32> -> vector<4x128xf32>
    %329 = arith.addf %328, %325 : vector<4x128xf32>
    %330 = vector.extract_strided_slice %329 {offsets = [0, 0], sizes = [4, 32], strides = [1, 1]} : vector<4x128xf32> to vector<4x32xf32>
    %331 = arith.negf %330 : vector<4x32xf32>
    %332 = math.exp %331 : vector<4x32xf32>
    %cst_84 = arith.constant 1.000000e+00 : f32
    %333 = vector.broadcast %cst_84 : f32 to vector<4x32xf32>
    %334 = arith.addf %333, %332 : vector<4x32xf32>
    %335 = arith.divf %333, %334 : vector<4x32xf32>
    %336 = vector.extract_strided_slice %329 {offsets = [0, 32], sizes = [4, 32], strides = [1, 1]} : vector<4x128xf32> to vector<4x32xf32>
    %337 = arith.negf %336 : vector<4x32xf32>
    %338 = math.exp %337 : vector<4x32xf32>
    %cst_85 = arith.constant 1.000000e+00 : f32
    %339 = vector.broadcast %cst_85 : f32 to vector<4x32xf32>
    %340 = arith.addf %339, %338 : vector<4x32xf32>
    %341 = arith.divf %339, %340 : vector<4x32xf32>
    %342 = vector.extract_strided_slice %329 {offsets = [0, 64], sizes = [4, 32], strides = [1, 1]} : vector<4x128xf32> to vector<4x32xf32>
    %343 = math.tanh %342 : vector<4x32xf32>
    %344 = vector.extract_strided_slice %329 {offsets = [0, 96], sizes = [4, 32], strides = [1, 1]} : vector<4x128xf32> to vector<4x32xf32>
    %345 = arith.negf %344 : vector<4x32xf32>
    %346 = math.exp %345 : vector<4x32xf32>
    %cst_86 = arith.constant 1.000000e+00 : f32
    %347 = vector.broadcast %cst_86 : f32 to vector<4x32xf32>
    %348 = arith.addf %347, %346 : vector<4x32xf32>
    %349 = arith.divf %347, %348 : vector<4x32xf32>
    %350 = arith.mulf %341, %322 : vector<4x32xf32>
    %351 = arith.mulf %335, %343 : vector<4x32xf32>
    %352 = arith.addf %350, %351 : vector<4x32xf32>
    %353 = math.tanh %352 : vector<4x32xf32>
    %354 = arith.mulf %349, %353 : vector<4x32xf32>
    %355 = vector.extract_strided_slice %354 {offsets = [0, 0], sizes = [2, 32], strides = [1, 1]} : vector<4x32xf32> to vector<2x32xf32>
    %c0_87 = arith.constant 0 : index
    %c0_88 = arith.constant 0 : index
    %356 = vector.load %arg14[%c0_87, %c0_88] : memref<16x64xf32, #tpu.memory_space<vmem>>, vector<2x32xf32>
    tpu.vector_store %arg14[%c0_87, %c0_88], %355 {strides = array<i32>} : memref<16x64xf32, #tpu.memory_space<vmem>>, vector<2x32xf32>,
    %357 = vector.extract_strided_slice %354 {offsets = [2, 0], sizes = [2, 32], strides = [1, 1]} : vector<4x32xf32> to vector<2x32xf32>
    %c14_89 = arith.constant 14 : index
    %c32_90 = arith.constant 32 : index
    %358 = vector.load %arg14[%c14_89, %c32_90] : memref<16x64xf32, #tpu.memory_space<vmem>>, vector<2x32xf32>
    tpu.vector_store %arg14[%c14_89, %c32_90], %357 {strides = array<i32>} : memref<16x64xf32, #tpu.memory_space<vmem>>, vector<2x32xf32>,
    %359 = vector.extract_strided_slice %319 {offsets = [2, 0], sizes = [2, 128], strides = [1, 1]} : vector<16x256xf32> to vector<2x128xf32>
    %360 = vector.extract_strided_slice %319 {offsets = [12, 128], sizes = [2, 128], strides = [1, 1]} : vector<16x256xf32> to vector<2x128xf32>
    %361 = tpu.concatenate %359, %360 in 0 : vector<2x128xf32>, vector<2x128xf32> -> vector<4x128xf32>
    %362 = tpu.concatenate %354, %354 in 1 : vector<4x32xf32>, vector<4x32xf32> -> vector<4x64xf32>
    %363 = arith.mulf %362, %22 : vector<4x64xf32>
    %cst_91 = arith.constant dense<0.000000e+00> : vector<4x128xf32>
    %364 = tpu.matmul %363, %320, %cst_91 {dimension_numbers = #tpu.dot_dimension_numbers<[1], [0], [0], [1], [0, 0, 1, 1], [], []>} : vector<4x64xf32>, vector<64x128xf32>, vector<4x128xf32> -> vector<4x128xf32>
    %365 = arith.addf %364, %361 : vector<4x128xf32>
    %366 = vector.extract_strided_slice %365 {offsets = [0, 0], sizes = [4, 32], strides = [1, 1]} : vector<4x128xf32> to vector<4x32xf32>
    %367 = arith.negf %366 : vector<4x32xf32>
    %368 = math.exp %367 : vector<4x32xf32>
    %cst_92 = arith.constant 1.000000e+00 : f32
    %369 = vector.broadcast %cst_92 : f32 to vector<4x32xf32>
    %370 = arith.addf %369, %368 : vector<4x32xf32>
    %371 = arith.divf %369, %370 : vector<4x32xf32>
    %372 = vector.extract_strided_slice %365 {offsets = [0, 32], sizes = [4, 32], strides = [1, 1]} : vector<4x128xf32> to vector<4x32xf32>
    %373 = arith.negf %372 : vector<4x32xf32>
    %374 = math.exp %373 : vector<4x32xf32>
    %cst_93 = arith.constant 1.000000e+00 : f32
    %375 = vector.broadcast %cst_93 : f32 to vector<4x32xf32>
    %376 = arith.addf %375, %374 : vector<4x32xf32>
    %377 = arith.divf %375, %376 : vector<4x32xf32>
    %378 = vector.extract_strided_slice %365 {offsets = [0, 64], sizes = [4, 32], strides = [1, 1]} : vector<4x128xf32> to vector<4x32xf32>
    %379 = math.tanh %378 : vector<4x32xf32>
    %380 = vector.extract_strided_slice %365 {offsets = [0, 96], sizes = [4, 32], strides = [1, 1]} : vector<4x128xf32> to vector<4x32xf32>
    %381 = arith.negf %380 : vector<4x32xf32>
    %382 = math.exp %381 : vector<4x32xf32>
    %cst_94 = arith.constant 1.000000e+00 : f32
    %383 = vector.broadcast %cst_94 : f32 to vector<4x32xf32>
    %384 = arith.addf %383, %382 : vector<4x32xf32>
    %385 = arith.divf %383, %384 : vector<4x32xf32>
    %386 = arith.mulf %377, %352 : vector<4x32xf32>
    %387 = arith.mulf %371, %379 : vector<4x32xf32>
    %388 = arith.addf %386, %387 : vector<4x32xf32>
    %389 = math.tanh %388 : vector<4x32xf32>
    %390 = arith.mulf %385, %389 : vector<4x32xf32>
    %391 = vector.extract_strided_slice %390 {offsets = [0, 0], sizes = [2, 32], strides = [1, 1]} : vector<4x32xf32> to vector<2x32xf32>
    %c2_95 = arith.constant 2 : index
    %c0_96 = arith.constant 0 : index
    %392 = vector.load %arg14[%c2_95, %c0_96] : memref<16x64xf32, #tpu.memory_space<vmem>>, vector<2x32xf32>
    tpu.vector_store %arg14[%c2_95, %c0_96], %391 {strides = array<i32>} : memref<16x64xf32, #tpu.memory_space<vmem>>, vector<2x32xf32>,
    %393 = vector.extract_strided_slice %390 {offsets = [2, 0], sizes = [2, 32], strides = [1, 1]} : vector<4x32xf32> to vector<2x32xf32>
    %c12_97 = arith.constant 12 : index
    %c32_98 = arith.constant 32 : index
    %394 = vector.load %arg14[%c12_97, %c32_98] : memref<16x64xf32, #tpu.memory_space<vmem>>, vector<2x32xf32>
    tpu.vector_store %arg14[%c12_97, %c32_98], %393 {strides = array<i32>} : memref<16x64xf32, #tpu.memory_space<vmem>>, vector<2x32xf32>,
    %395 = vector.extract_strided_slice %319 {offsets = [4, 0], sizes = [2, 128], strides = [1, 1]} : vector<16x256xf32> to vector<2x128xf32>
    %396 = vector.extract_strided_slice %319 {offsets = [10, 128], sizes = [2, 128], strides = [1, 1]} : vector<16x256xf32> to vector<2x128xf32>
    %397 = tpu.concatenate %395, %396 in 0 : vector<2x128xf32>, vector<2x128xf32> -> vector<4x128xf32>
    %398 = tpu.concatenate %390, %390 in 1 : vector<4x32xf32>, vector<4x32xf32> -> vector<4x64xf32>
    %399 = arith.mulf %398, %22 : vector<4x64xf32>
    %cst_99 = arith.constant dense<0.000000e+00> : vector<4x128xf32>
    %400 = tpu.matmul %399, %320, %cst_99 {dimension_numbers = #tpu.dot_dimension_numbers<[1], [0], [0], [1], [0, 0, 1, 1], [], []>} : vector<4x64xf32>, vector<64x128xf32>, vector<4x128xf32> -> vector<4x128xf32>
    %401 = arith.addf %400, %397 : vector<4x128xf32>
    %402 = vector.extract_strided_slice %401 {offsets = [0, 0], sizes = [4, 32], strides = [1, 1]} : vector<4x128xf32> to vector<4x32xf32>
    %403 = arith.negf %402 : vector<4x32xf32>
    %404 = math.exp %403 : vector<4x32xf32>
    %cst_100 = arith.constant 1.000000e+00 : f32
    %405 = vector.broadcast %cst_100 : f32 to vector<4x32xf32>
    %406 = arith.addf %405, %404 : vector<4x32xf32>
    %407 = arith.divf %405, %406 : vector<4x32xf32>
    %408 = vector.extract_strided_slice %401 {offsets = [0, 32], sizes = [4, 32], strides = [1, 1]} : vector<4x128xf32> to vector<4x32xf32>
    %409 = arith.negf %408 : vector<4x32xf32>
    %410 = math.exp %409 : vector<4x32xf32>
    %cst_101 = arith.constant 1.000000e+00 : f32
    %411 = vector.broadcast %cst_101 : f32 to vector<4x32xf32>
    %412 = arith.addf %411, %410 : vector<4x32xf32>
    %413 = arith.divf %411, %412 : vector<4x32xf32>
    %414 = vector.extract_strided_slice %401 {offsets = [0, 64], sizes = [4, 32], strides = [1, 1]} : vector<4x128xf32> to vector<4x32xf32>
    %415 = math.tanh %414 : vector<4x32xf32>
    %416 = vector.extract_strided_slice %401 {offsets = [0, 96], sizes = [4, 32], strides = [1, 1]} : vector<4x128xf32> to vector<4x32xf32>
    %417 = arith.negf %416 : vector<4x32xf32>
    %418 = math.exp %417 : vector<4x32xf32>
    %cst_102 = arith.constant 1.000000e+00 : f32
    %419 = vector.broadcast %cst_102 : f32 to vector<4x32xf32>
    %420 = arith.addf %419, %418 : vector<4x32xf32>
    %421 = arith.divf %419, %420 : vector<4x32xf32>
    %422 = arith.mulf %413, %388 : vector<4x32xf32>
    %423 = arith.mulf %407, %415 : vector<4x32xf32>
    %424 = arith.addf %422, %423 : vector<4x32xf32>
    %425 = math.tanh %424 : vector<4x32xf32>
    %426 = arith.mulf %421, %425 : vector<4x32xf32>
    %427 = vector.extract_strided_slice %426 {offsets = [0, 0], sizes = [2, 32], strides = [1, 1]} : vector<4x32xf32> to vector<2x32xf32>
    %c4_103 = arith.constant 4 : index
    %c0_104 = arith.constant 0 : index
    %428 = vector.load %arg14[%c4_103, %c0_104] : memref<16x64xf32, #tpu.memory_space<vmem>>, vector<2x32xf32>
    tpu.vector_store %arg14[%c4_103, %c0_104], %427 {strides = array<i32>} : memref<16x64xf32, #tpu.memory_space<vmem>>, vector<2x32xf32>,
    %429 = vector.extract_strided_slice %426 {offsets = [2, 0], sizes = [2, 32], strides = [1, 1]} : vector<4x32xf32> to vector<2x32xf32>
    %c10_105 = arith.constant 10 : index
    %c32_106 = arith.constant 32 : index
    %430 = vector.load %arg14[%c10_105, %c32_106] : memref<16x64xf32, #tpu.memory_space<vmem>>, vector<2x32xf32>
    tpu.vector_store %arg14[%c10_105, %c32_106], %429 {strides = array<i32>} : memref<16x64xf32, #tpu.memory_space<vmem>>, vector<2x32xf32>,
    %431 = vector.extract_strided_slice %319 {offsets = [6, 0], sizes = [2, 128], strides = [1, 1]} : vector<16x256xf32> to vector<2x128xf32>
    %432 = vector.extract_strided_slice %319 {offsets = [8, 128], sizes = [2, 128], strides = [1, 1]} : vector<16x256xf32> to vector<2x128xf32>
    %433 = tpu.concatenate %431, %432 in 0 : vector<2x128xf32>, vector<2x128xf32> -> vector<4x128xf32>
    %434 = tpu.concatenate %426, %426 in 1 : vector<4x32xf32>, vector<4x32xf32> -> vector<4x64xf32>
    %435 = arith.mulf %434, %22 : vector<4x64xf32>
    %cst_107 = arith.constant dense<0.000000e+00> : vector<4x128xf32>
    %436 = tpu.matmul %435, %320, %cst_107 {dimension_numbers = #tpu.dot_dimension_numbers<[1], [0], [0], [1], [0, 0, 1, 1], [], []>} : vector<4x64xf32>, vector<64x128xf32>, vector<4x128xf32> -> vector<4x128xf32>
    %437 = arith.addf %436, %433 : vector<4x128xf32>
    %438 = vector.extract_strided_slice %437 {offsets = [0, 0], sizes = [4, 32], strides = [1, 1]} : vector<4x128xf32> to vector<4x32xf32>
    %439 = arith.negf %438 : vector<4x32xf32>
    %440 = math.exp %439 : vector<4x32xf32>
    %cst_108 = arith.constant 1.000000e+00 : f32
    %441 = vector.broadcast %cst_108 : f32 to vector<4x32xf32>
    %442 = arith.addf %441, %440 : vector<4x32xf32>
    %443 = arith.divf %441, %442 : vector<4x32xf32>
    %444 = vector.extract_strided_slice %437 {offsets = [0, 32], sizes = [4, 32], strides = [1, 1]} : vector<4x128xf32> to vector<4x32xf32>
    %445 = arith.negf %444 : vector<4x32xf32>
    %446 = math.exp %445 : vector<4x32xf32>
    %cst_109 = arith.constant 1.000000e+00 : f32
    %447 = vector.broadcast %cst_109 : f32 to vector<4x32xf32>
    %448 = arith.addf %447, %446 : vector<4x32xf32>
    %449 = arith.divf %447, %448 : vector<4x32xf32>
    %450 = vector.extract_strided_slice %437 {offsets = [0, 64], sizes = [4, 32], strides = [1, 1]} : vector<4x128xf32> to vector<4x32xf32>
    %451 = math.tanh %450 : vector<4x32xf32>
    %452 = vector.extract_strided_slice %437 {offsets = [0, 96], sizes = [4, 32], strides = [1, 1]} : vector<4x128xf32> to vector<4x32xf32>
    %453 = arith.negf %452 : vector<4x32xf32>
    %454 = math.exp %453 : vector<4x32xf32>
    %cst_110 = arith.constant 1.000000e+00 : f32
    %455 = vector.broadcast %cst_110 : f32 to vector<4x32xf32>
    %456 = arith.addf %455, %454 : vector<4x32xf32>
    %457 = arith.divf %455, %456 : vector<4x32xf32>
    %458 = arith.mulf %449, %424 : vector<4x32xf32>
    %459 = arith.mulf %443, %451 : vector<4x32xf32>
    %460 = arith.addf %458, %459 : vector<4x32xf32>
    %461 = math.tanh %460 : vector<4x32xf32>
    %462 = arith.mulf %457, %461 : vector<4x32xf32>
    %463 = vector.extract_strided_slice %462 {offsets = [0, 0], sizes = [2, 32], strides = [1, 1]} : vector<4x32xf32> to vector<2x32xf32>
    %c6_111 = arith.constant 6 : index
    %c0_112 = arith.constant 0 : index
    %464 = vector.load %arg14[%c6_111, %c0_112] : memref<16x64xf32, #tpu.memory_space<vmem>>, vector<2x32xf32>
    tpu.vector_store %arg14[%c6_111, %c0_112], %463 {strides = array<i32>} : memref<16x64xf32, #tpu.memory_space<vmem>>, vector<2x32xf32>,
    %465 = vector.extract_strided_slice %462 {offsets = [2, 0], sizes = [2, 32], strides = [1, 1]} : vector<4x32xf32> to vector<2x32xf32>
    %c8_113 = arith.constant 8 : index
    %c32_114 = arith.constant 32 : index
    %466 = vector.load %arg14[%c8_113, %c32_114] : memref<16x64xf32, #tpu.memory_space<vmem>>, vector<2x32xf32>
    tpu.vector_store %arg14[%c8_113, %c32_114], %465 {strides = array<i32>} : memref<16x64xf32, #tpu.memory_space<vmem>>, vector<2x32xf32>,
    %467 = vector.extract_strided_slice %319 {offsets = [8, 0], sizes = [2, 128], strides = [1, 1]} : vector<16x256xf32> to vector<2x128xf32>
    %468 = vector.extract_strided_slice %319 {offsets = [6, 128], sizes = [2, 128], strides = [1, 1]} : vector<16x256xf32> to vector<2x128xf32>
    %469 = tpu.concatenate %467, %468 in 0 : vector<2x128xf32>, vector<2x128xf32> -> vector<4x128xf32>
    %470 = tpu.concatenate %462, %462 in 1 : vector<4x32xf32>, vector<4x32xf32> -> vector<4x64xf32>
    %471 = arith.mulf %470, %22 : vector<4x64xf32>
    %cst_115 = arith.constant dense<0.000000e+00> : vector<4x128xf32>
    %472 = tpu.matmul %471, %320, %cst_115 {dimension_numbers = #tpu.dot_dimension_numbers<[1], [0], [0], [1], [0, 0, 1, 1], [], []>} : vector<4x64xf32>, vector<64x128xf32>, vector<4x128xf32> -> vector<4x128xf32>
    %473 = arith.addf %472, %469 : vector<4x128xf32>
    %474 = vector.extract_strided_slice %473 {offsets = [0, 0], sizes = [4, 32], strides = [1, 1]} : vector<4x128xf32> to vector<4x32xf32>
    %475 = arith.negf %474 : vector<4x32xf32>
    %476 = math.exp %475 : vector<4x32xf32>
    %cst_116 = arith.constant 1.000000e+00 : f32
    %477 = vector.broadcast %cst_116 : f32 to vector<4x32xf32>
    %478 = arith.addf %477, %476 : vector<4x32xf32>
    %479 = arith.divf %477, %478 : vector<4x32xf32>
    %480 = vector.extract_strided_slice %473 {offsets = [0, 32], sizes = [4, 32], strides = [1, 1]} : vector<4x128xf32> to vector<4x32xf32>
    %481 = arith.negf %480 : vector<4x32xf32>
    %482 = math.exp %481 : vector<4x32xf32>
    %cst_117 = arith.constant 1.000000e+00 : f32
    %483 = vector.broadcast %cst_117 : f32 to vector<4x32xf32>
    %484 = arith.addf %483, %482 : vector<4x32xf32>
    %485 = arith.divf %483, %484 : vector<4x32xf32>
    %486 = vector.extract_strided_slice %473 {offsets = [0, 64], sizes = [4, 32], strides = [1, 1]} : vector<4x128xf32> to vector<4x32xf32>
    %487 = math.tanh %486 : vector<4x32xf32>
    %488 = vector.extract_strided_slice %473 {offsets = [0, 96], sizes = [4, 32], strides = [1, 1]} : vector<4x128xf32> to vector<4x32xf32>
    %489 = arith.negf %488 : vector<4x32xf32>
    %490 = math.exp %489 : vector<4x32xf32>
    %cst_118 = arith.constant 1.000000e+00 : f32
    %491 = vector.broadcast %cst_118 : f32 to vector<4x32xf32>
    %492 = arith.addf %491, %490 : vector<4x32xf32>
    %493 = arith.divf %491, %492 : vector<4x32xf32>
    %494 = arith.mulf %485, %460 : vector<4x32xf32>
    %495 = arith.mulf %479, %487 : vector<4x32xf32>
    %496 = arith.addf %494, %495 : vector<4x32xf32>
    %497 = math.tanh %496 : vector<4x32xf32>
    %498 = arith.mulf %493, %497 : vector<4x32xf32>
    %499 = vector.extract_strided_slice %498 {offsets = [0, 0], sizes = [2, 32], strides = [1, 1]} : vector<4x32xf32> to vector<2x32xf32>
    %c8_119 = arith.constant 8 : index
    %c0_120 = arith.constant 0 : index
    %500 = vector.load %arg14[%c8_119, %c0_120] : memref<16x64xf32, #tpu.memory_space<vmem>>, vector<2x32xf32>
    tpu.vector_store %arg14[%c8_119, %c0_120], %499 {strides = array<i32>} : memref<16x64xf32, #tpu.memory_space<vmem>>, vector<2x32xf32>,
    %501 = vector.extract_strided_slice %498 {offsets = [2, 0], sizes = [2, 32], strides = [1, 1]} : vector<4x32xf32> to vector<2x32xf32>
    %c6_121 = arith.constant 6 : index
    %c32_122 = arith.constant 32 : index
    %502 = vector.load %arg14[%c6_121, %c32_122] : memref<16x64xf32, #tpu.memory_space<vmem>>, vector<2x32xf32>
    tpu.vector_store %arg14[%c6_121, %c32_122], %501 {strides = array<i32>} : memref<16x64xf32, #tpu.memory_space<vmem>>, vector<2x32xf32>,
    %503 = vector.extract_strided_slice %319 {offsets = [10, 0], sizes = [2, 128], strides = [1, 1]} : vector<16x256xf32> to vector<2x128xf32>
    %504 = vector.extract_strided_slice %319 {offsets = [4, 128], sizes = [2, 128], strides = [1, 1]} : vector<16x256xf32> to vector<2x128xf32>
    %505 = tpu.concatenate %503, %504 in 0 : vector<2x128xf32>, vector<2x128xf32> -> vector<4x128xf32>
    %506 = tpu.concatenate %498, %498 in 1 : vector<4x32xf32>, vector<4x32xf32> -> vector<4x64xf32>
    %507 = arith.mulf %506, %22 : vector<4x64xf32>
    %cst_123 = arith.constant dense<0.000000e+00> : vector<4x128xf32>
    %508 = tpu.matmul %507, %320, %cst_123 {dimension_numbers = #tpu.dot_dimension_numbers<[1], [0], [0], [1], [0, 0, 1, 1], [], []>} : vector<4x64xf32>, vector<64x128xf32>, vector<4x128xf32> -> vector<4x128xf32>
    %509 = arith.addf %508, %505 : vector<4x128xf32>
    %510 = vector.extract_strided_slice %509 {offsets = [0, 0], sizes = [4, 32], strides = [1, 1]} : vector<4x128xf32> to vector<4x32xf32>
    %511 = arith.negf %510 : vector<4x32xf32>
    %512 = math.exp %511 : vector<4x32xf32>
    %cst_124 = arith.constant 1.000000e+00 : f32
    %513 = vector.broadcast %cst_124 : f32 to vector<4x32xf32>
    %514 = arith.addf %513, %512 : vector<4x32xf32>
    %515 = arith.divf %513, %514 : vector<4x32xf32>
    %516 = vector.extract_strided_slice %509 {offsets = [0, 32], sizes = [4, 32], strides = [1, 1]} : vector<4x128xf32> to vector<4x32xf32>
    %517 = arith.negf %516 : vector<4x32xf32>
    %518 = math.exp %517 : vector<4x32xf32>
    %cst_125 = arith.constant 1.000000e+00 : f32
    %519 = vector.broadcast %cst_125 : f32 to vector<4x32xf32>
    %520 = arith.addf %519, %518 : vector<4x32xf32>
    %521 = arith.divf %519, %520 : vector<4x32xf32>
    %522 = vector.extract_strided_slice %509 {offsets = [0, 64], sizes = [4, 32], strides = [1, 1]} : vector<4x128xf32> to vector<4x32xf32>
    %523 = math.tanh %522 : vector<4x32xf32>
    %524 = vector.extract_strided_slice %509 {offsets = [0, 96], sizes = [4, 32], strides = [1, 1]} : vector<4x128xf32> to vector<4x32xf32>
    %525 = arith.negf %524 : vector<4x32xf32>
    %526 = math.exp %525 : vector<4x32xf32>
    %cst_126 = arith.constant 1.000000e+00 : f32
    %527 = vector.broadcast %cst_126 : f32 to vector<4x32xf32>
    %528 = arith.addf %527, %526 : vector<4x32xf32>
    %529 = arith.divf %527, %528 : vector<4x32xf32>
    %530 = arith.mulf %521, %496 : vector<4x32xf32>
    %531 = arith.mulf %515, %523 : vector<4x32xf32>
    %532 = arith.addf %530, %531 : vector<4x32xf32>
    %533 = math.tanh %532 : vector<4x32xf32>
    %534 = arith.mulf %529, %533 : vector<4x32xf32>
    %535 = vector.extract_strided_slice %534 {offsets = [0, 0], sizes = [2, 32], strides = [1, 1]} : vector<4x32xf32> to vector<2x32xf32>
    %c10_127 = arith.constant 10 : index
    %c0_128 = arith.constant 0 : index
    %536 = vector.load %arg14[%c10_127, %c0_128] : memref<16x64xf32, #tpu.memory_space<vmem>>, vector<2x32xf32>
    tpu.vector_store %arg14[%c10_127, %c0_128], %535 {strides = array<i32>} : memref<16x64xf32, #tpu.memory_space<vmem>>, vector<2x32xf32>,
    %537 = vector.extract_strided_slice %534 {offsets = [2, 0], sizes = [2, 32], strides = [1, 1]} : vector<4x32xf32> to vector<2x32xf32>
    %c4_129 = arith.constant 4 : index
    %c32_130 = arith.constant 32 : index
    %538 = vector.load %arg14[%c4_129, %c32_130] : memref<16x64xf32, #tpu.memory_space<vmem>>, vector<2x32xf32>
    tpu.vector_store %arg14[%c4_129, %c32_130], %537 {strides = array<i32>} : memref<16x64xf32, #tpu.memory_space<vmem>>, vector<2x32xf32>,
    %539 = vector.extract_strided_slice %319 {offsets = [12, 0], sizes = [2, 128], strides = [1, 1]} : vector<16x256xf32> to vector<2x128xf32>
    %540 = vector.extract_strided_slice %319 {offsets = [2, 128], sizes = [2, 128], strides = [1, 1]} : vector<16x256xf32> to vector<2x128xf32>
    %541 = tpu.concatenate %539, %540 in 0 : vector<2x128xf32>, vector<2x128xf32> -> vector<4x128xf32>
    %542 = tpu.concatenate %534, %534 in 1 : vector<4x32xf32>, vector<4x32xf32> -> vector<4x64xf32>
    %543 = arith.mulf %542, %22 : vector<4x64xf32>
    %cst_131 = arith.constant dense<0.000000e+00> : vector<4x128xf32>
    %544 = tpu.matmul %543, %320, %cst_131 {dimension_numbers = #tpu.dot_dimension_numbers<[1], [0], [0], [1], [0, 0, 1, 1], [], []>} : vector<4x64xf32>, vector<64x128xf32>, vector<4x128xf32> -> vector<4x128xf32>
    %545 = arith.addf %544, %541 : vector<4x128xf32>
    %546 = vector.extract_strided_slice %545 {offsets = [0, 0], sizes = [4, 32], strides = [1, 1]} : vector<4x128xf32> to vector<4x32xf32>
    %547 = arith.negf %546 : vector<4x32xf32>
    %548 = math.exp %547 : vector<4x32xf32>
    %cst_132 = arith.constant 1.000000e+00 : f32
    %549 = vector.broadcast %cst_132 : f32 to vector<4x32xf32>
    %550 = arith.addf %549, %548 : vector<4x32xf32>
    %551 = arith.divf %549, %550 : vector<4x32xf32>
    %552 = vector.extract_strided_slice %545 {offsets = [0, 32], sizes = [4, 32], strides = [1, 1]} : vector<4x128xf32> to vector<4x32xf32>
    %553 = arith.negf %552 : vector<4x32xf32>
    %554 = math.exp %553 : vector<4x32xf32>
    %cst_133 = arith.constant 1.000000e+00 : f32
    %555 = vector.broadcast %cst_133 : f32 to vector<4x32xf32>
    %556 = arith.addf %555, %554 : vector<4x32xf32>
    %557 = arith.divf %555, %556 : vector<4x32xf32>
    %558 = vector.extract_strided_slice %545 {offsets = [0, 64], sizes = [4, 32], strides = [1, 1]} : vector<4x128xf32> to vector<4x32xf32>
    %559 = math.tanh %558 : vector<4x32xf32>
    %560 = vector.extract_strided_slice %545 {offsets = [0, 96], sizes = [4, 32], strides = [1, 1]} : vector<4x128xf32> to vector<4x32xf32>
    %561 = arith.negf %560 : vector<4x32xf32>
    %562 = math.exp %561 : vector<4x32xf32>
    %cst_134 = arith.constant 1.000000e+00 : f32
    %563 = vector.broadcast %cst_134 : f32 to vector<4x32xf32>
    %564 = arith.addf %563, %562 : vector<4x32xf32>
    %565 = arith.divf %563, %564 : vector<4x32xf32>
    %566 = arith.mulf %557, %532 : vector<4x32xf32>
    %567 = arith.mulf %551, %559 : vector<4x32xf32>
    %568 = arith.addf %566, %567 : vector<4x32xf32>
    %569 = math.tanh %568 : vector<4x32xf32>
    %570 = arith.mulf %565, %569 : vector<4x32xf32>
    %571 = vector.extract_strided_slice %570 {offsets = [0, 0], sizes = [2, 32], strides = [1, 1]} : vector<4x32xf32> to vector<2x32xf32>
    %c12_135 = arith.constant 12 : index
    %c0_136 = arith.constant 0 : index
    %572 = vector.load %arg14[%c12_135, %c0_136] : memref<16x64xf32, #tpu.memory_space<vmem>>, vector<2x32xf32>
    tpu.vector_store %arg14[%c12_135, %c0_136], %571 {strides = array<i32>} : memref<16x64xf32, #tpu.memory_space<vmem>>, vector<2x32xf32>,
    %573 = vector.extract_strided_slice %570 {offsets = [2, 0], sizes = [2, 32], strides = [1, 1]} : vector<4x32xf32> to vector<2x32xf32>
    %c2_137 = arith.constant 2 : index
    %c32_138 = arith.constant 32 : index
    %574 = vector.load %arg14[%c2_137, %c32_138] : memref<16x64xf32, #tpu.memory_space<vmem>>, vector<2x32xf32>
    tpu.vector_store %arg14[%c2_137, %c32_138], %573 {strides = array<i32>} : memref<16x64xf32, #tpu.memory_space<vmem>>, vector<2x32xf32>,
    %575 = vector.extract_strided_slice %319 {offsets = [14, 0], sizes = [2, 128], strides = [1, 1]} : vector<16x256xf32> to vector<2x128xf32>
    %576 = vector.extract_strided_slice %319 {offsets = [0, 128], sizes = [2, 128], strides = [1, 1]} : vector<16x256xf32> to vector<2x128xf32>
    %577 = tpu.concatenate %575, %576 in 0 : vector<2x128xf32>, vector<2x128xf32> -> vector<4x128xf32>
    %578 = tpu.concatenate %570, %570 in 1 : vector<4x32xf32>, vector<4x32xf32> -> vector<4x64xf32>
    %579 = arith.mulf %578, %22 : vector<4x64xf32>
    %cst_139 = arith.constant dense<0.000000e+00> : vector<4x128xf32>
    %580 = tpu.matmul %579, %320, %cst_139 {dimension_numbers = #tpu.dot_dimension_numbers<[1], [0], [0], [1], [0, 0, 1, 1], [], []>} : vector<4x64xf32>, vector<64x128xf32>, vector<4x128xf32> -> vector<4x128xf32>
    %581 = arith.addf %580, %577 : vector<4x128xf32>
    %582 = vector.extract_strided_slice %581 {offsets = [0, 0], sizes = [4, 32], strides = [1, 1]} : vector<4x128xf32> to vector<4x32xf32>
    %583 = arith.negf %582 : vector<4x32xf32>
    %584 = math.exp %583 : vector<4x32xf32>
    %cst_140 = arith.constant 1.000000e+00 : f32
    %585 = vector.broadcast %cst_140 : f32 to vector<4x32xf32>
    %586 = arith.addf %585, %584 : vector<4x32xf32>
    %587 = arith.divf %585, %586 : vector<4x32xf32>
    %588 = vector.extract_strided_slice %581 {offsets = [0, 32], sizes = [4, 32], strides = [1, 1]} : vector<4x128xf32> to vector<4x32xf32>
    %589 = arith.negf %588 : vector<4x32xf32>
    %590 = math.exp %589 : vector<4x32xf32>
    %cst_141 = arith.constant 1.000000e+00 : f32
    %591 = vector.broadcast %cst_141 : f32 to vector<4x32xf32>
    %592 = arith.addf %591, %590 : vector<4x32xf32>
    %593 = arith.divf %591, %592 : vector<4x32xf32>
    %594 = vector.extract_strided_slice %581 {offsets = [0, 64], sizes = [4, 32], strides = [1, 1]} : vector<4x128xf32> to vector<4x32xf32>
    %595 = math.tanh %594 : vector<4x32xf32>
    %596 = vector.extract_strided_slice %581 {offsets = [0, 96], sizes = [4, 32], strides = [1, 1]} : vector<4x128xf32> to vector<4x32xf32>
    %597 = arith.negf %596 : vector<4x32xf32>
    %598 = math.exp %597 : vector<4x32xf32>
    %cst_142 = arith.constant 1.000000e+00 : f32
    %599 = vector.broadcast %cst_142 : f32 to vector<4x32xf32>
    %600 = arith.addf %599, %598 : vector<4x32xf32>
    %601 = arith.divf %599, %600 : vector<4x32xf32>
    %602 = arith.mulf %593, %568 : vector<4x32xf32>
    %603 = arith.mulf %587, %595 : vector<4x32xf32>
    %604 = arith.addf %602, %603 : vector<4x32xf32>
    %605 = math.tanh %604 : vector<4x32xf32>
    %606 = arith.mulf %601, %605 : vector<4x32xf32>
    %607 = vector.extract_strided_slice %606 {offsets = [0, 0], sizes = [2, 32], strides = [1, 1]} : vector<4x32xf32> to vector<2x32xf32>
    %c14_143 = arith.constant 14 : index
    %c0_144 = arith.constant 0 : index
    %608 = vector.load %arg14[%c14_143, %c0_144] : memref<16x64xf32, #tpu.memory_space<vmem>>, vector<2x32xf32>
    tpu.vector_store %arg14[%c14_143, %c0_144], %607 {strides = array<i32>} : memref<16x64xf32, #tpu.memory_space<vmem>>, vector<2x32xf32>,
    %609 = vector.extract_strided_slice %606 {offsets = [2, 0], sizes = [2, 32], strides = [1, 1]} : vector<4x32xf32> to vector<2x32xf32>
    %c0_145 = arith.constant 0 : index
    %c32_146 = arith.constant 32 : index
    %610 = vector.load %arg14[%c0_145, %c32_146] : memref<16x64xf32, #tpu.memory_space<vmem>>, vector<2x32xf32>
    tpu.vector_store %arg14[%c0_145, %c32_146], %609 {strides = array<i32>} : memref<16x64xf32, #tpu.memory_space<vmem>>, vector<2x32xf32>,
    %c0_147 = arith.constant 0 : index
    %c0_148 = arith.constant 0 : index
    %611 = vector.load %arg14[%c0_147, %c0_148] : memref<16x64xf32, #tpu.memory_space<vmem>>, vector<16x64xf32>
    %c0_149 = arith.constant 0 : index
    %c0_150 = arith.constant 0 : index
    %612 = vector.load %arg10[%c0_149, %c0_150] : memref<64x128xf32, #tpu.memory_space<vmem>>, vector<64x128xf32>
    %cst_151 = arith.constant dense<0.000000e+00> : vector<16x128xf32>
    %613 = tpu.matmul %611, %612, %cst_151 {dimension_numbers = #tpu.dot_dimension_numbers<[1], [0], [0], [1], [0, 0, 1, 1], [], []>} : vector<16x64xf32>, vector<64x128xf32>, vector<16x128xf32> -> vector<16x128xf32>
    %c0_152 = arith.constant 0 : index
    %c0_153 = arith.constant 0 : index
    %614 = vector.load %arg11[%c0_152, %c0_153] : memref<1x128xf32, #tpu.memory_space<vmem>>, vector<1x128xf32>
    %615 = vector.broadcast %614 : vector<1x128xf32> to vector<16x128xf32>
    %616 = arith.addf %613, %615 : vector<16x128xf32>
    %cst_154 = arith.constant dense<0xFF800000> : vector<16xf32>
    %617 = vector.multi_reduction <maximumf>, %616, %cst_154 [1] : vector<16x128xf32> to vector<16xf32>
    %618 = vector.shape_cast %617 : vector<16xf32> to vector<16x1xf32>
    %619 = vector.broadcast %618 : vector<16x1xf32> to vector<16x128xf32>
    %620 = arith.subf %616, %619 : vector<16x128xf32>
    %621 = math.exp %620 : vector<16x128xf32>
    %cst_155 = arith.constant dense<0.000000e+00> : vector<16xf32>
    %622 = vector.multi_reduction <add>, %621, %cst_155 [1] : vector<16x128xf32> to vector<16xf32>
    %623 = vector.shape_cast %622 : vector<16xf32> to vector<16x1xf32>
    %624 = vector.broadcast %623 : vector<16x1xf32> to vector<16x128xf32>
    %625 = arith.divf %621, %624 : vector<16x128xf32>
    %c0_156 = arith.constant 0 : index
    %c0_157 = arith.constant 0 : index
    %626 = vector.load %arg12[%c0_156, %c0_157] : memref<16x128xf32, #tpu.memory_space<vmem>>, vector<16x128xf32>
    tpu.vector_store %arg12[%c0_156, %c0_157], %625 {strides = array<i32>} : memref<16x128xf32, #tpu.memory_space<vmem>>, vector<16x128xf32>,
    return
  }
  func.func @transform_0(%arg0: i32) -> (i32, i32) {
    %c0_i32 = arith.constant 0 : i32
    %c0_i32_0 = arith.constant 0 : i32
    %c0_i32_1 = arith.constant 0 : i32
    return %c0_i32, %c0_i32_0 : i32, i32
  }
  func.func @transform_1(%arg0: i32) -> (i32, i32) {
    %c0_i32 = arith.constant 0 : i32
    %c0_i32_0 = arith.constant 0 : i32
    %c0_i32_1 = arith.constant 0 : i32
    return %c0_i32, %c0_i32_0 : i32, i32
  }
  func.func @transform_2(%arg0: i32) -> (i32, i32) {
    %c0_i32 = arith.constant 0 : i32
    %c0_i32_0 = arith.constant 0 : i32
    %c0_i32_1 = arith.constant 0 : i32
    return %c0_i32, %c0_i32_0 : i32, i32
  }
  func.func @transform_3(%arg0: i32) -> (i32, i32) {
    %c0_i32 = arith.constant 0 : i32
    %c0_i32_0 = arith.constant 0 : i32
    %c0_i32_1 = arith.constant 0 : i32
    return %c0_i32, %c0_i32_0 : i32, i32
  }
  func.func @transform_4(%arg0: i32) -> (i32, i32) {
    %c0_i32 = arith.constant 0 : i32
    %c0_i32_0 = arith.constant 0 : i32
    %c0_i32_1 = arith.constant 0 : i32
    return %c0_i32, %c0_i32_0 : i32, i32
  }
  func.func @transform_5(%arg0: i32) -> (i32, i32) {
    %c0_i32 = arith.constant 0 : i32
    %c0_i32_0 = arith.constant 0 : i32
    %c0_i32_1 = arith.constant 0 : i32
    return %c0_i32, %c0_i32_0 : i32, i32
  }
  func.func @transform_6(%arg0: i32) -> (i32, i32) {
    %c0_i32 = arith.constant 0 : i32
    %c0_i32_0 = arith.constant 0 : i32
    %c0_i32_1 = arith.constant 0 : i32
    return %c0_i32, %c0_i32_0 : i32, i32
  }
  func.func @transform_7(%arg0: i32) -> (i32, i32) {
    %c0_i32 = arith.constant 0 : i32
    %c0_i32_0 = arith.constant 0 : i32
    %c0_i32_1 = arith.constant 0 : i32
    return %c0_i32, %c0_i32_0 : i32, i32
  }
  func.func @transform_8(%arg0: i32) -> (i32, i32) {
    %c0_i32 = arith.constant 0 : i32
    %c0_i32_0 = arith.constant 0 : i32
    %c0_i32_1 = arith.constant 0 : i32
    return %c0_i32, %c0_i32_0 : i32, i32
  }
  func.func @transform_9(%arg0: i32) -> (i32, i32) {
    %c0_i32 = arith.constant 0 : i32
    %c0_i32_0 = arith.constant 0 : i32
    %c0_i32_1 = arith.constant 0 : i32
    return %c0_i32, %c0_i32_0 : i32, i32
  }
  func.func @transform_10(%arg0: i32) -> (i32, i32) {
    %c0_i32 = arith.constant 0 : i32
    %c0_i32_0 = arith.constant 0 : i32
    %c0_i32_1 = arith.constant 0 : i32
    return %c0_i32, %c0_i32_0 : i32, i32
  }
  func.func @transform_11(%arg0: i32) -> (i32, i32) {
    %c0_i32 = arith.constant 0 : i32
    %c0_i32_0 = arith.constant 0 : i32
    %c0_i32_1 = arith.constant 0 : i32
    return %c0_i32, %c0_i32_0 : i32, i32
  }
}

</mosaic_0001>

<bundles_post_ra>
// kernel: crnn_forward.1
= control target key start
LH: loop header
LB: loop body
LE: loop exit
PB: predicated region body
PF: predicated region fallthrough
CT: control target
= control target key end

     0   :  { %16 = vsyncpa [#allocation5], 0  ;;  %s3975_s0 = inlined_call_operand.vmem [shape: f32[16,16], index: 0, kind: input, shape index: {}]   ;;  %s3976_s1 = inlined_call_operand.hbm [shape: f32[16,32], index: 1, kind: input, shape index: {}]   ;;  %s3977_s2 = inlined_call_operand.hbm [shape: f32[1,32], index: 2, kind: input, shape index: {}]   ;;  %s3978_s3 = inlined_call_operand.vmem [shape: f32[32,256], index: 3, kind: input, shape index: {}]   ;;  %s3979_s4 = inlined_call_operand.vmem [shape: f32[1,256], index: 4, kind: input, shape index: {}]   ;;  %s3980_s5 = inlined_call_operand.hbm [shape: f32[64,128], index: 5, kind: input, shape index: {}]   ;;  %s3981_s6 = inlined_call_operand.vmem [shape: f32[64,256], index: 6, kind: input, shape index: {}]   ;;  %s3982_s7 = inlined_call_operand.vmem [shape: f32[1,256], index: 7, kind: input, shape index: {}]   ;;  %s3983_s8 = inlined_call_operand.hbm [shape: f32[64,128], index: 8, kind: input, shape index: {}]   ;;  %s3984_s9 = inlined_call_operand.hbm [shape: f32[64,128], index: 9, kind: input, shape index: {}]   ;;  %s3985_s10 = inlined_call_operand.hbm [shape: f32[1,128], index: 10, kind: input, shape index: {}]   ;;  %s3986_s11 = inlined_call_operand.hbm [shape: f32[16,128], index: 11, kind: output, shape index: {}]  }
   0x1   :  { %17 = vsyncpa [#allocation8], 0 }
   0x2   :  { %18 = vsyncpa [#allocation11], 0 }
   0x3   :  { %19 = vsyncpa [#allocation14], 0 }
   0x4   :  { %20 = vsyncpa [#allocation6], 0  ;;  %s3222_s17 = smov [#allocation7]  }
   0x5   :  { %s41_s18 = sshll.u32 %s3222_s17, 4  ;;  %s42_s18 = int_to_ptr.vmem [resolvable:$true] %s41_s18 }
   0x6   :  { %s3080_s19 = scalar_lea.vmem %s42_s18, 16  ;;  %s3084_s20 = scalar_lea.vmem %s42_s18, 32 }
   0x7   :  { %p3081_p0 = scmp.ne.s32.totalorder %s42_s18, %s3080_s19  ;;  %p3085_p1 = scmp.lt.s32.totalorder %s42_s18, %s42_s18 }
   0x8   :  { %p3086_p2 = scmp.lt.s32.totalorder %s3084_s20, %s3080_s19 }
   0xa   :  { %p3087_p3 = por %p3086_p2, %p3085_p1 }
   0xc   :  { %p3088_p4 = pnand %p3087_p3, %p3081_p0 }
   0xe   :  { %3091 = shalt.err (!%p3088_p4)
}
   0xf   :  { %44 = dma.hbm_to_vmem [thread:$0]  %s3977_s2, 16, %s42_s18, [#allocation8]  }
  0x10   :  { %s3223_s23 = smov [#allocation10]   ;;  %s3224_s25 = smov [#allocation4]  }
  0x11   :  { %s70_s24 = sshll.u32 %s3223_s23, 4  ;;  %s28_s26 = sshll.u32 %s3224_s25, 4  ;;  %s71_s24 = int_to_ptr.vmem [resolvable:$true] %s70_s24  ;;  %s29_s26 = int_to_ptr.vmem [resolvable:$true] %s28_s26 }
  0x12   :  { %s3100_s27 = scalar_lea.vmem %s71_s24, 1024  ;;  %p3105_p6 = scmp.lt.s32.totalorder %s71_s24, %s71_s24 }
  0x13   :  { %p3101_p5 = scmp.ne.s32.totalorder %s71_s24, %s3100_s27  ;;  %p3106_p7 = scmp.lt.s32.totalorder %s3100_s27, %s3100_s27 }
  0x15   :  { %p3107_p8 = por %p3106_p7, %p3105_p6 }
  0x17   :  { %p3108_p9 = pnand %p3107_p8, %p3101_p5 }
  0x19   :  { %3111 = shalt.err (!%p3108_p9)
}
  0x1a   :  { %s3225_s28 = smov 128   ;;  %s3226_s29 = smov 8  }
  0x1b   :  { %76 = dma.hbm_to_vmem [thread:$0]  %s3983_s8, 1024, %s71_s24, [#allocation11], %s3225_s28, %s3225_s28, %s3226_s29  }
  0x1c   :  { %s3120_s2 = scalar_lea.vmem %s29_s26, 256  ;;  %p3125_p11 = scmp.lt.s32.totalorder %s29_s26, %s29_s26 }
  0x1d   :  { %p3121_p10 = scmp.ne.s32.totalorder %s29_s26, %s3120_s2  ;;  %p3126_p12 = scmp.lt.s32.totalorder %s3120_s2, %s3120_s2 }
  0x1f   :  { %p3127_p13 = por %p3126_p12, %p3125_p11 }
  0x21   :  { %p3128_p0 = pnand %p3127_p13, %p3121_p10 }
  0x23   :  { %3131 = shalt.err (!%p3128_p0)
}
  0x24   :  { %34 = dma.hbm_to_vmem [thread:$0]  %s3976_s1, 256, %s29_s26, [#allocation5], %s3225_s28, %s3225_s28, %s3226_s29  }
  0x25   :  { %s3227_s15 = smov [#allocation9]   ;;  %s3228_s17 = smov [#allocation12]  }
  0x26   :  { %s54_s16 = sshll.u32 %s3227_s15, 4  ;;  %s82_s8 = sshll.u32 %s3228_s17, 4  ;;  %s55_s16 = int_to_ptr.vmem [resolvable:$true] %s54_s16  ;;  %s83_s8 = int_to_ptr.vmem [resolvable:$true] %s82_s8 }
  0x27   :  { %s3140_s18 = scalar_lea.vmem %s55_s16, 1024  ;;  %p3145_p2 = scmp.lt.s32.totalorder %s55_s16, %s55_s16 }
  0x28   :  { %p3141_p1 = scmp.ne.s32.totalorder %s55_s16, %s3140_s18  ;;  %p3146_p3 = scmp.lt.s32.totalorder %s3140_s18, %s3140_s18 }
  0x2a   :  { %p3147_p4 = por %p3146_p3, %p3145_p2 }
  0x2c   :  { %p3148_p5 = pnand %p3147_p4, %p3141_p1 }
  0x2e   :  { %3151 = shalt.err (!%p3148_p5)
}
  0x2f   :  { %60 = dma.hbm_to_vmem [thread:$0]  %s3980_s5, 1024, %s55_s16, [#allocation8], %s3225_s28, %s3225_s28, %s3226_s29  }
  0x30   :  { %s3160_s1 = scalar_lea.vmem %s83_s8, 1024  ;;  %p3165_p7 = scmp.lt.s32.totalorder %s83_s8, %s83_s8 }
  0x31   :  { %p3161_p6 = scmp.ne.s32.totalorder %s83_s8, %s3160_s1  ;;  %p3166_p8 = scmp.lt.s32.totalorder %s3160_s1, %s3160_s1 }
  0x33   :  { %p3167_p9 = por %p3166_p8, %p3165_p7 }
  0x35   :  { %p3168_p10 = pnand %p3167_p9, %p3161_p6 }
  0x37   :  { %3171 = shalt.err (!%p3168_p10)
}
  0x38   :  { %88 = dma.hbm_to_vmem [thread:$0]  %s3984_s9, 1024, %s83_s8, [#allocation11], %s3225_s28, %s3225_s28, %s3226_s29  }
  0x39   :  { %s3229_s23 = smov [#allocation13]  }
  0x3a   :  { %s95_s24 = sshll.u32 %s3229_s23, 4  ;;  %s96_s24 = int_to_ptr.vmem [resolvable:$true] %s95_s24 }
  0x3b   :  { %s3180_s25 = scalar_lea.vmem %s96_s24, 16  ;;  %s3184_s5 = scalar_lea.vmem %s96_s24, 32 }
  0x3c   :  { %p3181_p11 = scmp.ne.s32.totalorder %s96_s24, %s3180_s25  ;;  %p3185_p12 = scmp.lt.s32.totalorder %s96_s24, %s96_s24 }
  0x3d   :  { %p3186_p13 = scmp.lt.s32.totalorder %s3184_s5, %s3180_s25 }
  0x3f   :  { %p3187_p0 = por %p3186_p13, %p3185_p12 }
  0x41   :  { %p3188_p1 = pnand %p3187_p0, %p3181_p11 }
  0x43   :  { %3191 = shalt.err (!%p3188_p1)
}
  0x44   :  { %98 = dma.hbm_to_vmem [thread:$0]  %s3985_s10, 16, %s96_s24, [#allocation14]  }
  0x45   :  { %3212 = dma.done.wait [#allocation5], 256  }
  0x46   :  { %3213 = vsyncadd [#allocation5], 4294967040 }
  0x47   :  { %3214 = dma.done.wait [#allocation8], 1040  }
  0x48   :  { %3215 = vsyncadd [#allocation8], 4294966256 }
  0x49   :  { %3216 = dma.done.wait [#allocation11], 2048  }
  0x4a   :  { %3217 = vsyncadd [#allocation11], 4294965248 }
  0x4b   :  { %3218 = dma.done.wait [#allocation14], 16  }
  0x4c   :  { %3219 = vsyncadd [#allocation14], 4294967280  ;;  %vm128_vm0 = vcmask 130048   ;;  %v120_v0 = vld [vmem:[#allocation4 + $0x8] sm:$0xff]  ;;  %v119_v1 = vld [vmem:[#allocation4] sm:$0xff]  ;;  %v3230_v6 = vmov 0.0   ;;  %v222_v17 = vlaneseq }
  0x4d   :  { %v117_v2 = vld [vmem:[%s3975_s0] sm:$0xff]  ;;  %2592 = vmatprep.subr.mxu0 %v120_v0  ;;  %v219_v3 = vld [vmem:[%s3978_s3 + $0x38] sm:$0xff]  ;;  %v118_v4 = vld [vmem:[%s3975_s0 + $0x8] sm:$0xff]  ;;  %303 = vmatprep.mubr.f32.mxu1 %v3230_v6  ;;  %vm3231_vm4 = vmmov 0   ;;  %vm3232_vm5 = vmmov 1   ;;  %vm340_vm7 = vcmask 523264  }
  0x4e   :  { %2596 = vmatprep.mubr.msk.f32.mxu0 %vm128_vm0, %v117_v2  ;;  %2593 = vmatpush3.msra.mxu0 %v120_v0  ;;  %v218_v5 = vld [vmem:[%s3978_s3 + $0x30] sm:$0xff]  ;;  %v217_v7 = vld [vmem:[%s3978_s3 + $0x28] sm:$0xff]  ;;  %v216_v9 = vld [vmem:[%s3978_s3 + $0x20] sm:$0xff]  ;;  %v3376_v19 = vshrl.u32 %v222_v17, 7  ;;  %v319_v20 = vand.u32 127, %v222_v17  ;;  %vm232_vm8 = vcmask 261120  }
  0x4f   :  { %263 = vmatprep.subr.mxu1 %v219_v3  ;;  %2594 = vmatprep.subr.mxu0 %v119_v1  ;;  %v3342_v8 = vld [vmem:[#allocation9 + $0x38] sm:$0xff]  ;;  %v215_v10 = vld [vmem:[%s3978_s3 + $0x18] sm:$0xff]  ;;  %v3352_v11 = vld [vmem:[#allocation9 + $0x30] sm:$0xff]  ;;  %vm337_vm9 = vcmask 1041408   ;;  %s3234_s5 = smov 32   ;;  %vm447_vm10 = vcmask 519426  }
  0x50   :  { %2595 = vmatpush3.msra.mxu0 %v119_v1  ;;  %264 = vmatpush1.msra.mxu1 %v218_v5  ;;  %v214_v12 = vld [vmem:[%s3978_s3 + $0x10] sm:$0xff]  ;;  %v213_v13 = vld [vmem:[%s3978_s3 + $0x8] sm:$0xff]  ;;  %v3362_v14 = vld [vmem:[#allocation9 + $0x28] sm:$0xff]  ;;  %vm320_vm1 = vcmp.lt.s32.totalorder %v3376_v19, 2  ;;  %vm321_vm2 = vcmp.lt.s32.totalorder %v319_v20, 32  ;;  %v224_v35 = vsub.s32 0, %v3376_v19 }
  0x51   :  { %2597 = vmatmul.mubr.msk.f32.vlgmr.msra.gmra.mxu0 %vm128_vm0, %v118_v4  ;;  %2599 = vmatprep.subr.mxu0 %v3230_v6  ;;  %v212_v15 = vld [vmem:[%s3978_s3] sm:$0xff]  ;;  %v3369_v16 = vld [vmem:[#allocation9 + $0x20] sm:$0xff]  ;;  %v3372_v18 = vld [vmem:[#allocation9 + $0x18] sm:$0xff]  ;;  %v228_v37 = vsub.s32 1, %v3376_v19  ;;  %vm442_vm11 = vcmask 254976  }
  0x52   :  { %265 = vmatprep.subr.mxu1 %v217_v7  ;;  %2600 = vmatpush3.msra.mxu0 %v3342_v8  ;;  %v3380_v21 = vld [vmem:[#allocation9 + $0x10] sm:$0xff]  ;;  %v3384_v22 = vld [vmem:[#allocation9 + $0x8] sm:$0xff]  ;;  %vm322_vm3 = vmxor %vm320_vm1, %vm321_vm2 }
  0x53   :  { %266 = vmatpush1.msra.mxu1 %v216_v9  ;;  %2601 = vmatprep.subr.mxu0 %v3230_v6  ;;  %vm323_vm6 = vmxor %vm322_vm3, %vm3232_vm5  ;;  %v3390_v23 = vld [vmem:[#allocation9] sm:$0xff]  ;;  %v2391_v27 = vld [vmem:[#allocation7] ss:$0 sm:$0xff] }
  0x54   :  { %267 = vmatprep.subr.mxu1 %v215_v10  ;;  %2602 = vmatpush3.msra.mxu0 %v3352_v11  ;;  %v3393_v24 = vsel %vm323_vm6, 1.0, %v3230_v6  ;;  %v220_v36 = vld [vmem:[%s3979_s4] sm:$0x3]  ;;  %s3233_s4 = smov 64  }
  0x55   :  { %268 = vmatpush1.msra.mxu1 %v214_v12  ;;  %2603 = vmatprep.subr.mxu0 %v3230_v6  ;;  %v3397_v25 = vmul.f32 0.0, %v3393_v24  ;;  %v225_v38 = vrot.slane %v220_v36, %v224_v35  ;;  %v229_v39 = vrot.slane %v220_v36, %v228_v37 }
  0x56   :  { %269 = vmatprep.subr.mxu1 %v213_v13  ;;  %2604 = vmatpush3.msra.mxu0 %v3362_v14 }
  0x57   :  { %270 = vmatpush1.msra.mxu1 %v212_v15  ;;  %2605 = vmatprep.subr.mxu0 %v3230_v6 }
  0x58   :  { %2618 = vmatprep.subr.mxu1 %v3230_v6  ;;  %2606 = vmatpush3.msra.mxu0 %v3369_v16 }
  0x59   :  { %2607 = vmatprep.subr.mxu0 %v3230_v6  ;;  %2615 = vmatprep.mubr.msk.f32.mxu0 %vm3231_vm4, %v3230_v6 }
  0x5a   :  { %2608 = vmatpush3.msra.mxu0 %v3372_v18 }
  0x5b   :  { %2609 = vmatprep.subr.mxu0 %v3230_v6 }
  0x5c   :  { %2610 = vmatpush3.msra.mxu0 %v3380_v21 }
  0x5d   :  { %2611 = vmatprep.subr.mxu0 %v3230_v6 }
  0x5e   :  { %2612 = vmatpush3.msra.mxu0 %v3384_v22 }
  0x5f   :  { %2613 = vmatprep.subr.mxu0 %v3230_v6 }
  0x60   :  { %2614 = vmatpush3.msra.mxu0 %v3390_v23 }
  0x61   :  { %2616 = vmatmul.mubr.msk.f32.vlgmr.msra.gmra.mxu0 %vm340_vm7, %v3397_v25  ;;  %2637 = vmatprep.subr.mxu0 %v3230_v6 }
  0x62   :  { %2638 = vmatpush3.msra.mxu0 %v3342_v8  ;;  %2653 = vmatprep.mubr.msk.f32.mxu0 %vm3231_vm4, %v3230_v6 }
  0x63   :  { %2639 = vmatprep.subr.mxu0 %v3230_v6 }
  0x64   :  { %2640 = vmatpush3.msra.mxu0 %v3352_v11 }
  0x65   :  { %2641 = vmatprep.subr.mxu0 %v3230_v6 }
  0x66   :  { %2642 = vmatpush3.msra.mxu0 %v3362_v14 }
  0x67   :  { %2643 = vmatprep.subr.mxu0 %v3230_v6 }
  0x68   :  { %2644 = vmatpush3.msra.mxu0 %v3369_v16 }
  0x69   :  { %2645 = vmatprep.subr.mxu0 %v3230_v6 }
  0x6a   :  { %2646 = vmatpush3.msra.mxu0 %v3372_v18 }
  0x6b   :  { %2647 = vmatprep.subr.mxu0 %v3230_v6 }
  0x6c   :  { %2648 = vmatpush3.msra.mxu0 %v3380_v21 }
  0x6d   :  { %2649 = vmatprep.subr.mxu0 %v3230_v6 }
  0x6e   :  { %2650 = vmatpush3.msra.mxu0 %v3384_v22 }
  0x6f   :  { %2651 = vmatprep.subr.mxu0 %v3230_v6 }
  0x70   :  { %2652 = vmatpush3.msra.mxu0 %v3390_v23 }
  0x71   :  { %2675 = vmatprep.subr.mxu0 %v3230_v6 }
 0x111   :  { %v2598_v26 = vpop.f32.mrf.mxu0 }
 0x112   :  { %v207_v30 = vadd.f32 %v2598_v26, %v2391_v27 }
 0x113   :  { %v201_v28 = vpop.f32.mrf.mxu0 }
 0x114   :  { %v202_v29 = vadd.f32 %v2391_v27, %v201_v28  ;;  %v211_v32 = vmax.f32 %v207_v30, 0.0 }
 0x116   :  { %v210_v31 = vmax.f32 %v202_v29, 0.0 }
 0x118   :  { %2394 = vmatmul.mubr.msk.f32.vlgmr.msra.gmra.mxu1 %vm232_vm8, %v210_v31 }
 0x119   :  { %309 = vmatprep.mubr.f32.mxu1 %v3230_v6  ;;  %2619 = vmatpush3.msra.mxu1 %v3342_v8 }
 0x11a   :  { %2620 = vmatprep.subr.mxu1 %v3230_v6 }
 0x11b   :  { %2621 = vmatpush3.msra.mxu1 %v3352_v11 }
 0x11c   :  { %2395 = vmatmul.mubr.msk.f32.gmra.mxu1 %vm232_vm8, %v211_v32  ;;  %2622 = vmatprep.subr.mxu1 %v3230_v6 }
 0x11d   :  { %2623 = vmatpush3.msra.mxu1 %v3362_v14  ;;  %2634 = vmatprep.mubr.msk.f32.mxu1 %vm3231_vm4, %v3230_v6 }
 0x11e   :  { %2624 = vmatprep.subr.mxu1 %v3230_v6 }
 0x11f   :  { %2625 = vmatpush3.msra.mxu1 %v3369_v16 }
 0x120   :  { %2626 = vmatprep.subr.mxu1 %v3230_v6 }
 0x121   :  { %2627 = vmatpush3.msra.mxu1 %v3372_v18  ;;  %v410_v33 = vpop.f32.mrf.mxu0 }
 0x122   :  { %2628 = vmatprep.subr.mxu1 %v3230_v6 }
 0x123   :  { %2629 = vmatpush3.msra.mxu1 %v3380_v21  ;;  %v2617_v34 = vpop.f32.mrf.mxu0 }
 0x124   :  { %2630 = vmatprep.subr.mxu1 %v3230_v6 }
 0x125   :  { %2631 = vmatpush3.msra.mxu1 %v3384_v22 }
 0x126   :  { %2632 = vmatprep.subr.mxu1 %v3230_v6 }
 0x127   :  { %2633 = vmatpush3.msra.mxu1 %v3390_v23 }
 0x128   :  { %2656 = vmatprep.subr.mxu1 %v3230_v6 }
 0x1d8   :  { %v305_v40 = vpop.f32.mrf.mxu1 }
 0x1d9   :  { %v306_v41 = vadd.f32 %v305_v40, %v225_v38 }
 0x1da   :  { %v307_v42 = vpop.f32.mrf.mxu1 }
 0x1db   :  { %v308_v43 = vadd.f32 %v307_v42, %v229_v39  ;;  %v450_v48 = vrot.slane %v306_v41, 2  ;;  %v563_v49 = vrot.slane %v306_v41, 4  ;;  %v674_v54 = vrot.slane %v306_v41, 6 }
 0x1dc   :  { %v311_v44 = vpop.f32.mrf.mxu1 }
 0x1dd   :  { %v312_v45 = vadd.f32 %v311_v44, %v225_v38  ;;  %v788_v46 = vrot.slane %v308_v43, 4  ;;  %v902_v55 = vrot.slane %v308_v43, 2  ;;  %v1126_v57 = vrot.slane %v308_v43, 6 }
 0x1de   :  { %v313_v47 = vpop.f32.mrf.mxu1 }
 0x1df   :  { %v314_v50 = vadd.f32 %v313_v47, %v229_v39  ;;  %v3453_v51 = vsel %vm337_vm9, %v312_v45, %v788_v46  ;;  %v900_v52 = vrot.slane %v312_v45, 2  ;;  %v1013_v53 = vrot.slane %v312_v45, 4 }
 0x1e0   :  { %v1124_v56 = vrot.slane %v312_v45, 6 }
 0x1e1   :  { %v335_v58 = vrot.slane %v314_v50, 4  ;;  %v452_v59 = vrot.slane %v314_v50, 2  ;;  %v3456_v60 = vsel %vm337_vm9, %v563_v49, %v314_v50  ;;  %v676_v61 = vrot.slane %v314_v50, 6 }
 0x1e2   :  { %v3459_v62 = vsel %vm337_vm9, %v900_v52, %v902_v55  ;;  %v3462_v63 = vsel %vm337_vm9, %v1013_v53, %v308_v43  ;;  %v3465_v0 = vsel %vm337_vm9, %v1124_v56, %v1126_v57 }
 0x1e3   :  { %v338_v1 = vsel %vm337_vm9, %v306_v41, %v335_v58  ;;  %v454_v2 = vsel %vm337_vm9, %v450_v48, %v452_v59  ;;  %v3470_v3 = vsel %vm337_vm9, %v674_v54, %v676_v61 }
 0x1e4   :  { %v411_v4 = vadd.f32 %v410_v33, %v338_v1 }
 0x1e6   :  { %2936 = vtanh.f32 %v411_v4  ;;  %v2398_v7 = vmul.f32 -1.442695, %v411_v4 }
 0x1e8   :  { %2938 = vpow2.f32 %v2398_v7 }
 0x1f3   :  { %v2937_v5 = vpop.eup %2936 }
 0x1f4   :  { %423 = vrot.lane.b32.xlu0 %v2937_v5, %s3233_s4 }
 0x1f5   :  { %v2939_v9 = vpop.eup %2938 }
 0x1f6   :  { %v417_v10 = vadd.f32 1.0, %v2939_v9 }
 0x1f8   :  { %2940 = vrcp.f32 %v417_v10 }
 0x205   :  { %v2941_v12 = vpop.eup %2940 }
 0x206   :  { %v421_v17 = vmul.f32 0.0, %v2941_v12 }
 0x266   :  { %v424_v13 = vpop.permute.xlu0 %423 }
 0x267   :  { %v426_v15 = vmul.f32 %v2941_v12, %v424_v13 }
 0x269   :  { %428 = vrot.lane.b32.xlu0 %v426_v15, %s3234_s5 }
 0x2db   :  { %v429_v20 = vpop.permute.xlu0 %428 }
 0x2dc   :  { %v431_v26 = vadd.f32 %v429_v20, %v421_v17 }
 0x2de   :  { %2942 = vtanh.f32 %v431_v26 }
 0x2eb   :  { %v2943_v27 = vpop.eup %2942 }
 0x2ec   :  { %434 = vrot.lane.b32.xlu1 %v2943_v27, %s3233_s4 }
 0x35e   :  { %v435_v28 = vpop.permute.xlu1 %434 }
 0x35f   :  { %v437_v29 = vmul.f32 %v2941_v12, %v435_v28 }
 0x361   :  { %444 = vrot.lane.b32.xlu0 %v437_v29, %s3233_s4  ;;  %439 = vrot.lane.b32.xlu1 %v437_v29, %s3234_s5 }
 0x3d3   :  { %v445_v30 = vpop.permute.xlu0 %444  ;;  %v440_v31 = vpop.permute.xlu1 %439 }
 0x3d4   :  { %448 = vst.msk [vmem:[#allocation2 + $0xc] sm:$0xc] %vm447_vm10, %v445_v30  ;;  %v455_v32 = vsel %vm232_vm8, %v440_v31, %v445_v30 }
 0x3d5   :  { %443 = vst.msk [vmem:[#allocation2] sm:$0x3] %vm442_vm11, %v440_v31  ;;  %v456_v33 = vmul.f32 %v3393_v24, %v455_v32 }
 0x3d7   :  { %2635 = vmatmul.mubr.msk.f32.vlgmr.msra.gmra.mxu1 %vm340_vm7, %v456_v33 }
 0x3d8   :  { %2657 = vmatpush3.msra.mxu1 %v3342_v8  ;;  %2672 = vmatprep.mubr.msk.f32.mxu1 %vm3231_vm4, %v3230_v6 }
 0x3d9   :  { %2658 = vmatprep.subr.mxu1 %v3230_v6 }
 0x3da   :  { %2659 = vmatpush3.msra.mxu1 %v3352_v11 }
 0x3db   :  { %2660 = vmatprep.subr.mxu1 %v3230_v6 }
 0x3dc   :  { %2661 = vmatpush3.msra.mxu1 %v3362_v14 }
 0x3dd   :  { %2662 = vmatprep.subr.mxu1 %v3230_v6 }
 0x3de   :  { %2663 = vmatpush3.msra.mxu1 %v3369_v16 }
 0x3df   :  { %2664 = vmatprep.subr.mxu1 %v3230_v6 }
 0x3e0   :  { %2665 = vmatpush3.msra.mxu1 %v3372_v18 }
 0x3e1   :  { %2666 = vmatprep.subr.mxu1 %v3230_v6 }
 0x3e2   :  { %2667 = vmatpush3.msra.mxu1 %v3380_v21 }
 0x3e3   :  { %2668 = vmatprep.subr.mxu1 %v3230_v6 }
 0x3e4   :  { %2669 = vmatpush3.msra.mxu1 %v3384_v22 }
 0x3e5   :  { %2670 = vmatprep.subr.mxu1 %v3230_v6 }
 0x3e6   :  { %2671 = vmatpush3.msra.mxu1 %v3390_v23 }
 0x3e7   :  { %2694 = vmatprep.subr.mxu1 %v3230_v6 }
 0x497   :  { %v526_v34 = vpop.f32.mrf.mxu1 }
 0x498   :  { %v527_v36 = vadd.f32 %v526_v34, %v454_v2 }
 0x499   :  { %v2636_v38 = vpop.f32.mrf.mxu1 }
 0x49a   :  { %2944 = vtanh.f32 %v527_v36  ;;  %v2400_v40 = vmul.f32 -1.442695, %v527_v36 }
 0x49c   :  { %2946 = vpow2.f32 %v2400_v40 }
 0x4a7   :  { %v2945_v39 = vpop.eup %2944 }
 0x4a8   :  { %539 = vrot.lane.b32.xlu1 %v2945_v39, %s3233_s4 }
 0x4a9   :  { %v2947_v41 = vpop.eup %2946 }
 0x4aa   :  { %v533_v42 = vadd.f32 1.0, %v2947_v41 }
 0x4ac   :  { %2948 = vrcp.f32 %v533_v42 }
 0x4b9   :  { %v2949_v43 = vpop.eup %2948 }
 0x4ba   :  { %v537_v46 = vmul.f32 %v2949_v43, %v431_v26 }
 0x51a   :  { %v540_v44 = vpop.permute.xlu1 %539 }
 0x51b   :  { %v542_v45 = vmul.f32 %v2949_v43, %v540_v44 }
 0x51d   :  { %544 = vrot.lane.b32.xlu0 %v542_v45, %s3234_s5 }
 0x58f   :  { %v545_v47 = vpop.permute.xlu0 %544 }
 0x590   :  { %v547_v48 = vadd.f32 %v545_v47, %v537_v46 }
 0x592   :  { %2950 = vtanh.f32 %v547_v48 }
 0x59f   :  { %v2951_v49 = vpop.eup %2950 }
 0x5a0   :  { %550 = vrot.lane.b32.xlu1 %v2951_v49, %s3233_s4 }
 0x612   :  { %v551_v50 = vpop.permute.xlu1 %550 }
 0x613   :  { %v553_v52 = vmul.f32 %v2949_v43, %v551_v50 }
 0x615   :  { %559 = vrot.lane.b32.xlu1 %v553_v52, %s3233_s4  ;;  %555 = vrot.lane.b32.xlu0 %v553_v52, %s3234_s5 }
 0x687   :  { %v560_v53 = vpop.permute.xlu1 %559  ;;  %v556_v54 = vpop.permute.xlu0 %555 }
 0x688   :  { %562 = vst.msk [vmem:[#allocation2 + $0xa] sm:$0xc] %vm447_vm10, %v560_v53  ;;  %v566_v55 = vsel %vm232_vm8, %v556_v54, %v560_v53 }
 0x689   :  { %558 = vst.msk [vmem:[#allocation2 + $0x2] sm:$0x3] %vm442_vm11, %v556_v54  ;;  %v567_v56 = vmul.f32 %v3393_v24, %v566_v55 }
 0x68b   :  { %2654 = vmatmul.mubr.msk.f32.vlgmr.msra.gmra.mxu0 %vm340_vm7, %v567_v56 }
 0x68c   :  { %2676 = vmatpush3.msra.mxu0 %v3342_v8  ;;  %2691 = vmatprep.mubr.msk.f32.mxu0 %vm3231_vm4, %v3230_v6 }
 0x68d   :  { %2677 = vmatprep.subr.mxu0 %v3230_v6 }
 0x68e   :  { %2678 = vmatpush3.msra.mxu0 %v3352_v11 }
 0x68f   :  { %2679 = vmatprep.subr.mxu0 %v3230_v6 }
 0x690   :  { %2680 = vmatpush3.msra.mxu0 %v3362_v14 }
 0x691   :  { %2681 = vmatprep.subr.mxu0 %v3230_v6 }
 0x692   :  { %2682 = vmatpush3.msra.mxu0 %v3369_v16 }
 0x693   :  { %2683 = vmatprep.subr.mxu0 %v3230_v6 }
 0x694   :  { %2684 = vmatpush3.msra.mxu0 %v3372_v18 }
 0x695   :  { %2685 = vmatprep.subr.mxu0 %v3230_v6 }
 0x696   :  { %2686 = vmatpush3.msra.mxu0 %v3380_v21 }
 0x697   :  { %2687 = vmatprep.subr.mxu0 %v3230_v6 }
 0x698   :  { %2688 = vmatpush3.msra.mxu0 %v3384_v22 }
 0x699   :  { %2689 = vmatprep.subr.mxu0 %v3230_v6 }
 0x69a   :  { %2690 = vmatpush3.msra.mxu0 %v3390_v23 }
 0x69b   :  { %2713 = vmatprep.subr.mxu0 %v3230_v6 }
 0x74b   :  { %v637_v57 = vpop.f32.mrf.mxu0 }
 0x74c   :  { %v638_v58 = vadd.f32 %v637_v57, %v3456_v60 }
 0x74d   :  { %v2655_v59 = vpop.f32.mrf.mxu0 }
 0x74e   :  { %2952 = vtanh.f32 %v638_v58  ;;  %v2402_v1 = vmul.f32 -1.442695, %v638_v58 }
 0x750   :  { %2954 = vpow2.f32 %v2402_v1 }
 0x75b   :  { %v2953_v61 = vpop.eup %2952 }
 0x75c   :  { %650 = vrot.lane.b32.xlu0 %v2953_v61, %s3233_s4 }
 0x75d   :  { %v2955_v2 = vpop.eup %2954 }
 0x75e   :  { %v644_v4 = vadd.f32 1.0, %v2955_v2 }
 0x760   :  { %2956 = vrcp.f32 %v644_v4 }
 0x76d   :  { %v2957_v5 = vpop.eup %2956 }
 0x76e   :  { %v648_v10 = vmul.f32 %v2957_v5, %v547_v48 }
 0x7ce   :  { %v651_v7 = vpop.permute.xlu0 %650 }
 0x7cf   :  { %v653_v9 = vmul.f32 %v2957_v5, %v651_v7 }
 0x7d1   :  { %655 = vrot.lane.b32.xlu1 %v653_v9, %s3234_s5 }
 0x843   :  { %v656_v12 = vpop.permute.xlu1 %655 }
 0x844   :  { %v658_v13 = vadd.f32 %v656_v12, %v648_v10 }
 0x846   :  { %2958 = vtanh.f32 %v658_v13 }
 0x853   :  { %v2959_v60 = vpop.eup %2958 }
 0x854   :  { %661 = vrot.lane.b32.xlu0 %v2959_v60, %s3233_s4 }
 0x8c6   :  { %v662_v15 = vpop.permute.xlu0 %661 }
 0x8c7   :  { %v664_v17 = vmul.f32 %v2957_v5, %v662_v15 }
 0x8c9   :  { %670 = vrot.lane.b32.xlu0 %v664_v17, %s3233_s4  ;;  %666 = vrot.lane.b32.xlu1 %v664_v17, %s3234_s5 }
 0x93b   :  { %v671_v20 = vpop.permute.xlu0 %670  ;;  %v667_v26 = vpop.permute.xlu1 %666 }
 0x93c   :  { %673 = vst.msk [vmem:[#allocation2 + $0x8] sm:$0xc] %vm447_vm10, %v671_v20  ;;  %v679_v27 = vsel %vm232_vm8, %v667_v26, %v671_v20 }
 0x93d   :  { %669 = vst.msk [vmem:[#allocation2 + $0x4] sm:$0x3] %vm442_vm11, %v667_v26  ;;  %v680_v28 = vmul.f32 %v3393_v24, %v679_v27 }
 0x93f   :  { %2673 = vmatmul.mubr.msk.f32.vlgmr.msra.gmra.mxu1 %vm340_vm7, %v680_v28 }
 0x940   :  { %2695 = vmatpush3.msra.mxu1 %v3342_v8  ;;  %2710 = vmatprep.mubr.msk.f32.mxu1 %vm3231_vm4, %v3230_v6 }
 0x941   :  { %2696 = vmatprep.subr.mxu1 %v3230_v6 }
 0x942   :  { %2697 = vmatpush3.msra.mxu1 %v3352_v11 }
 0x943   :  { %2698 = vmatprep.subr.mxu1 %v3230_v6 }
 0x944   :  { %2699 = vmatpush3.msra.mxu1 %v3362_v14 }
 0x945   :  { %2700 = vmatprep.subr.mxu1 %v3230_v6 }
 0x946   :  { %2701 = vmatpush3.msra.mxu1 %v3369_v16 }
 0x947   :  { %2702 = vmatprep.subr.mxu1 %v3230_v6 }
 0x948   :  { %2703 = vmatpush3.msra.mxu1 %v3372_v18 }
 0x949   :  { %2704 = vmatprep.subr.mxu1 %v3230_v6 }
 0x94a   :  { %2705 = vmatpush3.msra.mxu1 %v3380_v21 }
 0x94b   :  { %2706 = vmatprep.subr.mxu1 %v3230_v6 }
 0x94c   :  { %2707 = vmatpush3.msra.mxu1 %v3384_v22 }
 0x94d   :  { %2708 = vmatprep.subr.mxu1 %v3230_v6 }
 0x94e   :  { %2709 = vmatpush3.msra.mxu1 %v3390_v23 }
 0x94f   :  { %2732 = vmatprep.subr.mxu1 %v3230_v6 }
 0x9ff   :  { %v750_v29 = vpop.f32.mrf.mxu1 }
 0xa00   :  { %v751_v30 = vadd.f32 %v750_v29, %v3470_v3 }
 0xa01   :  { %v2674_v31 = vpop.f32.mrf.mxu1 }
 0xa02   :  { %2960 = vtanh.f32 %v751_v30  ;;  %v2404_v33 = vmul.f32 -1.442695, %v751_v30 }
 0xa04   :  { %2962 = vpow2.f32 %v2404_v33 }
 0xa0f   :  { %v2961_v32 = vpop.eup %2960 }
 0xa10   :  { %763 = vrot.lane.b32.xlu1 %v2961_v32, %s3233_s4 }
 0xa11   :  { %v2963_v34 = vpop.eup %2962 }
 0xa12   :  { %v757_v36 = vadd.f32 1.0, %v2963_v34 }
 0xa14   :  { %2964 = vrcp.f32 %v757_v36 }
 0xa21   :  { %v2965_v38 = vpop.eup %2964 }
 0xa22   :  { %v761_v41 = vmul.f32 %v2965_v38, %v658_v13 }
 0xa82   :  { %v764_v39 = vpop.permute.xlu1 %763 }
 0xa83   :  { %v766_v40 = vmul.f32 %v2965_v38, %v764_v39 }
 0xa85   :  { %768 = vrot.lane.b32.xlu0 %v766_v40, %s3234_s5 }
 0xaf7   :  { %v769_v42 = vpop.permute.xlu0 %768 }
 0xaf8   :  { %v771_v43 = vadd.f32 %v769_v42, %v761_v41 }
 0xafa   :  { %2966 = vtanh.f32 %v771_v43 }
 0xb07   :  { %v2967_v3 = vpop.eup %2966 }
 0xb08   :  { %774 = vrot.lane.b32.xlu1 %v2967_v3, %s3233_s4 }
 0xb7a   :  { %v775_v44 = vpop.permute.xlu1 %774 }
 0xb7b   :  { %v777_v45 = vmul.f32 %v2965_v38, %v775_v44 }
 0xb7d   :  { %783 = vrot.lane.b32.xlu1 %v777_v45, %s3233_s4  ;;  %779 = vrot.lane.b32.xlu0 %v777_v45, %s3234_s5 }
 0xbef   :  { %v784_v46 = vpop.permute.xlu1 %783  ;;  %v780_v47 = vpop.permute.xlu0 %779 }
 0xbf0   :  { %786 = vst.msk [vmem:[#allocation2 + $0x6] sm:$0xc] %vm447_vm10, %v784_v46  ;;  %v791_v48 = vsel %vm232_vm8, %v780_v47, %v784_v46 }
 0xbf1   :  { %782 = vst.msk [vmem:[#allocation2 + $0x6] sm:$0x3] %vm442_vm11, %v780_v47  ;;  %v792_v49 = vmul.f32 %v3393_v24, %v791_v48 }
 0xbf3   :  { %2692 = vmatmul.mubr.msk.f32.vlgmr.msra.gmra.mxu0 %vm340_vm7, %v792_v49 }
 0xbf4   :  { %2714 = vmatpush3.msra.mxu0 %v3342_v8  ;;  %2729 = vmatprep.mubr.msk.f32.mxu0 %vm3231_vm4, %v3230_v6 }
 0xbf5   :  { %2715 = vmatprep.subr.mxu0 %v3230_v6 }
 0xbf6   :  { %2716 = vmatpush3.msra.mxu0 %v3352_v11 }
 0xbf7   :  { %2717 = vmatprep.subr.mxu0 %v3230_v6 }
 0xbf8   :  { %2718 = vmatpush3.msra.mxu0 %v3362_v14 }
 0xbf9   :  { %2719 = vmatprep.subr.mxu0 %v3230_v6 }
 0xbfa   :  { %2720 = vmatpush3.msra.mxu0 %v3369_v16 }
 0xbfb   :  { %2721 = vmatprep.subr.mxu0 %v3230_v6 }
 0xbfc   :  { %2722 = vmatpush3.msra.mxu0 %v3372_v18 }
 0xbfd   :  { %2723 = vmatprep.subr.mxu0 %v3230_v6 }
 0xbfe   :  { %2724 = vmatpush3.msra.mxu0 %v3380_v21 }
 0xbff   :  { %2725 = vmatprep.subr.mxu0 %v3230_v6 }
 0xc00   :  { %2726 = vmatpush3.msra.mxu0 %v3384_v22 }
 0xc01   :  { %2727 = vmatprep.subr.mxu0 %v3230_v6 }
 0xc02   :  { %2728 = vmatpush3.msra.mxu0 %v3390_v23 }
 0xcb3   :  { %v862_v50 = vpop.f32.mrf.mxu0 }
 0xcb4   :  { %v863_v52 = vadd.f32 %v862_v50, %v3453_v51 }
 0xcb5   :  { %v2693_v53 = vpop.f32.mrf.mxu0 }
 0xcb6   :  { %2968 = vtanh.f32 %v863_v52  ;;  %v2406_v55 = vmul.f32 -1.442695, %v863_v52 }
 0xcb8   :  { %2970 = vpow2.f32 %v2406_v55 }
 0xcc3   :  { %v2969_v54 = vpop.eup %2968 }
 0xcc4   :  { %875 = vrot.lane.b32.xlu0 %v2969_v54, %s3233_s4 }
 0xcc5   :  { %v2971_v56 = vpop.eup %2970 }
 0xcc6   :  { %v869_v57 = vadd.f32 1.0, %v2971_v56 }
 0xcc8   :  { %2972 = vrcp.f32 %v869_v57 }
 0xcd5   :  { %v2973_v58 = vpop.eup %2972 }
 0xcd6   :  { %v873_v1 = vmul.f32 %v2973_v58, %v771_v43 }
 0xd36   :  { %v876_v59 = vpop.permute.xlu0 %875 }
 0xd37   :  { %v878_v61 = vmul.f32 %v2973_v58, %v876_v59 }
 0xd39   :  { %880 = vrot.lane.b32.xlu1 %v878_v61, %s3234_s5 }
 0xdab   :  { %v881_v2 = vpop.permute.xlu1 %880 }
 0xdac   :  { %v883_v4 = vadd.f32 %v881_v2, %v873_v1 }
 0xdae   :  { %2974 = vtanh.f32 %v883_v4 }
 0xdbb   :  { %v2975_v51 = vpop.eup %2974 }
 0xdbc   :  { %886 = vrot.lane.b32.xlu0 %v2975_v51, %s3233_s4 }
 0xe2e   :  { %v887_v5 = vpop.permute.xlu0 %886 }
 0xe2f   :  { %v889_v7 = vmul.f32 %v2973_v58, %v887_v5 }
 0xe31   :  { %895 = vrot.lane.b32.xlu0 %v889_v7, %s3233_s4  ;;  %891 = vrot.lane.b32.xlu1 %v889_v7, %s3234_s5 }
 0xea3   :  { %v896_v9 = vpop.permute.xlu0 %895  ;;  %v892_v10 = vpop.permute.xlu1 %891 }
 0xea4   :  { %898 = vst.msk [vmem:[#allocation2 + $0x4] sm:$0xc] %vm447_vm10, %v896_v9  ;;  %v905_v12 = vsel %vm232_vm8, %v892_v10, %v896_v9  ;;  %v1253_v9 = vld [vmem:[%s3981_s6 + $0x70] sm:$0xff] }
 0xea5   :  { %894 = vst.msk [vmem:[#allocation2 + $0x8] sm:$0x3] %vm442_vm11, %v892_v10  ;;  %v906_v13 = vmul.f32 %v3393_v24, %v905_v12  ;;  %v1252_v10 = vld [vmem:[%s3981_s6 + $0x68] sm:$0xff]  ;;  %v1251_v12 = vld [vmem:[%s3981_s6 + $0x60] sm:$0xff] }
 0xea7   :  { %2711 = vmatmul.mubr.msk.f32.vlgmr.msra.gmra.mxu1 %vm340_vm7, %v906_v13  ;;  %v1250_v13 = vld [vmem:[%s3981_s6 + $0x58] sm:$0xff] }
 0xea8   :  { %2733 = vmatpush3.msra.mxu1 %v3342_v8  ;;  %2748 = vmatprep.mubr.msk.f32.mxu1 %vm3231_vm4, %v3230_v6 }
 0xea9   :  { %2734 = vmatprep.subr.mxu1 %v3230_v6 }
 0xeaa   :  { %2735 = vmatpush3.msra.mxu1 %v3352_v11 }
 0xeab   :  { %2736 = vmatprep.subr.mxu1 %v3230_v6 }
 0xeac   :  { %2737 = vmatpush3.msra.mxu1 %v3362_v14 }
 0xead   :  { %2738 = vmatprep.subr.mxu1 %v3230_v6 }
 0xeae   :  { %2739 = vmatpush3.msra.mxu1 %v3369_v16 }
 0xeaf   :  { %2740 = vmatprep.subr.mxu1 %v3230_v6 }
 0xeb0   :  { %2741 = vmatpush3.msra.mxu1 %v3372_v18 }
 0xeb1   :  { %2742 = vmatprep.subr.mxu1 %v3230_v6 }
 0xeb2   :  { %2743 = vmatpush3.msra.mxu1 %v3380_v21 }
 0xeb3   :  { %2744 = vmatprep.subr.mxu1 %v3230_v6 }
 0xeb4   :  { %2745 = vmatpush3.msra.mxu1 %v3384_v22 }
 0xeb5   :  { %2746 = vmatprep.subr.mxu1 %v3230_v6 }
 0xeb6   :  { %2747 = vmatpush3.msra.mxu1 %v3390_v23 }
 0xeb7   :  { %2751 = vmatprep.subr.mxu1 %v3230_v6 }
 0xf67   :  { %v976_v8 = vpop.f32.mrf.mxu1 }
 0xf68   :  { %v977_v11 = vadd.f32 %v976_v8, %v3459_v62  ;;  %v1249_v8 = vld [vmem:[%s3981_s6 + $0x50] sm:$0xff] }
 0xf69   :  { %v2712_v14 = vpop.f32.mrf.mxu1 }
 0xf6a   :  { %2976 = vtanh.f32 %v977_v11  ;;  %v2408_v18 = vmul.f32 -1.442695, %v977_v11  ;;  %v1248_v11 = vld [vmem:[%s3981_s6 + $0x48] sm:$0xff]  ;;  %v1247_v14 = vld [vmem:[%s3981_s6 + $0x40] sm:$0xff] }
 0xf6c   :  { %2978 = vpow2.f32 %v2408_v18  ;;  %v1246_v18 = vld [vmem:[%s3981_s6 + $0x38] sm:$0xff] }
 0xf77   :  { %v2977_v16 = vpop.eup %2976 }
 0xf78   :  { %989 = vrot.lane.b32.xlu1 %v2977_v16, %s3233_s4 }
 0xf79   :  { %v2979_v21 = vpop.eup %2978 }
 0xf7a   :  { %v983_v60 = vadd.f32 1.0, %v2979_v21  ;;  %v1245_v21 = vld [vmem:[%s3981_s6 + $0x30] sm:$0xff] }
 0xf7c   :  { %2980 = vrcp.f32 %v983_v60  ;;  %v1244_v60 = vld [vmem:[%s3981_s6 + $0x28] sm:$0xff] }
 0xf89   :  { %v2981_v22 = vpop.eup %2980 }
 0xf8a   :  { %v987_v23 = vmul.f32 %v2981_v22, %v883_v4 }
 0xfea   :  { %v990_v15 = vpop.permute.xlu1 %989 }
 0xfeb   :  { %v992_v17 = vmul.f32 %v2981_v22, %v990_v15  ;;  %v1243_v15 = vld [vmem:[%s3981_s6 + $0x20] sm:$0xff] }
 0xfed   :  { %994 = vrot.lane.b32.xlu0 %v992_v17, %s3234_s5  ;;  %v1242_v17 = vld [vmem:[%s3981_s6 + $0x18] sm:$0xff] }
0x105f   :  { %v995_v20 = vpop.permute.xlu0 %994 }
0x1060   :  { %v997_v26 = vadd.f32 %v995_v20, %v987_v23  ;;  %v3685_v23 = vld [vmem:[#allocation10 + $0x30] sm:$0xff]  ;;  %v1241_v20 = vld [vmem:[%s3981_s6 + $0x10] sm:$0xff] }
0x1062   :  { %2982 = vtanh.f32 %v997_v26 }
0x106f   :  { %v2983_v62 = vpop.eup %2982 }
0x1070   :  { %1000 = vrot.lane.b32.xlu1 %v2983_v62, %s3233_s4  ;;  %v1240_v62 = vld [vmem:[%s3981_s6 + $0x8] sm:$0xff] }
0x10e2   :  { %v1001_v27 = vpop.permute.xlu1 %1000 }
0x10e3   :  { %v1003_v28 = vmul.f32 %v2981_v22, %v1001_v27  ;;  %v3676_v22 = vld [vmem:[#allocation10 + $0x38] sm:$0xff]  ;;  %v1239_v27 = vld [vmem:[%s3981_s6] sm:$0xff] }
0x10e5   :  { %1009 = vrot.lane.b32.xlu1 %v1003_v28, %s3233_s4  ;;  %1005 = vrot.lane.b32.xlu0 %v1003_v28, %s3234_s5  ;;  %v3703_v28 = vld [vmem:[#allocation10 + $0x20] sm:$0xff] }
0x1157   :  { %v1010_v29 = vpop.permute.xlu1 %1009  ;;  %v1006_v30 = vpop.permute.xlu0 %1005 }
0x1158   :  { %1012 = vst.msk [vmem:[#allocation2 + $0x2] sm:$0xc] %vm447_vm10, %v1010_v29  ;;  %v1016_v31 = vsel %vm232_vm8, %v1006_v30, %v1010_v29  ;;  %v3705_v29 = vld [vmem:[#allocation10 + $0x18] sm:$0xff] }
0x1159   :  { %1008 = vst.msk [vmem:[#allocation2 + $0xa] sm:$0x3] %vm442_vm11, %v1006_v30  ;;  %v1017_v32 = vmul.f32 %v3393_v24, %v1016_v31 }
0x115b   :  { %2730 = vmatmul.mubr.msk.f32.vlgmr.msra.gmra.mxu0 %vm340_vm7, %v1017_v32  ;;  %v3712_v32 = vld [vmem:[#allocation10 + $0x10] sm:$0xff] }
0x115c   :  { %1337 = vmatprep.mubr.f32.mxu0 %v3230_v6 }
0x121b   :  { %v1087_v33 = vpop.f32.mrf.mxu0 }
0x121c   :  { %v1088_v34 = vadd.f32 %v1087_v33, %v3462_v63  ;;  %v3716_v33 = vld [vmem:[#allocation10 + $0x8] sm:$0xff] }
0x121d   :  { %v2731_v36 = vpop.f32.mrf.mxu0 }
0x121e   :  { %2984 = vtanh.f32 %v1088_v34  ;;  %v2410_v39 = vmul.f32 -1.442695, %v1088_v34  ;;  %v3720_v34 = vld [vmem:[#allocation10] sm:$0xff] }
0x1220   :  { %2986 = vpow2.f32 %v2410_v39 }
0x122b   :  { %v2985_v38 = vpop.eup %2984 }
0x122c   :  { %1100 = vrot.lane.b32.xlu0 %v2985_v38, %s3233_s4 }
0x122d   :  { %v2987_v40 = vpop.eup %2986 }
0x122e   :  { %v1094_v41 = vadd.f32 1.0, %v2987_v40 }
0x1230   :  { %2988 = vrcp.f32 %v1094_v41 }
0x123d   :  { %v2989_v42 = vpop.eup %2988 }
0x123e   :  { %v1098_v44 = vmul.f32 %v2989_v42, %v997_v26  ;;  %v3691_v26 = vld [vmem:[#allocation10 + $0x28] sm:$0xff] }
0x129e   :  { %v1101_v43 = vpop.permute.xlu0 %1100 }
0x129f   :  { %v1103_v3 = vmul.f32 %v2989_v42, %v1101_v43 }
0x12a1   :  { %1105 = vrot.lane.b32.xlu1 %v1103_v3, %s3234_s5 }
0x1313   :  { %v1106_v45 = vpop.permute.xlu1 %1105 }
0x1314   :  { %v1108_v46 = vadd.f32 %v1106_v45, %v1098_v44 }
0x1316   :  { %2990 = vtanh.f32 %v1108_v46 }
0x1323   :  { %v2991_v63 = vpop.eup %2990 }
0x1324   :  { %1111 = vrot.lane.b32.xlu0 %v2991_v63, %s3233_s4 }
0x1396   :  { %v1112_v47 = vpop.permute.xlu0 %1111 }
0x1397   :  { %v1114_v48 = vmul.f32 %v2989_v42, %v1112_v47  ;;  %v1255_v42 = vld [vmem:[%s3982_s7] sm:$0x3]  ;;  %s3235_s7 = smov [#allocation15]  }
0x1398   :  { %v1260_v43 = vrot.slane %v1255_v42, %v224_v35  ;;  %v1264_v3 = vrot.slane %v1255_v42, %v228_v37 }
0x1399   :  { %1120 = vrot.lane.b32.xlu0 %v1114_v48, %s3233_s4  ;;  %1116 = vrot.lane.b32.xlu1 %v1114_v48, %s3234_s5 }
0x140b   :  { %v1121_v49 = vpop.permute.xlu0 %1120  ;;  %v1117_v50 = vpop.permute.xlu1 %1116 }
0x140c   :  { %1123 = vst.msk [vmem:[#allocation2] sm:$0xc] %vm447_vm10, %v1121_v49  ;;  %v1129_v52 = vsel %vm232_vm8, %v1117_v50, %v1121_v49 }
0x140d   :  { %1119 = vst.msk [vmem:[#allocation2 + $0xc] sm:$0x3] %vm442_vm11, %v1117_v50  ;;  %v1130_v53 = vmul.f32 %v3393_v24, %v1129_v52 }
0x140f   :  { %2749 = vmatmul.mubr.msk.f32.vlgmr.msra.gmra.mxu1 %vm340_vm7, %v1130_v53 }
0x1410   :  { %2767 = vmatprep.mubr.msk.f32.mxu1 %vm3231_vm4, %v3230_v6  ;;  %2752 = vmatpush3.msra.mxu1 %v3676_v22 }
0x1411   :  { %2753 = vmatprep.subr.mxu1 %v3230_v6 }
0x1412   :  { %2754 = vmatpush3.msra.mxu1 %v3685_v23 }
0x1413   :  { %2755 = vmatprep.subr.mxu1 %v3230_v6 }
0x1414   :  { %2756 = vmatpush3.msra.mxu1 %v3691_v26 }
0x1415   :  { %2757 = vmatprep.subr.mxu1 %v3230_v6 }
0x1416   :  { %2758 = vmatpush3.msra.mxu1 %v3703_v28 }
0x1417   :  { %2759 = vmatprep.subr.mxu1 %v3230_v6 }
0x1418   :  { %2760 = vmatpush3.msra.mxu1 %v3705_v29 }
0x1419   :  { %2761 = vmatprep.subr.mxu1 %v3230_v6 }
0x141a   :  { %2762 = vmatpush3.msra.mxu1 %v3712_v32 }
0x141b   :  { %2763 = vmatprep.subr.mxu1 %v3230_v6 }
0x141c   :  { %2764 = vmatpush3.msra.mxu1 %v3716_v33 }
0x141d   :  { %2765 = vmatprep.subr.mxu1 %v3230_v6 }
0x141e   :  { %2766 = vmatpush3.msra.mxu1 %v3720_v34 }
0x141f   :  { %2768 = vmatmul.mubr.msk.f32.vlgmr.msra.gmra.mxu1 %vm340_vm7, %v3397_v25  ;;  %2789 = vmatprep.subr.mxu1 %v3230_v6 }
0x1420   :  { %2790 = vmatpush3.msra.mxu1 %v3676_v22  ;;  %2805 = vmatprep.mubr.msk.f32.mxu1 %vm3231_vm4, %v3230_v6 }
0x1421   :  { %2791 = vmatprep.subr.mxu1 %v3230_v6 }
0x1422   :  { %2792 = vmatpush3.msra.mxu1 %v3685_v23 }
0x1423   :  { %2793 = vmatprep.subr.mxu1 %v3230_v6 }
0x1424   :  { %2794 = vmatpush3.msra.mxu1 %v3691_v26 }
0x1425   :  { %2795 = vmatprep.subr.mxu1 %v3230_v6 }
0x1426   :  { %2796 = vmatpush3.msra.mxu1 %v3703_v28 }
0x1427   :  { %2797 = vmatprep.subr.mxu1 %v3230_v6 }
0x1428   :  { %2798 = vmatpush3.msra.mxu1 %v3705_v29 }
0x1429   :  { %2799 = vmatprep.subr.mxu1 %v3230_v6 }
0x142a   :  { %2800 = vmatpush3.msra.mxu1 %v3712_v32 }
0x142b   :  { %2801 = vmatprep.subr.mxu1 %v3230_v6 }
0x142c   :  { %2802 = vmatpush3.msra.mxu1 %v3716_v33 }
0x142d   :  { %2803 = vmatprep.subr.mxu1 %v3230_v6 }
0x142e   :  { %2804 = vmatpush3.msra.mxu1 %v3720_v34 }
0x142f   :  { %2827 = vmatprep.subr.mxu1 %v3230_v6 }
0x14cf   :  { %v1200_v54 = vpop.f32.mrf.mxu1 }
0x14d0   :  { %v1201_v55 = vadd.f32 %v1200_v54, %v3465_v0  ;;  %v1254_v0 = vld [vmem:[%s3981_s6 + $0x78] sm:$0xff] }
0x14d1   :  { %v2750_v56 = vpop.f32.mrf.mxu1  ;;  %1289 = vmatprep.subr.mxu0 %v1254_v0 }
0x14d2   :  { %2992 = vtanh.f32 %v1201_v55  ;;  %v2412_v58 = vmul.f32 -1.442695, %v1201_v55  ;;  %1290 = vmatpush1.msra.mxu0 %v1253_v9 }
0x14d3   :  { %1291 = vmatprep.subr.mxu0 %v1252_v10 }
0x14d4   :  { %2994 = vpow2.f32 %v2412_v58  ;;  %1292 = vmatpush1.msra.mxu0 %v1251_v12 }
0x14d5   :  { %1293 = vmatprep.subr.mxu0 %v1250_v13 }
0x14d6   :  { %1294 = vmatpush1.msra.mxu0 %v1249_v8 }
0x14d7   :  { %1295 = vmatprep.subr.mxu0 %v1248_v11 }
0x14d8   :  { %1296 = vmatpush1.msra.mxu0 %v1247_v14 }
0x14d9   :  { %1297 = vmatprep.subr.mxu0 %v1246_v18 }
0x14da   :  { %1298 = vmatpush1.msra.mxu0 %v1245_v21 }
0x14db   :  { %1299 = vmatprep.subr.mxu0 %v1244_v60 }
0x14dc   :  { %1300 = vmatpush1.msra.mxu0 %v1243_v15 }
0x14dd   :  { %1301 = vmatprep.subr.mxu0 %v1242_v17 }
0x14de   :  { %1302 = vmatpush1.msra.mxu0 %v1241_v20 }
0x14df   :  { %v2993_v57 = vpop.eup %2992  ;;  %1303 = vmatprep.subr.mxu0 %v1240_v62  ;;  %v1428_v40 = vpop.f32.mrf.mxu1 }
0x14e0   :  { %1213 = vrot.lane.b32.xlu1 %v2993_v57, %s3233_s4  ;;  %1304 = vmatpush1.msra.mxu0 %v1239_v27 }
0x14e1   :  { %v2995_v59 = vpop.eup %2994  ;;  %2770 = vmatprep.subr.mxu0 %v3230_v6  ;;  %v2769_v41 = vpop.f32.mrf.mxu1 }
0x14e2   :  { %v1207_v61 = vadd.f32 1.0, %v2995_v59 }
0x14e4   :  { %2996 = vrcp.f32 %v1207_v61 }
0x14f1   :  { %v2997_v1 = vpop.eup %2996 }
0x14f2   :  { %v1211_v51 = vmul.f32 %v2997_v1, %v1108_v46 }
0x1552   :  { %v1214_v2 = vpop.permute.xlu1 %1213 }
0x1553   :  { %v1216_v4 = vmul.f32 %v2997_v1, %v1214_v2 }
0x1555   :  { %1218 = vrot.lane.b32.xlu0 %v1216_v4, %s3234_s5 }
0x15c7   :  { %v1219_v5 = vpop.permute.xlu0 %1218 }
0x15c8   :  { %v1221_v7 = vadd.f32 %v1219_v5, %v1211_v51 }
0x15ca   :  { %2998 = vtanh.f32 %v1221_v7 }
0x15d7   :  { %v2999_v16 = vpop.eup %2998 }
0x15d8   :  { %1224 = vrot.lane.b32.xlu1 %v2999_v16, %s3233_s4 }
0x164a   :  { %v1225_v30 = vpop.permute.xlu1 %1224 }
0x164b   :  { %v1227_v31 = vmul.f32 %v2997_v1, %v1225_v30 }
0x164d   :  { %1229 = vrot.lane.b32.xlu1 %v1227_v31, %s3234_s5  ;;  %1233 = vrot.lane.b32.xlu0 %v1227_v31, %s3233_s4 }
0x16bf   :  { %v1230_v25 = vpop.permute.xlu1 %1229  ;;  %v1234_v36 = vpop.permute.xlu0 %1233 }
0x16c0   :  { %1232 = vst.msk [vmem:[#allocation2 + $0xe] sm:$0x3] %vm442_vm11, %v1230_v25 }
0x16c1   :  { %1236 = vst.msk [vmem:[#allocation2 - $0x2] sm:$0xc] %vm447_vm10, %v1234_v36 }
0x16c7   :  { %v1238_v39 = vld [vmem:[#allocation2 + $0x8] sm:$0xff] }
0x16c8   :  { %v1237_v38 = vld [vmem:[#allocation2] sm:$0xff] }
0x16c9   :  { %2413 = vmatmul.mubr.msk.f32.vlgmr.msra.gmra.mxu0 %vm340_vm7, %v1237_v38 }
0x16ca   :  { %1343 = vmatprep.mubr.f32.mxu0 %v3230_v6  ;;  %2771 = vmatpush3.msra.mxu0 %v3676_v22 }
0x16cb   :  { %2772 = vmatprep.subr.mxu0 %v3230_v6 }
0x16cc   :  { %2773 = vmatpush3.msra.mxu0 %v3685_v23 }
0x16cd   :  { %2414 = vmatmul.mubr.msk.f32.gmra.mxu0 %vm340_vm7, %v1238_v39  ;;  %2774 = vmatprep.subr.mxu0 %v3230_v6 }
0x16ce   :  { %2775 = vmatpush3.msra.mxu0 %v3691_v26  ;;  %2786 = vmatprep.mubr.msk.f32.mxu0 %vm3231_vm4, %v3230_v6 }
0x16cf   :  { %2776 = vmatprep.subr.mxu0 %v3230_v6 }
0x16d0   :  { %2777 = vmatpush3.msra.mxu0 %v3703_v28 }
0x16d1   :  { %2778 = vmatprep.subr.mxu0 %v3230_v6 }
0x16d2   :  { %2779 = vmatpush3.msra.mxu0 %v3705_v29 }
0x16d3   :  { %2780 = vmatprep.subr.mxu0 %v3230_v6 }
0x16d4   :  { %2781 = vmatpush3.msra.mxu0 %v3712_v32 }
0x16d5   :  { %2782 = vmatprep.subr.mxu0 %v3230_v6 }
0x16d6   :  { %2783 = vmatpush3.msra.mxu0 %v3716_v33 }
0x16d7   :  { %2784 = vmatprep.subr.mxu0 %v3230_v6 }
0x16d8   :  { %2785 = vmatpush3.msra.mxu0 %v3720_v34 }
0x16d9   :  { %2808 = vmatprep.subr.mxu0 %v3230_v6 }
0x1789   :  { %v1339_v44 = vpop.f32.mrf.mxu0 }
0x178a   :  { %v1340_v45 = vadd.f32 %v1339_v44, %v1260_v43 }
0x178b   :  { %v1341_v46 = vpop.f32.mrf.mxu0 }
0x178c   :  { %v1342_v63 = vadd.f32 %v1341_v46, %v1264_v3  ;;  %v1466_v52 = vrot.slane %v1340_v45, 2  ;;  %v1579_v53 = vrot.slane %v1340_v45, 4  ;;  %v1690_v35 = vrot.slane %v1340_v45, 6 }
0x178d   :  { %v1345_v47 = vpop.f32.mrf.mxu0 }
0x178e   :  { %v1346_v48 = vadd.f32 %v1345_v47, %v1260_v43  ;;  %v1804_v49 = vrot.slane %v1342_v63, 4  ;;  %v1918_v58 = vrot.slane %v1342_v63, 2  ;;  %v2142_v37 = vrot.slane %v1342_v63, 6 }
0x178f   :  { %v1347_v50 = vpop.f32.mrf.mxu0 }
0x1790   :  { %v1348_v54 = vadd.f32 %v1347_v50, %v1264_v3  ;;  %v3777_v55 = vsel %vm337_vm9, %v1346_v48, %v1804_v49  ;;  %v1916_v56 = vrot.slane %v1346_v48, 2  ;;  %v2029_v57 = vrot.slane %v1346_v48, 4 }
0x1791   :  { %v2140_v19 = vrot.slane %v1346_v48, 6 }
0x1792   :  { %v1359_v59 = vrot.slane %v1348_v54, 4  ;;  %v1468_v61 = vrot.slane %v1348_v54, 2  ;;  %v3780_v1 = vsel %vm337_vm9, %v1579_v53, %v1348_v54  ;;  %v1692_v2 = vrot.slane %v1348_v54, 6 }
0x1793   :  { %v3783_v4 = vsel %vm337_vm9, %v1916_v56, %v1918_v58  ;;  %v3786_v51 = vsel %vm337_vm9, %v2029_v57, %v1342_v63  ;;  %v3789_v5 = vsel %vm337_vm9, %v2140_v19, %v2142_v37 }
0x1794   :  { %v1361_v7 = vsel %vm337_vm9, %v1340_v45, %v1359_v59  ;;  %v1470_v0 = vsel %vm337_vm9, %v1466_v52, %v1468_v61  ;;  %v3794_v9 = vsel %vm337_vm9, %v1690_v35, %v1692_v2 }
0x1795   :  { %v1429_v10 = vadd.f32 %v1428_v40, %v1361_v7 }
0x1797   :  { %3000 = vtanh.f32 %v1429_v10  ;;  %v2416_v13 = vmul.f32 -1.442695, %v1429_v10 }
0x1799   :  { %3002 = vpow2.f32 %v2416_v13 }
0x17a4   :  { %v3001_v12 = vpop.eup %3000 }
0x17a5   :  { %1441 = vrot.lane.b32.xlu0 %v3001_v12, %s3233_s4 }
0x17a6   :  { %v3003_v8 = vpop.eup %3002 }
0x17a7   :  { %v1435_v11 = vadd.f32 1.0, %v3003_v8 }
0x17a9   :  { %3004 = vrcp.f32 %v1435_v11 }
0x17b6   :  { %v3005_v14 = vpop.eup %3004 }
0x17b7   :  { %v1439_v21 = vmul.f32 0.0, %v3005_v14 }
0x1817   :  { %v1442_v16 = vpop.permute.xlu0 %1441 }
0x1818   :  { %v1444_v18 = vmul.f32 %v3005_v14, %v1442_v16 }
0x181a   :  { %1446 = vrot.lane.b32.xlu1 %v1444_v18, %s3234_s5 }
0x188c   :  { %v1447_v60 = vpop.permute.xlu1 %1446 }
0x188d   :  { %v1449_v15 = vadd.f32 %v1447_v60, %v1439_v21 }
0x188f   :  { %3006 = vtanh.f32 %v1449_v15 }
0x189c   :  { %v3007_v17 = vpop.eup %3006 }
0x189d   :  { %1452 = vrot.lane.b32.xlu0 %v3007_v17, %s3233_s4 }
0x190f   :  { %v1453_v20 = vpop.permute.xlu0 %1452 }
0x1910   :  { %v1455_v62 = vmul.f32 %v3005_v14, %v1453_v20 }
0x1912   :  { %1461 = vrot.lane.b32.xlu0 %v1455_v62, %s3233_s4  ;;  %1457 = vrot.lane.b32.xlu1 %v1455_v62, %s3234_s5 }
0x1984   :  { %v1462_v27 = vpop.permute.xlu0 %1461  ;;  %v1458_v30 = vpop.permute.xlu1 %1457 }
0x1985   :  { %1464 = vst.msk [vmem:[#allocation3 + $0xc] sm:$0xc] %vm447_vm10, %v1462_v27  ;;  %v1471_v31 = vsel %vm232_vm8, %v1458_v30, %v1462_v27 }
0x1986   :  { %1460 = vst.msk [vmem:[#allocation3] sm:$0x3] %vm442_vm11, %v1458_v30  ;;  %v1472_v25 = vmul.f32 %v3393_v24, %v1471_v31 }
0x1988   :  { %2787 = vmatmul.mubr.msk.f32.vlgmr.msra.gmra.mxu0 %vm340_vm7, %v1472_v25 }
0x1989   :  { %2809 = vmatpush3.msra.mxu0 %v3676_v22  ;;  %2824 = vmatprep.mubr.msk.f32.mxu0 %vm3231_vm4, %v3230_v6 }
0x198a   :  { %2810 = vmatprep.subr.mxu0 %v3230_v6 }
0x198b   :  { %2811 = vmatpush3.msra.mxu0 %v3685_v23 }
0x198c   :  { %2812 = vmatprep.subr.mxu0 %v3230_v6 }
0x198d   :  { %2813 = vmatpush3.msra.mxu0 %v3691_v26 }
0x198e   :  { %2814 = vmatprep.subr.mxu0 %v3230_v6 }
0x198f   :  { %2815 = vmatpush3.msra.mxu0 %v3703_v28 }
0x1990   :  { %2816 = vmatprep.subr.mxu0 %v3230_v6 }
0x1991   :  { %2817 = vmatpush3.msra.mxu0 %v3705_v29 }
0x1992   :  { %2818 = vmatprep.subr.mxu0 %v3230_v6 }
0x1993   :  { %2819 = vmatpush3.msra.mxu0 %v3712_v32 }
0x1994   :  { %2820 = vmatprep.subr.mxu0 %v3230_v6 }
0x1995   :  { %2821 = vmatpush3.msra.mxu0 %v3716_v33 }
0x1996   :  { %2822 = vmatprep.subr.mxu0 %v3230_v6 }
0x1997   :  { %2823 = vmatpush3.msra.mxu0 %v3720_v34 }
0x1998   :  { %2846 = vmatprep.subr.mxu0 %v3230_v6 }
0x1a48   :  { %v1542_v36 = vpop.f32.mrf.mxu0 }
0x1a49   :  { %v1543_v38 = vadd.f32 %v1542_v36, %v1470_v0 }
0x1a4a   :  { %v2788_v39 = vpop.f32.mrf.mxu0 }
0x1a4b   :  { %3008 = vtanh.f32 %v1543_v38  ;;  %v2418_v41 = vmul.f32 -1.442695, %v1543_v38 }
0x1a4d   :  { %3010 = vpow2.f32 %v2418_v41 }
0x1a58   :  { %v3009_v40 = vpop.eup %3008 }
0x1a59   :  { %1555 = vrot.lane.b32.xlu1 %v3009_v40, %s3233_s4 }
0x1a5a   :  { %v3011_v42 = vpop.eup %3010 }
0x1a5b   :  { %v1549_v43 = vadd.f32 1.0, %v3011_v42 }
0x1a5d   :  { %3012 = vrcp.f32 %v1549_v43 }
0x1a6a   :  { %v3013_v3 = vpop.eup %3012 }
0x1a6b   :  { %v1553_v46 = vmul.f32 %v3013_v3, %v1449_v15 }
0x1acb   :  { %v1556_v44 = vpop.permute.xlu1 %1555 }
0x1acc   :  { %v1558_v45 = vmul.f32 %v3013_v3, %v1556_v44 }
0x1ace   :  { %1560 = vrot.lane.b32.xlu0 %v1558_v45, %s3234_s5 }
0x1b40   :  { %v1561_v63 = vpop.permute.xlu0 %1560 }
0x1b41   :  { %v1563_v47 = vadd.f32 %v1561_v63, %v1553_v46 }
0x1b43   :  { %3014 = vtanh.f32 %v1563_v47 }
0x1b50   :  { %v3015_v48 = vpop.eup %3014 }
0x1b51   :  { %1566 = vrot.lane.b32.xlu1 %v3015_v48, %s3233_s4 }
0x1bc3   :  { %v1567_v49 = vpop.permute.xlu1 %1566 }
0x1bc4   :  { %v1569_v50 = vmul.f32 %v3013_v3, %v1567_v49 }
0x1bc6   :  { %1575 = vrot.lane.b32.xlu1 %v1569_v50, %s3233_s4  ;;  %1571 = vrot.lane.b32.xlu0 %v1569_v50, %s3234_s5 }
0x1c38   :  { %v1576_v52 = vpop.permute.xlu1 %1575  ;;  %v1572_v53 = vpop.permute.xlu0 %1571 }
0x1c39   :  { %1578 = vst.msk [vmem:[#allocation3 + $0xa] sm:$0xc] %vm447_vm10, %v1576_v52  ;;  %v1582_v54 = vsel %vm232_vm8, %v1572_v53, %v1576_v52 }
0x1c3a   :  { %1574 = vst.msk [vmem:[#allocation3 + $0x2] sm:$0x3] %vm442_vm11, %v1572_v53  ;;  %v1583_v56 = vmul.f32 %v3393_v24, %v1582_v54 }
0x1c3c   :  { %2806 = vmatmul.mubr.msk.f32.vlgmr.msra.gmra.mxu1 %vm340_vm7, %v1583_v56 }
0x1c3d   :  { %2828 = vmatpush3.msra.mxu1 %v3676_v22  ;;  %2843 = vmatprep.mubr.msk.f32.mxu1 %vm3231_vm4, %v3230_v6 }
0x1c3e   :  { %2829 = vmatprep.subr.mxu1 %v3230_v6 }
0x1c3f   :  { %2830 = vmatpush3.msra.mxu1 %v3685_v23 }
0x1c40   :  { %2831 = vmatprep.subr.mxu1 %v3230_v6 }
0x1c41   :  { %2832 = vmatpush3.msra.mxu1 %v3691_v26 }
0x1c42   :  { %2833 = vmatprep.subr.mxu1 %v3230_v6 }
0x1c43   :  { %2834 = vmatpush3.msra.mxu1 %v3703_v28 }
0x1c44   :  { %2835 = vmatprep.subr.mxu1 %v3230_v6 }
0x1c45   :  { %2836 = vmatpush3.msra.mxu1 %v3705_v29 }
0x1c46   :  { %2837 = vmatprep.subr.mxu1 %v3230_v6 }
0x1c47   :  { %2838 = vmatpush3.msra.mxu1 %v3712_v32 }
0x1c48   :  { %2839 = vmatprep.subr.mxu1 %v3230_v6 }
0x1c49   :  { %2840 = vmatpush3.msra.mxu1 %v3716_v33 }
0x1c4a   :  { %2841 = vmatprep.subr.mxu1 %v3230_v6 }
0x1c4b   :  { %2842 = vmatpush3.msra.mxu1 %v3720_v34 }
0x1c4c   :  { %2865 = vmatprep.subr.mxu1 %v3230_v6 }
0x1cfc   :  { %v1653_v57 = vpop.f32.mrf.mxu1 }
0x1cfd   :  { %v1654_v35 = vadd.f32 %v1653_v57, %v3780_v1 }
0x1cfe   :  { %v2807_v58 = vpop.f32.mrf.mxu1 }
0x1cff   :  { %3016 = vtanh.f32 %v1654_v35  ;;  %v2420_v37 = vmul.f32 -1.442695, %v1654_v35 }
0x1d01   :  { %3018 = vpow2.f32 %v2420_v37 }
0x1d0c   :  { %v3017_v19 = vpop.eup %3016 }
0x1d0d   :  { %1666 = vrot.lane.b32.xlu0 %v3017_v19, %s3233_s4 }
0x1d0e   :  { %v3019_v59 = vpop.eup %3018 }
0x1d0f   :  { %v1660_v61 = vadd.f32 1.0, %v3019_v59 }
0x1d11   :  { %3020 = vrcp.f32 %v1660_v61 }
0x1d1e   :  { %v3021_v2 = vpop.eup %3020 }
0x1d1f   :  { %v1664_v10 = vmul.f32 %v3021_v2, %v1563_v47 }
0x1d7f   :  { %v1667_v7 = vpop.permute.xlu0 %1666 }
0x1d80   :  { %v1669_v0 = vmul.f32 %v3021_v2, %v1667_v7 }
0x1d82   :  { %1671 = vrot.lane.b32.xlu1 %v1669_v0, %s3234_s5 }
0x1df4   :  { %v1672_v12 = vpop.permute.xlu1 %1671 }
0x1df5   :  { %v1674_v13 = vadd.f32 %v1672_v12, %v1664_v10 }
0x1df7   :  { %3022 = vtanh.f32 %v1674_v13 }
0x1e04   :  { %v3023_v1 = vpop.eup %3022 }
0x1e05   :  { %1677 = vrot.lane.b32.xlu0 %v3023_v1, %s3233_s4 }
0x1e77   :  { %v1678_v8 = vpop.permute.xlu0 %1677 }
0x1e78   :  { %v1680_v11 = vmul.f32 %v3021_v2, %v1678_v8 }
0x1e7a   :  { %1686 = vrot.lane.b32.xlu0 %v1680_v11, %s3233_s4  ;;  %1682 = vrot.lane.b32.xlu1 %v1680_v11, %s3234_s5 }
0x1eec   :  { %v1687_v14 = vpop.permute.xlu0 %1686  ;;  %v1683_v16 = vpop.permute.xlu1 %1682 }
0x1eed   :  { %1689 = vst.msk [vmem:[#allocation3 + $0x8] sm:$0xc] %vm447_vm10, %v1687_v14  ;;  %v1695_v18 = vsel %vm232_vm8, %v1683_v16, %v1687_v14 }
0x1eee   :  { %1685 = vst.msk [vmem:[#allocation3 + $0x4] sm:$0x3] %vm442_vm11, %v1683_v16  ;;  %v1696_v21 = vmul.f32 %v3393_v24, %v1695_v18 }
0x1ef0   :  { %2825 = vmatmul.mubr.msk.f32.vlgmr.msra.gmra.mxu0 %vm340_vm7, %v1696_v21 }
0x1ef1   :  { %2847 = vmatpush3.msra.mxu0 %v3676_v22  ;;  %2862 = vmatprep.mubr.msk.f32.mxu0 %vm3231_vm4, %v3230_v6 }
0x1ef2   :  { %2848 = vmatprep.subr.mxu0 %v3230_v6 }
0x1ef3   :  { %2849 = vmatpush3.msra.mxu0 %v3685_v23 }
0x1ef4   :  { %2850 = vmatprep.subr.mxu0 %v3230_v6 }
0x1ef5   :  { %2851 = vmatpush3.msra.mxu0 %v3691_v26 }
0x1ef6   :  { %2852 = vmatprep.subr.mxu0 %v3230_v6 }
0x1ef7   :  { %2853 = vmatpush3.msra.mxu0 %v3703_v28 }
0x1ef8   :  { %2854 = vmatprep.subr.mxu0 %v3230_v6 }
0x1ef9   :  { %2855 = vmatpush3.msra.mxu0 %v3705_v29 }
0x1efa   :  { %2856 = vmatprep.subr.mxu0 %v3230_v6 }
0x1efb   :  { %2857 = vmatpush3.msra.mxu0 %v3712_v32 }
0x1efc   :  { %2858 = vmatprep.subr.mxu0 %v3230_v6 }
0x1efd   :  { %2859 = vmatpush3.msra.mxu0 %v3716_v33 }
0x1efe   :  { %2860 = vmatprep.subr.mxu0 %v3230_v6 }
0x1eff   :  { %2861 = vmatpush3.msra.mxu0 %v3720_v34 }
0x1f00   :  { %2884 = vmatprep.subr.mxu0 %v3230_v6 }
0x1fb0   :  { %v1766_v60 = vpop.f32.mrf.mxu0 }
0x1fb1   :  { %v1767_v15 = vadd.f32 %v1766_v60, %v3794_v9 }
0x1fb2   :  { %v2826_v17 = vpop.f32.mrf.mxu0 }
0x1fb3   :  { %3024 = vtanh.f32 %v1767_v15  ;;  %v2422_v62 = vmul.f32 -1.442695, %v1767_v15 }
0x1fb5   :  { %3026 = vpow2.f32 %v2422_v62 }
0x1fc0   :  { %v3025_v20 = vpop.eup %3024 }
0x1fc1   :  { %1779 = vrot.lane.b32.xlu1 %v3025_v20, %s3233_s4 }
0x1fc2   :  { %v3027_v27 = vpop.eup %3026 }
0x1fc3   :  { %v1773_v30 = vadd.f32 1.0, %v3027_v27 }
0x1fc5   :  { %3028 = vrcp.f32 %v1773_v30 }
0x1fd2   :  { %v3029_v31 = vpop.eup %3028 }
0x1fd3   :  { %v1777_v38 = vmul.f32 %v3029_v31, %v1674_v13 }
0x2033   :  { %v1780_v25 = vpop.permute.xlu1 %1779 }
0x2034   :  { %v1782_v36 = vmul.f32 %v3029_v31, %v1780_v25 }
0x2036   :  { %1784 = vrot.lane.b32.xlu0 %v1782_v36, %s3234_s5 }
0x20a8   :  { %v1785_v39 = vpop.permute.xlu0 %1784 }
0x20a9   :  { %v1787_v40 = vadd.f32 %v1785_v39, %v1777_v38 }
0x20ab   :  { %3030 = vtanh.f32 %v1787_v40 }
0x20b8   :  { %v3031_v9 = vpop.eup %3030 }
0x20b9   :  { %1790 = vrot.lane.b32.xlu1 %v3031_v9, %s3233_s4 }
0x212b   :  { %v1791_v41 = vpop.permute.xlu1 %1790 }
0x212c   :  { %v1793_v42 = vmul.f32 %v3029_v31, %v1791_v41 }
0x212e   :  { %1799 = vrot.lane.b32.xlu1 %v1793_v42, %s3233_s4  ;;  %1795 = vrot.lane.b32.xlu0 %v1793_v42, %s3234_s5 }
0x21a0   :  { %v1800_v43 = vpop.permute.xlu1 %1799  ;;  %v1796_v3 = vpop.permute.xlu0 %1795 }
0x21a1   :  { %1802 = vst.msk [vmem:[#allocation3 + $0x6] sm:$0xc] %vm447_vm10, %v1800_v43  ;;  %v1807_v44 = vsel %vm232_vm8, %v1796_v3, %v1800_v43 }
0x21a2   :  { %1798 = vst.msk [vmem:[#allocation3 + $0x6] sm:$0x3] %vm442_vm11, %v1796_v3  ;;  %v1808_v45 = vmul.f32 %v3393_v24, %v1807_v44 }
0x21a4   :  { %2844 = vmatmul.mubr.msk.f32.vlgmr.msra.gmra.mxu1 %vm340_vm7, %v1808_v45 }
0x21a5   :  { %2866 = vmatpush3.msra.mxu1 %v3676_v22  ;;  %2881 = vmatprep.mubr.msk.f32.mxu1 %vm3231_vm4, %v3230_v6 }
0x21a6   :  { %2867 = vmatprep.subr.mxu1 %v3230_v6 }
0x21a7   :  { %2868 = vmatpush3.msra.mxu1 %v3685_v23 }
0x21a8   :  { %2869 = vmatprep.subr.mxu1 %v3230_v6 }
0x21a9   :  { %2870 = vmatpush3.msra.mxu1 %v3691_v26 }
0x21aa   :  { %2871 = vmatprep.subr.mxu1 %v3230_v6 }
0x21ab   :  { %2872 = vmatpush3.msra.mxu1 %v3703_v28 }
0x21ac   :  { %2873 = vmatprep.subr.mxu1 %v3230_v6 }
0x21ad   :  { %2874 = vmatpush3.msra.mxu1 %v3705_v29 }
0x21ae   :  { %2875 = vmatprep.subr.mxu1 %v3230_v6 }
0x21af   :  { %2876 = vmatpush3.msra.mxu1 %v3712_v32 }
0x21b0   :  { %2877 = vmatprep.subr.mxu1 %v3230_v6 }
0x21b1   :  { %2878 = vmatpush3.msra.mxu1 %v3716_v33 }
0x21b2   :  { %2879 = vmatprep.subr.mxu1 %v3230_v6 }
0x21b3   :  { %2880 = vmatpush3.msra.mxu1 %v3720_v34 }
0x2264   :  { %v1878_v46 = vpop.f32.mrf.mxu1 }
0x2265   :  { %v1879_v63 = vadd.f32 %v1878_v46, %v3777_v55 }
0x2266   :  { %v2845_v47 = vpop.f32.mrf.mxu1 }
0x2267   :  { %3032 = vtanh.f32 %v1879_v63  ;;  %v2424_v49 = vmul.f32 -1.442695, %v1879_v63 }
0x2269   :  { %3034 = vpow2.f32 %v2424_v49 }
0x2274   :  { %v3033_v48 = vpop.eup %3032 }
0x2275   :  { %1891 = vrot.lane.b32.xlu0 %v3033_v48, %s3233_s4 }
0x2276   :  { %v3035_v50 = vpop.eup %3034 }
0x2277   :  { %v1885_v52 = vadd.f32 1.0, %v3035_v50 }
0x2279   :  { %3036 = vrcp.f32 %v1885_v52 }
0x2286   :  { %v3037_v53 = vpop.eup %3036 }
0x2287   :  { %v1889_v57 = vmul.f32 %v3037_v53, %v1787_v40 }
0x22e7   :  { %v1892_v54 = vpop.permute.xlu0 %1891 }
0x22e8   :  { %v1894_v56 = vmul.f32 %v3037_v53, %v1892_v54 }
0x22ea   :  { %1896 = vrot.lane.b32.xlu1 %v1894_v56, %s3234_s5 }
0x235c   :  { %v1897_v35 = vpop.permute.xlu1 %1896 }
0x235d   :  { %v1899_v58 = vadd.f32 %v1897_v35, %v1889_v57  ;;  %v2261_v57 = vld [vmem:[#allocation12 + $0x30] sm:$0xff]  ;;  %v2260_v35 = vld [vmem:[#allocation12 + $0x28] sm:$0xff] }
0x235f   :  { %3038 = vtanh.f32 %v1899_v58 }
0x236c   :  { %v3039_v55 = vpop.eup %3038 }
0x236d   :  { %1902 = vrot.lane.b32.xlu0 %v3039_v55, %s3233_s4 }
0x23df   :  { %v1903_v19 = vpop.permute.xlu0 %1902 }
0x23e0   :  { %v1905_v37 = vmul.f32 %v3037_v53, %v1903_v19  ;;  %v2258_v19 = vld [vmem:[#allocation12 + $0x18] sm:$0xff] }
0x23e2   :  { %1911 = vrot.lane.b32.xlu0 %v1905_v37, %s3233_s4  ;;  %1907 = vrot.lane.b32.xlu1 %v1905_v37, %s3234_s5  ;;  %v2257_v37 = vld [vmem:[#allocation12 + $0x10] sm:$0xff] }
0x2454   :  { %v1912_v59 = vpop.permute.xlu0 %1911  ;;  %v1908_v61 = vpop.permute.xlu1 %1907 }
0x2455   :  { %1914 = vst.msk [vmem:[#allocation3 + $0x4] sm:$0xc] %vm447_vm10, %v1912_v59  ;;  %v1921_v2 = vsel %vm232_vm8, %v1908_v61, %v1912_v59  ;;  %v2256_v59 = vld [vmem:[#allocation12 + $0x8] sm:$0xff] }
0x2456   :  { %1910 = vst.msk [vmem:[#allocation3 + $0x8] sm:$0x3] %vm442_vm11, %v1908_v61  ;;  %v1922_v7 = vmul.f32 %v3393_v24, %v1921_v2  ;;  %v2255_v61 = vld [vmem:[#allocation12] sm:$0xff] }
0x2458   :  { %2863 = vmatmul.mubr.msk.f32.vlgmr.msra.gmra.mxu0 %vm340_vm7, %v1922_v7 }
0x2459   :  { %2885 = vmatpush3.msra.mxu0 %v3676_v22  ;;  %2900 = vmatprep.mubr.msk.f32.mxu0 %vm3231_vm4, %v3230_v6 }
0x245a   :  { %2886 = vmatprep.subr.mxu0 %v3230_v6 }
0x245b   :  { %2887 = vmatpush3.msra.mxu0 %v3685_v23 }
0x245c   :  { %2888 = vmatprep.subr.mxu0 %v3230_v6 }
0x245d   :  { %2889 = vmatpush3.msra.mxu0 %v3691_v26 }
0x245e   :  { %2890 = vmatprep.subr.mxu0 %v3230_v6 }
0x245f   :  { %2891 = vmatpush3.msra.mxu0 %v3703_v28 }
0x2460   :  { %2892 = vmatprep.subr.mxu0 %v3230_v6 }
0x2461   :  { %2893 = vmatpush3.msra.mxu0 %v3705_v29 }
0x2462   :  { %2894 = vmatprep.subr.mxu0 %v3230_v6 }
0x2463   :  { %2895 = vmatpush3.msra.mxu0 %v3712_v32 }
0x2464   :  { %2896 = vmatprep.subr.mxu0 %v3230_v6 }
0x2465   :  { %2897 = vmatpush3.msra.mxu0 %v3716_v33 }
0x2466   :  { %2898 = vmatprep.subr.mxu0 %v3230_v6 }
0x2467   :  { %2899 = vmatpush3.msra.mxu0 %v3720_v34 }
0x2518   :  { %v1992_v22 = vpop.f32.mrf.mxu0 }
0x2519   :  { %v1993_v23 = vadd.f32 %v1992_v22, %v3783_v4 }
0x251a   :  { %v2864_v26 = vpop.f32.mrf.mxu0 }
0x251b   :  { %3040 = vtanh.f32 %v1993_v23  ;;  %v2426_v29 = vmul.f32 -1.442695, %v1993_v23 }
0x251d   :  { %3042 = vpow2.f32 %v2426_v29  ;;  %v2431_v29 = vld [vmem:[#allocation13] ss:$0 sm:$0xff] }
0x2528   :  { %v3041_v28 = vpop.eup %3040 }
0x2529   :  { %2005 = vrot.lane.b32.xlu1 %v3041_v28, %s3233_s4 }
0x252a   :  { %v3043_v0 = vpop.eup %3042 }
0x252b   :  { %v1999_v32 = vadd.f32 1.0, %v3043_v0 }
0x252d   :  { %3044 = vrcp.f32 %v1999_v32 }
0x253a   :  { %v3045_v10 = vpop.eup %3044 }
0x253b   :  { %v2003_v6 = vmul.f32 %v3045_v10, %v1899_v58  ;;  %v2259_v58 = vld [vmem:[#allocation12 + $0x20] sm:$0xff] }
0x259b   :  { %v2006_v12 = vpop.permute.xlu1 %2005 }
0x259c   :  { %v2008_v33 = vmul.f32 %v3045_v10, %v2006_v12 }
0x259e   :  { %2010 = vrot.lane.b32.xlu0 %v2008_v33, %s3234_s5 }
0x2610   :  { %v2011_v34 = vpop.permute.xlu0 %2010 }
0x2611   :  { %v2013_v13 = vadd.f32 %v2011_v34, %v2003_v6 }
0x2613   :  { %3046 = vtanh.f32 %v2013_v13 }
0x2620   :  { %v3047_v4 = vpop.eup %3046 }
0x2621   :  { %2016 = vrot.lane.b32.xlu1 %v3047_v4, %s3233_s4 }
0x2693   :  { %v2017_v1 = vpop.permute.xlu1 %2016 }
0x2694   :  { %v2019_v8 = vmul.f32 %v3045_v10, %v2017_v1 }
0x2696   :  { %2025 = vrot.lane.b32.xlu1 %v2019_v8, %s3233_s4  ;;  %2021 = vrot.lane.b32.xlu0 %v2019_v8, %s3234_s5 }
0x2708   :  { %v2026_v11 = vpop.permute.xlu1 %2025  ;;  %v2022_v14 = vpop.permute.xlu0 %2021 }
0x2709   :  { %2028 = vst.msk [vmem:[#allocation3 + $0x2] sm:$0xc] %vm447_vm10, %v2026_v11  ;;  %v2032_v16 = vsel %vm232_vm8, %v2022_v14, %v2026_v11 }
0x270a   :  { %2024 = vst.msk [vmem:[#allocation3 + $0xa] sm:$0x3] %vm442_vm11, %v2022_v14  ;;  %v2033_v18 = vmul.f32 %v3393_v24, %v2032_v16 }
0x270c   :  { %2882 = vmatmul.mubr.msk.f32.vlgmr.msra.gmra.mxu1 %vm340_vm7, %v2033_v18 }
0x27cc   :  { %v2103_v21 = vpop.f32.mrf.mxu1 }
0x27cd   :  { %v2104_v60 = vadd.f32 %v2103_v21, %v3786_v51 }
0x27ce   :  { %v2883_v15 = vpop.f32.mrf.mxu1 }
0x27cf   :  { %3048 = vtanh.f32 %v2104_v60  ;;  %v2428_v20 = vmul.f32 -1.442695, %v2104_v60 }
0x27d1   :  { %3050 = vpow2.f32 %v2428_v20 }
0x27dc   :  { %v3049_v17 = vpop.eup %3048 }
0x27dd   :  { %2116 = vrot.lane.b32.xlu0 %v3049_v17, %s3233_s4 }
0x27de   :  { %v3051_v62 = vpop.eup %3050 }
0x27df   :  { %v2110_v27 = vadd.f32 1.0, %v3051_v62 }
0x27e1   :  { %3052 = vrcp.f32 %v2110_v27 }
0x27ee   :  { %v3053_v30 = vpop.eup %3052 }
0x27ef   :  { %v2114_v36 = vmul.f32 %v3053_v30, %v2013_v13 }
0x284f   :  { %v2117_v31 = vpop.permute.xlu0 %2116 }
0x2850   :  { %v2119_v25 = vmul.f32 %v3053_v30, %v2117_v31 }
0x2852   :  { %2121 = vrot.lane.b32.xlu1 %v2119_v25, %s3234_s5 }
0x28c4   :  { %v2122_v38 = vpop.permute.xlu1 %2121 }
0x28c5   :  { %v2124_v39 = vadd.f32 %v2122_v38, %v2114_v36 }
0x28c7   :  { %3054 = vtanh.f32 %v2124_v39 }
0x28d4   :  { %v3055_v51 = vpop.eup %3054 }
0x28d5   :  { %2127 = vrot.lane.b32.xlu0 %v3055_v51, %s3233_s4 }
0x2947   :  { %v2128_v40 = vpop.permute.xlu0 %2127 }
0x2948   :  { %v2130_v9 = vmul.f32 %v3053_v30, %v2128_v40 }
0x294a   :  { %2136 = vrot.lane.b32.xlu0 %v2130_v9, %s3233_s4  ;;  %2132 = vrot.lane.b32.xlu1 %v2130_v9, %s3234_s5 }
0x29bc   :  { %v2137_v41 = vpop.permute.xlu0 %2136  ;;  %v2133_v42 = vpop.permute.xlu1 %2132 }
0x29bd   :  { %2139 = vst.msk [vmem:[#allocation3] sm:$0xc] %vm447_vm10, %v2137_v41  ;;  %v2145_v43 = vsel %vm232_vm8, %v2133_v42, %v2137_v41 }
0x29be   :  { %2135 = vst.msk [vmem:[#allocation3 + $0xc] sm:$0x3] %vm442_vm11, %v2133_v42  ;;  %v2146_v3 = vmul.f32 %v3393_v24, %v2145_v43 }
0x29c0   :  { %2901 = vmatmul.mubr.msk.f32.vlgmr.msra.gmra.mxu0 %vm340_vm7, %v2146_v3 }
0x2a80   :  { %v2216_v44 = vpop.f32.mrf.mxu0 }
0x2a81   :  { %v2217_v45 = vadd.f32 %v2216_v44, %v3789_v5  ;;  %v2262_v5 = vld [vmem:[#allocation12 + $0x38] sm:$0xff] }
0x2a82   :  { %v2902_v46 = vpop.f32.mrf.mxu0  ;;  %2903 = vmatprep.subr.mxu1 %v2262_v5 }
0x2a83   :  { %3056 = vtanh.f32 %v2217_v45  ;;  %v2430_v47 = vmul.f32 -1.442695, %v2217_v45  ;;  %2904 = vmatpush3.msra.mxu1 %v2262_v5 }
0x2a84   :  { %2905 = vmatprep.subr.mxu1 %v2261_v57 }
0x2a85   :  { %3058 = vpow2.f32 %v2430_v47  ;;  %2906 = vmatpush3.msra.mxu1 %v2261_v57 }
0x2a86   :  { %2907 = vmatprep.subr.mxu1 %v2260_v35 }
0x2a87   :  { %2908 = vmatpush3.msra.mxu1 %v2260_v35 }
0x2a88   :  { %2909 = vmatprep.subr.mxu1 %v2259_v58 }
0x2a89   :  { %2910 = vmatpush3.msra.mxu1 %v2259_v58 }
0x2a8a   :  { %2911 = vmatprep.subr.mxu1 %v2258_v19 }
0x2a8b   :  { %2912 = vmatpush3.msra.mxu1 %v2258_v19 }
0x2a8c   :  { %2913 = vmatprep.subr.mxu1 %v2257_v37 }
0x2a8d   :  { %2914 = vmatpush3.msra.mxu1 %v2257_v37 }
0x2a8e   :  { %2915 = vmatprep.subr.mxu1 %v2256_v59 }
0x2a8f   :  { %2916 = vmatpush3.msra.mxu1 %v2256_v59 }
0x2a90   :  { %v3057_v63 = vpop.eup %3056  ;;  %2917 = vmatprep.subr.mxu1 %v2255_v61 }
0x2a91   :  { %2229 = vrot.lane.b32.xlu1 %v3057_v63, %s3233_s4  ;;  %2918 = vmatpush3.msra.mxu1 %v2255_v61 }
0x2a92   :  { %v3059_v48 = vpop.eup %3058 }
0x2a93   :  { %v2223_v49 = vadd.f32 1.0, %v3059_v48 }
0x2a95   :  { %3060 = vrcp.f32 %v2223_v49 }
0x2aa2   :  { %v3061_v50 = vpop.eup %3060 }
0x2aa3   :  { %v2227_v24 = vmul.f32 %v3061_v50, %v2124_v39 }
0x2b03   :  { %v2230_v52 = vpop.permute.xlu1 %2229 }
0x2b04   :  { %v2232_v53 = vmul.f32 %v3061_v50, %v2230_v52 }
0x2b06   :  { %2234 = vrot.lane.b32.xlu0 %v2232_v53, %s3234_s5 }
0x2b78   :  { %v2235_v54 = vpop.permute.xlu0 %2234 }
0x2b79   :  { %v2237_v56 = vadd.f32 %v2235_v54, %v2227_v24 }
0x2b7b   :  { %3062 = vtanh.f32 %v2237_v56 }
0x2b88   :  { %v3063_v55 = vpop.eup %3062 }
0x2b89   :  { %2240 = vrot.lane.b32.xlu1 %v3063_v55, %s3233_s4 }
0x2bfb   :  { %v2241_v2 = vpop.permute.xlu1 %2240 }
0x2bfc   :  { %v2243_v7 = vmul.f32 %v3061_v50, %v2241_v2 }
0x2bfe   :  { %2245 = vrot.lane.b32.xlu1 %v2243_v7, %s3234_s5  ;;  %2249 = vrot.lane.b32.xlu0 %v2243_v7, %s3233_s4  ;;  %s2376_s4 = sshll.u32 %s3235_s7, 4  ;;  %s2377_s4 = int_to_ptr.vmem [resolvable:$true] %s2376_s4 }
0x2bff   :  { %s3192_s5 = scalar_lea.vmem %s2377_s4, 256  ;;  %p3197_p3 = scmp.lt.s32.totalorder %s2377_s4, %s2377_s4 }
0x2c00   :  { %p3193_p2 = scmp.ne.s32.totalorder %s2377_s4, %s3192_s5  ;;  %p3198_p4 = scmp.lt.s32.totalorder %s3192_s5, %s3192_s5 }
0x2c02   :  { %p3199_p5 = por %p3198_p4, %p3197_p3 }
0x2c04   :  { %p3200_p6 = pnand %p3199_p5, %p3193_p2 }
0x2c70   :  { %v2246_v22 = vpop.permute.xlu1 %2245  ;;  %v2250_v23 = vpop.permute.xlu0 %2249 }
0x2c71   :  { %2248 = vst.msk [vmem:[#allocation3 + $0xe] sm:$0x3] %vm442_vm11, %v2246_v22 }
0x2c72   :  { %2252 = vst.msk [vmem:[#allocation3 - $0x2] sm:$0xc] %vm447_vm10, %v2250_v23 }
0x2c78   :  { %v2254_v28 = vld [vmem:[#allocation3 + $0x8] sm:$0xff] }
0x2c79   :  { %v2253_v26 = vld [vmem:[#allocation3] sm:$0xff] }
0x2c7a   :  { %2919 = vmatprep.mubr.msk.f32.mxu1 %vm340_vm7, %v2253_v26 }
0x2c7b   :  { %2920 = vmatmul.mubr.msk.f32.vlgmr.msra.gmra.mxu1 %vm340_vm7, %v2254_v28 }
0x2d3b   :  { %v2921_v0 = vpop.f32.mrf.mxu1 }
0x2d3c   :  { %v2348_v32 = vadd.f32 %v2921_v0, %v2431_v29 }
0x2d3d   :  { %v2342_v10 = vpop.f32.mrf.mxu1 }
0x2d3e   :  { %v2343_v12 = vadd.f32 %v2431_v29, %v2342_v10  ;;  %2353 = vmax.xlane.f32.xlu1 %v2348_v32 }
0x2d40   :  { %2351 = vmax.xlane.f32.xlu0 %v2343_v12 }
0x2dc7   :  { %v2354_v33 = vpop.xlane.xlu1 %2353 }
0x2dc8   :  { %v2356_v34 = vsub.f32 %v2348_v32, %v2354_v33 }
0x2dc9   :  { %v2352_v6 = vpop.xlane.xlu0 %2351 }
0x2dca   :  { %v2355_v13 = vsub.f32 %v2343_v12, %v2352_v6  ;;  %v2359_v1 = vmul.f32 1.442695, %v2356_v34 }
0x2dcc   :  { %v2357_v4 = vmul.f32 1.442695, %v2355_v13 }
0x2dce   :  { %3064 = vpow2.f32 %v2357_v4 }
0x2dcf   :  { %3066 = vpow2.f32 %v2359_v1 }
0x2ddb   :  { %v3065_v8 = vpop.eup %3064 }
0x2ddc   :  { %2361 = vadd.xlane.f32.xlu0 %v3065_v8  ;;  %v3067_v11 = vpop.eup %3066 }
0x2de0   :  { %2363 = vadd.xlane.f32.xlu0 %v3067_v11 }
0x2e65   :  { %v2362_v14 = vpop.xlane.xlu0 %2361 }
0x2e66   :  { %3068 = vrcp.f32 %v2362_v14 }
0x2e69   :  { %v2364_v16 = vpop.xlane.xlu0 %2363 }
0x2e6a   :  { %3070 = vrcp.f32 %v2364_v16 }
0x2e73   :  { %v3069_v18 = vpop.eup %3068 }
0x2e74   :  { %v2366_v21 = vmul.f32 %v3069_v18, %v3065_v8 }
0x2e76   :  { %2369 = vst [vmem:[#allocation15] sm:$0xff] %v2366_v21 }
0x2e77   :  { %v3071_v60 = vpop.eup %3070 }
0x2e78   :  { %v2368_v15 = vmul.f32 %v3071_v60, %v3067_v11 }
0x2e7a   :  { %2370 = vst [vmem:[#allocation15 + $0x8] sm:$0xff] %v2368_v15 }
0x2e7b   :  { %3203 = shalt.err (!%p3200_p6)
}
0x2e7c   :  { %2382 = dma.vmem_to_hbm [thread:$0]  %s2377_s4, 256, %s3986_s11, [#allocation6], %s3225_s28, %s3225_s28, %s3226_s29  }
0x2e7d   :  { %3220 = dma.done.wait [#allocation6], 256  }
0x2e7e   :  { %3221 = vsyncadd [#allocation6], 4294967040 }
0x2e7f   :  { %2386 = vsyncpa [#allocation5], 1 }
0x2e80   :  { %2387 = vsyncpa [#allocation8], 1 }
0x2e81   :  { %2388 = vsyncpa [#allocation11], 1 }
0x2e82   :  { %2389 = vsyncpa [#allocation14], 1 }
0x2e83   :  { %2390 = vsyncpa [#allocation6], 1 }

</bundles_post_ra>
